<compile_context>
chip_gen: v6e
topology: v6e:2x2x1
jax: 0.10.0
libtpu: 0.0.40
codegen_flags: <defaults>
</compile_context>

<pallas_src>
import jax
import jax.numpy as jnp
from jax.experimental import pallas as pl
from jax.experimental.pallas import tpu as pltpu

BOARD_SIZE = 8
NUM_ACTIONS = BOARD_SIZE ** 2  # 64
C0 = NUM_ACTIONS               # conv1 input channels


def _round_up(x, m):
    return ((x + m - 1) // m) * m


def qlconvnet_kernel(x_ref, w1_ref, b1_ref, w2_ref, b2_ref, w3_ref, b3_ref,
                     fw1_ref, fb1_ref, fw2_ref, fb2_ref, out_ref):
    x = x_ref[...]                      # [TB, 8, 8*64] bf16, last dim = (w, c)
    tb = x.shape[0]

    # ---- conv1: 64 -> 128, k=4, s=2  (8x8 -> 3x3), im2col + one matmul ----
    patches = []
    for oh in range(3):
        for ow in range(3):
            lo = ow * 2 * C0
            taps = [x[:, oh * 2 + kh, lo:lo + 4 * C0] for kh in range(4)]
            patches.append(jnp.concatenate(taps, axis=-1))          # [TB, 1024]
    lhs1 = jnp.concatenate(patches, axis=0)                          # [9*TB, 1024]
    h1 = jnp.dot(lhs1, w1_ref[...], preferred_element_type=jnp.float32)
    h1 = jnp.maximum(h1 + b1_ref[...], 0.0).astype(jnp.bfloat16)     # [9*TB, 128]

    # ---- conv2: 128 -> 256, k=2, s=1  (3x3 -> 2x2) ----
    def f1(r, c):
        p = (r * 3 + c) * tb
        return h1[p:p + tb, :]
    patches2 = []
    for oh in range(2):
        for ow in range(2):
            taps = [f1(oh + kh, ow + kw) for kh in range(2) for kw in range(2)]
            patches2.append(jnp.concatenate(taps, axis=-1))          # [TB, 512]
    lhs2 = jnp.concatenate(patches2, axis=0)                         # [4*TB, 512]
    h2 = jnp.dot(lhs2, w2_ref[...], preferred_element_type=jnp.float32)
    h2 = jnp.maximum(h2 + b2_ref[...], 0.0).astype(jnp.bfloat16)     # [4*TB, 256]

    # ---- conv3: 256 -> 256, k=2, s=1  (2x2 -> 1x1) ----
    def f2(r, c):
        p = (r * 2 + c) * tb
        return h2[p:p + tb, :]
    lhs3 = jnp.concatenate(
        [f2(kh, kw) for kh in range(2) for kw in range(2)], axis=-1)  # [TB, 1024]
    h3 = jnp.dot(lhs3, w3_ref[...], preferred_element_type=jnp.float32)
    h3 = jnp.maximum(h3 + b3_ref[...], 0.0).astype(jnp.bfloat16)      # [TB, 256]

    # ---- fc1 + ReLU ----
    g1 = jnp.dot(h3, fw1_ref[...], preferred_element_type=jnp.float32)
    g1 = jnp.maximum(g1 + fb1_ref[...], 0.0).astype(jnp.bfloat16)     # [TB, 128]

    # ---- fc2 + softmax over actions (dim=1), all f32 ----
    logits = jnp.dot(g1, fw2_ref[...], preferred_element_type=jnp.float32)
    logits = logits + fb2_ref[...]                                    # [TB, 64]
    m = jnp.max(logits, axis=-1, keepdims=True)
    e = jnp.exp(logits - m)
    s = jnp.sum(e, axis=-1, keepdims=True)
    out_ref[...] = (e * pl.reciprocal(s, approx=True)).astype(out_ref.dtype)


def qlconvnet_forward(x_nchw, params, *, tb=256):
    """x_nchw: [N, 64, 8, 8] float32 (PyTorch NCHW). Returns [N, 64] softmax probs.

    tb: batch tile. 256 fits comfortably in default scoped VMEM on all
    generations (v7x included); raise to 512-1024 on v6e/v5e if desired.
    """
    n = x_nchw.shape[0]
    # NCHW -> NHWC -> [N, H, W*C] (im2col taps become contiguous lane slices), bf16.
    # TODO(synk): callers already holding NHWC/bf16 activations can skip this pass.
    x = jnp.transpose(x_nchw, (0, 2, 3, 1)).reshape(
        n, BOARD_SIZE, BOARD_SIZE * C0).astype(jnp.bfloat16)

    tb_eff = min(tb, _round_up(n, 8))          # keep sublane-aligned tiles
    n_pad = _round_up(n, tb_eff)
    if n_pad != n:
        x = jnp.pad(x, ((0, n_pad - n), (0, 0), (0, 0)))
    grid = (n_pad // tb_eff,)

    weights = (params["w1"], params["b1"], params["w2"], params["b2"],
               params["w3"], params["b3"], params["fw1"], params["fb1"],
               params["fw2"], params["fb2"])

    in_specs = [pl.BlockSpec((tb_eff, BOARD_SIZE, BOARD_SIZE * C0),
                             lambda i: (i, 0, 0))]
    # Weights/biases: full-array blocks with constant index maps -> stay resident
    # in VMEM across all grid steps (no per-step re-DMA).
    in_specs += [pl.BlockSpec(w.shape, lambda i, nd=w.ndim: (0,) * nd)
                 for w in weights]
    out_spec = pl.BlockSpec((tb_eff, NUM_ACTIONS), lambda i: (i, 0))

    out = pl.pallas_call(
        qlconvnet_kernel,
        out_shape=jax.ShapeDtypeStruct((n_pad, NUM_ACTIONS), jnp.float32),
        grid=grid,
        in_specs=in_specs,
        out_specs=out_spec,
        compiler_params=pltpu.CompilerParams(
            dimension_semantics=("parallel",),
            vmem_limit_bytes=48 * 1024 * 1024),
    )(x, *weights)
    return out[:n]


# ----------------------------- parameter helpers -----------------------------

def init_raw_params(key):
    """f32 parameters in PyTorch-equivalent layouts (conv HWIO, fc (in, out))."""
    ks = jax.random.split(key, 10)

    def kaiming(k, shape, fan_in):
        return ((2.0 / fan_in) ** 0.5) * jax.random.normal(k, shape, jnp.float32)

    def bias(k, shape, fan_in):
        bound = 1.0 / (fan_in ** 0.5)
        return jax.random.uniform(k, shape, jnp.float32, -bound, bound)

    return {
        "w1": kaiming(ks[0], (4, 4, C0, 128), 4 * 4 * C0),
        "b1": bias(ks[1], (1, 128), 4 * 4 * C0),
        "w2": kaiming(ks[2], (2, 2, 128, 256), 2 * 2 * 128),
        "b2": bias(ks[3], (1, 256), 2 * 2 * 128),
        "w3": kaiming(ks[4], (2, 2, 256, 256), 2 * 2 * 256),
        "b3": bias(ks[5], (1, 256), 2 * 2 * 256),
        "fw1": kaiming(ks[6], (256, 128), 256),       # fc weight stored as (in, out)
        "fb1": bias(ks[7], (1, 128), 256),
        "fw2": kaiming(ks[8], (128, NUM_ACTIONS), 128),
        "fb2": bias(ks[9], (1, NUM_ACTIONS), 128),
    }


def prepare_params(raw):
    """One-time conversion to kernel layout: im2col bf16 conv weights,
    bf16 fc weights, f32 biases."""
    def im2col(w):                       # [KH, KW, Cin, Cout] -> [KH*KW*Cin, Cout]
        kh, kw, ci, co = w.shape
        return w.reshape(kh * kw * ci, co).astype(jnp.bfloat16)

    return {
        "w1": im2col(raw["w1"]), "b1": raw["b1"],
        "w2": im2col(raw["w2"]), "b2": raw["b2"],
        "w3": im2col(raw["w3"]), "b3": raw["b3"],
        "fw1": raw["fw1"].astype(jnp.bfloat16), "fb1": raw["fb1"],
        "fw2": raw["fw2"].astype(jnp.bfloat16), "fb2": raw["fb2"],
    }


if __name__ == "__main__":
    key = jax.random.PRNGKey(0)
    pkey, xkey = jax.random.split(key)
    params = prepare_params(init_raw_params(pkey))

    # PyTorch-convention input: NCHW [batch=2, channels=64, H=8, W=8]
    x = jax.random.normal(xkey, (2, NUM_ACTIONS, BOARD_SIZE, BOARD_SIZE), jnp.float32)

    out = jax.block_until_ready(qlconvnet_forward(x, params))

    assert out.shape == (2, NUM_ACTIONS), out.shape
    assert bool(jnp.all(jnp.isfinite(out)))
    # softmax rows must sum to ~1 (bf16 matmuls + approx reciprocal)
    assert bool(jnp.allclose(jnp.sum(out, axis=-1), 1.0, atol=1e-2))
    print("KERNEL_OK")
</pallas_src>

<mosaic_0001>
module attributes {stable_mosaic.version = 11 : i64} {
  func.func @qlconvnet_kernel(%arg0: i32, %arg1: memref<8x8x512xbf16, #tpu.memory_space<vmem>>, %arg2: memref<1024x128xbf16, #tpu.memory_space<vmem>>, %arg3: memref<1x128xf32, #tpu.memory_space<vmem>>, %arg4: memref<512x256xbf16, #tpu.memory_space<vmem>>, %arg5: memref<1x256xf32, #tpu.memory_space<vmem>>, %arg6: memref<1024x256xbf16, #tpu.memory_space<vmem>>, %arg7: memref<1x256xf32, #tpu.memory_space<vmem>>, %arg8: memref<256x128xbf16, #tpu.memory_space<vmem>>, %arg9: memref<1x128xf32, #tpu.memory_space<vmem>>, %arg10: memref<128x64xbf16, #tpu.memory_space<vmem>>, %arg11: memref<1x64xf32, #tpu.memory_space<vmem>>, %arg12: memref<8x64xf32, #tpu.memory_space<vmem>>) attributes {dimension_semantics = [#tpu.dimension_semantics<parallel>], iteration_bounds = array<i64: 1>, scalar_prefetch = 0 : i64, scratch_operands = 0 : i64, tpu.core_type = #tpu.core_type<tc>, window_params = [{transform_indices = @transform_0, window_bounds = array<i64: 8, 8, 512>}, {pipeline_mode = #tpu.pipeline_mode<synchronous>, transform_indices = @transform_1, window_bounds = array<i64: 1024, 128>}, {pipeline_mode = #tpu.pipeline_mode<synchronous>, transform_indices = @transform_2, window_bounds = array<i64: 1, 128>}, {pipeline_mode = #tpu.pipeline_mode<synchronous>, transform_indices = @transform_3, window_bounds = array<i64: 512, 256>}, {pipeline_mode = #tpu.pipeline_mode<synchronous>, transform_indices = @transform_4, window_bounds = array<i64: 1, 256>}, {pipeline_mode = #tpu.pipeline_mode<synchronous>, transform_indices = @transform_5, window_bounds = array<i64: 1024, 256>}, {pipeline_mode = #tpu.pipeline_mode<synchronous>, transform_indices = @transform_6, window_bounds = array<i64: 1, 256>}, {pipeline_mode = #tpu.pipeline_mode<synchronous>, transform_indices = @transform_7, window_bounds = array<i64: 256, 128>}, {pipeline_mode = #tpu.pipeline_mode<synchronous>, transform_indices = @transform_8, window_bounds = array<i64: 1, 128>}, {pipeline_mode = #tpu.pipeline_mode<synchronous>, transform_indices = @transform_9, window_bounds = array<i64: 128, 64>}, {pipeline_mode = #tpu.pipeline_mode<synchronous>, transform_indices = @transform_10, window_bounds = array<i64: 1, 64>}, {transform_indices = @transform_11, window_bounds = array<i64: 8, 64>}]} {
    %c0 = arith.constant 0 : index
    %c0_0 = arith.constant 0 : index
    %c0_1 = arith.constant 0 : index
    %0 = vector.load %arg1[%c0, %c0_0, %c0_1] : memref<8x8x512xbf16, #tpu.memory_space<vmem>>, vector<8x8x512xbf16>
    %1 = vector.extract_strided_slice %0 {offsets = [0, 0, 0], sizes = [8, 1, 256], strides = [1, 1, 1]} : vector<8x8x512xbf16> to vector<8x1x256xbf16>
    %2 = vector.shape_cast %1 : vector<8x1x256xbf16> to vector<8x256xbf16>
    %3 = vector.extract_strided_slice %0 {offsets = [0, 1, 0], sizes = [8, 1, 256], strides = [1, 1, 1]} : vector<8x8x512xbf16> to vector<8x1x256xbf16>
    %4 = vector.shape_cast %3 : vector<8x1x256xbf16> to vector<8x256xbf16>
    %5 = vector.extract_strided_slice %0 {offsets = [0, 2, 0], sizes = [8, 1, 256], strides = [1, 1, 1]} : vector<8x8x512xbf16> to vector<8x1x256xbf16>
    %6 = vector.shape_cast %5 : vector<8x1x256xbf16> to vector<8x256xbf16>
    %7 = vector.extract_strided_slice %0 {offsets = [0, 3, 0], sizes = [8, 1, 256], strides = [1, 1, 1]} : vector<8x8x512xbf16> to vector<8x1x256xbf16>
    %8 = vector.shape_cast %7 : vector<8x1x256xbf16> to vector<8x256xbf16>
    %9 = tpu.concatenate %2, %4, %6, %8 in 1 : vector<8x256xbf16>, vector<8x256xbf16>, vector<8x256xbf16>, vector<8x256xbf16> -> vector<8x1024xbf16>
    %10 = vector.extract_strided_slice %0 {offsets = [0, 0, 128], sizes = [8, 1, 256], strides = [1, 1, 1]} : vector<8x8x512xbf16> to vector<8x1x256xbf16>
    %11 = vector.shape_cast %10 : vector<8x1x256xbf16> to vector<8x256xbf16>
    %12 = vector.extract_strided_slice %0 {offsets = [0, 1, 128], sizes = [8, 1, 256], strides = [1, 1, 1]} : vector<8x8x512xbf16> to vector<8x1x256xbf16>
    %13 = vector.shape_cast %12 : vector<8x1x256xbf16> to vector<8x256xbf16>
    %14 = vector.extract_strided_slice %0 {offsets = [0, 2, 128], sizes = [8, 1, 256], strides = [1, 1, 1]} : vector<8x8x512xbf16> to vector<8x1x256xbf16>
    %15 = vector.shape_cast %14 : vector<8x1x256xbf16> to vector<8x256xbf16>
    %16 = vector.extract_strided_slice %0 {offsets = [0, 3, 128], sizes = [8, 1, 256], strides = [1, 1, 1]} : vector<8x8x512xbf16> to vector<8x1x256xbf16>
    %17 = vector.shape_cast %16 : vector<8x1x256xbf16> to vector<8x256xbf16>
    %18 = tpu.concatenate %11, %13, %15, %17 in 1 : vector<8x256xbf16>, vector<8x256xbf16>, vector<8x256xbf16>, vector<8x256xbf16> -> vector<8x1024xbf16>
    %19 = vector.extract_strided_slice %0 {offsets = [0, 0, 256], sizes = [8, 1, 256], strides = [1, 1, 1]} : vector<8x8x512xbf16> to vector<8x1x256xbf16>
    %20 = vector.shape_cast %19 : vector<8x1x256xbf16> to vector<8x256xbf16>
    %21 = vector.extract_strided_slice %0 {offsets = [0, 1, 256], sizes = [8, 1, 256], strides = [1, 1, 1]} : vector<8x8x512xbf16> to vector<8x1x256xbf16>
    %22 = vector.shape_cast %21 : vector<8x1x256xbf16> to vector<8x256xbf16>
    %23 = vector.extract_strided_slice %0 {offsets = [0, 2, 256], sizes = [8, 1, 256], strides = [1, 1, 1]} : vector<8x8x512xbf16> to vector<8x1x256xbf16>
    %24 = vector.shape_cast %23 : vector<8x1x256xbf16> to vector<8x256xbf16>
    %25 = vector.extract_strided_slice %0 {offsets = [0, 3, 256], sizes = [8, 1, 256], strides = [1, 1, 1]} : vector<8x8x512xbf16> to vector<8x1x256xbf16>
    %26 = vector.shape_cast %25 : vector<8x1x256xbf16> to vector<8x256xbf16>
    %27 = tpu.concatenate %20, %22, %24, %26 in 1 : vector<8x256xbf16>, vector<8x256xbf16>, vector<8x256xbf16>, vector<8x256xbf16> -> vector<8x1024xbf16>
    %28 = vector.extract_strided_slice %0 {offsets = [0, 2, 0], sizes = [8, 1, 256], strides = [1, 1, 1]} : vector<8x8x512xbf16> to vector<8x1x256xbf16>
    %29 = vector.shape_cast %28 : vector<8x1x256xbf16> to vector<8x256xbf16>
    %30 = vector.extract_strided_slice %0 {offsets = [0, 3, 0], sizes = [8, 1, 256], strides = [1, 1, 1]} : vector<8x8x512xbf16> to vector<8x1x256xbf16>
    %31 = vector.shape_cast %30 : vector<8x1x256xbf16> to vector<8x256xbf16>
    %32 = vector.extract_strided_slice %0 {offsets = [0, 4, 0], sizes = [8, 1, 256], strides = [1, 1, 1]} : vector<8x8x512xbf16> to vector<8x1x256xbf16>
    %33 = vector.shape_cast %32 : vector<8x1x256xbf16> to vector<8x256xbf16>
    %34 = vector.extract_strided_slice %0 {offsets = [0, 5, 0], sizes = [8, 1, 256], strides = [1, 1, 1]} : vector<8x8x512xbf16> to vector<8x1x256xbf16>
    %35 = vector.shape_cast %34 : vector<8x1x256xbf16> to vector<8x256xbf16>
    %36 = tpu.concatenate %29, %31, %33, %35 in 1 : vector<8x256xbf16>, vector<8x256xbf16>, vector<8x256xbf16>, vector<8x256xbf16> -> vector<8x1024xbf16>
    %37 = vector.extract_strided_slice %0 {offsets = [0, 2, 128], sizes = [8, 1, 256], strides = [1, 1, 1]} : vector<8x8x512xbf16> to vector<8x1x256xbf16>
    %38 = vector.shape_cast %37 : vector<8x1x256xbf16> to vector<8x256xbf16>
    %39 = vector.extract_strided_slice %0 {offsets = [0, 3, 128], sizes = [8, 1, 256], strides = [1, 1, 1]} : vector<8x8x512xbf16> to vector<8x1x256xbf16>
    %40 = vector.shape_cast %39 : vector<8x1x256xbf16> to vector<8x256xbf16>
    %41 = vector.extract_strided_slice %0 {offsets = [0, 4, 128], sizes = [8, 1, 256], strides = [1, 1, 1]} : vector<8x8x512xbf16> to vector<8x1x256xbf16>
    %42 = vector.shape_cast %41 : vector<8x1x256xbf16> to vector<8x256xbf16>
    %43 = vector.extract_strided_slice %0 {offsets = [0, 5, 128], sizes = [8, 1, 256], strides = [1, 1, 1]} : vector<8x8x512xbf16> to vector<8x1x256xbf16>
    %44 = vector.shape_cast %43 : vector<8x1x256xbf16> to vector<8x256xbf16>
    %45 = tpu.concatenate %38, %40, %42, %44 in 1 : vector<8x256xbf16>, vector<8x256xbf16>, vector<8x256xbf16>, vector<8x256xbf16> -> vector<8x1024xbf16>
    %46 = vector.extract_strided_slice %0 {offsets = [0, 2, 256], sizes = [8, 1, 256], strides = [1, 1, 1]} : vector<8x8x512xbf16> to vector<8x1x256xbf16>
    %47 = vector.shape_cast %46 : vector<8x1x256xbf16> to vector<8x256xbf16>
    %48 = vector.extract_strided_slice %0 {offsets = [0, 3, 256], sizes = [8, 1, 256], strides = [1, 1, 1]} : vector<8x8x512xbf16> to vector<8x1x256xbf16>
    %49 = vector.shape_cast %48 : vector<8x1x256xbf16> to vector<8x256xbf16>
    %50 = vector.extract_strided_slice %0 {offsets = [0, 4, 256], sizes = [8, 1, 256], strides = [1, 1, 1]} : vector<8x8x512xbf16> to vector<8x1x256xbf16>
    %51 = vector.shape_cast %50 : vector<8x1x256xbf16> to vector<8x256xbf16>
    %52 = vector.extract_strided_slice %0 {offsets = [0, 5, 256], sizes = [8, 1, 256], strides = [1, 1, 1]} : vector<8x8x512xbf16> to vector<8x1x256xbf16>
    %53 = vector.shape_cast %52 : vector<8x1x256xbf16> to vector<8x256xbf16>
    %54 = tpu.concatenate %47, %49, %51, %53 in 1 : vector<8x256xbf16>, vector<8x256xbf16>, vector<8x256xbf16>, vector<8x256xbf16> -> vector<8x1024xbf16>
    %55 = vector.extract_strided_slice %0 {offsets = [0, 4, 0], sizes = [8, 1, 256], strides = [1, 1, 1]} : vector<8x8x512xbf16> to vector<8x1x256xbf16>
    %56 = vector.shape_cast %55 : vector<8x1x256xbf16> to vector<8x256xbf16>
    %57 = vector.extract_strided_slice %0 {offsets = [0, 5, 0], sizes = [8, 1, 256], strides = [1, 1, 1]} : vector<8x8x512xbf16> to vector<8x1x256xbf16>
    %58 = vector.shape_cast %57 : vector<8x1x256xbf16> to vector<8x256xbf16>
    %59 = vector.extract_strided_slice %0 {offsets = [0, 6, 0], sizes = [8, 1, 256], strides = [1, 1, 1]} : vector<8x8x512xbf16> to vector<8x1x256xbf16>
    %60 = vector.shape_cast %59 : vector<8x1x256xbf16> to vector<8x256xbf16>
    %61 = vector.extract_strided_slice %0 {offsets = [0, 7, 0], sizes = [8, 1, 256], strides = [1, 1, 1]} : vector<8x8x512xbf16> to vector<8x1x256xbf16>
    %62 = vector.shape_cast %61 : vector<8x1x256xbf16> to vector<8x256xbf16>
    %63 = tpu.concatenate %56, %58, %60, %62 in 1 : vector<8x256xbf16>, vector<8x256xbf16>, vector<8x256xbf16>, vector<8x256xbf16> -> vector<8x1024xbf16>
    %64 = vector.extract_strided_slice %0 {offsets = [0, 4, 128], sizes = [8, 1, 256], strides = [1, 1, 1]} : vector<8x8x512xbf16> to vector<8x1x256xbf16>
    %65 = vector.shape_cast %64 : vector<8x1x256xbf16> to vector<8x256xbf16>
    %66 = vector.extract_strided_slice %0 {offsets = [0, 5, 128], sizes = [8, 1, 256], strides = [1, 1, 1]} : vector<8x8x512xbf16> to vector<8x1x256xbf16>
    %67 = vector.shape_cast %66 : vector<8x1x256xbf16> to vector<8x256xbf16>
    %68 = vector.extract_strided_slice %0 {offsets = [0, 6, 128], sizes = [8, 1, 256], strides = [1, 1, 1]} : vector<8x8x512xbf16> to vector<8x1x256xbf16>
    %69 = vector.shape_cast %68 : vector<8x1x256xbf16> to vector<8x256xbf16>
    %70 = vector.extract_strided_slice %0 {offsets = [0, 7, 128], sizes = [8, 1, 256], strides = [1, 1, 1]} : vector<8x8x512xbf16> to vector<8x1x256xbf16>
    %71 = vector.shape_cast %70 : vector<8x1x256xbf16> to vector<8x256xbf16>
    %72 = tpu.concatenate %65, %67, %69, %71 in 1 : vector<8x256xbf16>, vector<8x256xbf16>, vector<8x256xbf16>, vector<8x256xbf16> -> vector<8x1024xbf16>
    %73 = vector.extract_strided_slice %0 {offsets = [0, 4, 256], sizes = [8, 1, 256], strides = [1, 1, 1]} : vector<8x8x512xbf16> to vector<8x1x256xbf16>
    %74 = vector.shape_cast %73 : vector<8x1x256xbf16> to vector<8x256xbf16>
    %75 = vector.extract_strided_slice %0 {offsets = [0, 5, 256], sizes = [8, 1, 256], strides = [1, 1, 1]} : vector<8x8x512xbf16> to vector<8x1x256xbf16>
    %76 = vector.shape_cast %75 : vector<8x1x256xbf16> to vector<8x256xbf16>
    %77 = vector.extract_strided_slice %0 {offsets = [0, 6, 256], sizes = [8, 1, 256], strides = [1, 1, 1]} : vector<8x8x512xbf16> to vector<8x1x256xbf16>
    %78 = vector.shape_cast %77 : vector<8x1x256xbf16> to vector<8x256xbf16>
    %79 = vector.extract_strided_slice %0 {offsets = [0, 7, 256], sizes = [8, 1, 256], strides = [1, 1, 1]} : vector<8x8x512xbf16> to vector<8x1x256xbf16>
    %80 = vector.shape_cast %79 : vector<8x1x256xbf16> to vector<8x256xbf16>
    %81 = tpu.concatenate %74, %76, %78, %80 in 1 : vector<8x256xbf16>, vector<8x256xbf16>, vector<8x256xbf16>, vector<8x256xbf16> -> vector<8x1024xbf16>
    %82 = tpu.concatenate %9, %18, %27, %36, %45, %54, %63, %72, %81 in 0 : vector<8x1024xbf16>, vector<8x1024xbf16>, vector<8x1024xbf16>, vector<8x1024xbf16>, vector<8x1024xbf16>, vector<8x1024xbf16>, vector<8x1024xbf16>, vector<8x1024xbf16>, vector<8x1024xbf16> -> vector<72x1024xbf16>
    %c0_2 = arith.constant 0 : index
    %c0_3 = arith.constant 0 : index
    %83 = vector.load %arg2[%c0_2, %c0_3] : memref<1024x128xbf16, #tpu.memory_space<vmem>>, vector<1024x128xbf16>
    %cst = arith.constant dense<0.000000e+00> : vector<72x128xf32>
    %84 = tpu.matmul %82, %83, %cst {dimension_numbers = #tpu.dot_dimension_numbers<[1], [0], [0], [1], [0, 0, 1, 1], [], []>} : vector<72x1024xbf16>, vector<1024x128xbf16>, vector<72x128xf32> -> vector<72x128xf32>
    %c0_4 = arith.constant 0 : index
    %c0_5 = arith.constant 0 : index
    %85 = vector.load %arg3[%c0_4, %c0_5] : memref<1x128xf32, #tpu.memory_space<vmem>>, vector<1x128xf32>
    %86 = vector.broadcast %85 : vector<1x128xf32> to vector<72x128xf32>
    %87 = arith.addf %84, %86 : vector<72x128xf32>
    %cst_6 = arith.constant 0.000000e+00 : f32
    %88 = vector.broadcast %cst_6 : f32 to vector<72x128xf32>
    %89 = arith.maximumf %87, %88 : vector<72x128xf32>
    %90 = arith.truncf %89 : vector<72x128xf32> to vector<72x128xbf16>
    %91 = vector.extract_strided_slice %90 {offsets = [0, 0], sizes = [8, 128], strides = [1, 1]} : vector<72x128xbf16> to vector<8x128xbf16>
    %92 = vector.extract_strided_slice %90 {offsets = [8, 0], sizes = [8, 128], strides = [1, 1]} : vector<72x128xbf16> to vector<8x128xbf16>
    %93 = vector.extract_strided_slice %90 {offsets = [24, 0], sizes = [8, 128], strides = [1, 1]} : vector<72x128xbf16> to vector<8x128xbf16>
    %94 = vector.extract_strided_slice %90 {offsets = [32, 0], sizes = [8, 128], strides = [1, 1]} : vector<72x128xbf16> to vector<8x128xbf16>
    %95 = tpu.concatenate %91, %92, %93, %94 in 1 : vector<8x128xbf16>, vector<8x128xbf16>, vector<8x128xbf16>, vector<8x128xbf16> -> vector<8x512xbf16>
    %96 = vector.extract_strided_slice %90 {offsets = [8, 0], sizes = [8, 128], strides = [1, 1]} : vector<72x128xbf16> to vector<8x128xbf16>
    %97 = vector.extract_strided_slice %90 {offsets = [16, 0], sizes = [8, 128], strides = [1, 1]} : vector<72x128xbf16> to vector<8x128xbf16>
    %98 = vector.extract_strided_slice %90 {offsets = [32, 0], sizes = [8, 128], strides = [1, 1]} : vector<72x128xbf16> to vector<8x128xbf16>
    %99 = vector.extract_strided_slice %90 {offsets = [40, 0], sizes = [8, 128], strides = [1, 1]} : vector<72x128xbf16> to vector<8x128xbf16>
    %100 = tpu.concatenate %96, %97, %98, %99 in 1 : vector<8x128xbf16>, vector<8x128xbf16>, vector<8x128xbf16>, vector<8x128xbf16> -> vector<8x512xbf16>
    %101 = vector.extract_strided_slice %90 {offsets = [24, 0], sizes = [8, 128], strides = [1, 1]} : vector<72x128xbf16> to vector<8x128xbf16>
    %102 = vector.extract_strided_slice %90 {offsets = [32, 0], sizes = [8, 128], strides = [1, 1]} : vector<72x128xbf16> to vector<8x128xbf16>
    %103 = vector.extract_strided_slice %90 {offsets = [48, 0], sizes = [8, 128], strides = [1, 1]} : vector<72x128xbf16> to vector<8x128xbf16>
    %104 = vector.extract_strided_slice %90 {offsets = [56, 0], sizes = [8, 128], strides = [1, 1]} : vector<72x128xbf16> to vector<8x128xbf16>
    %105 = tpu.concatenate %101, %102, %103, %104 in 1 : vector<8x128xbf16>, vector<8x128xbf16>, vector<8x128xbf16>, vector<8x128xbf16> -> vector<8x512xbf16>
    %106 = vector.extract_strided_slice %90 {offsets = [32, 0], sizes = [8, 128], strides = [1, 1]} : vector<72x128xbf16> to vector<8x128xbf16>
    %107 = vector.extract_strided_slice %90 {offsets = [40, 0], sizes = [8, 128], strides = [1, 1]} : vector<72x128xbf16> to vector<8x128xbf16>
    %108 = vector.extract_strided_slice %90 {offsets = [56, 0], sizes = [8, 128], strides = [1, 1]} : vector<72x128xbf16> to vector<8x128xbf16>
    %109 = vector.extract_strided_slice %90 {offsets = [64, 0], sizes = [8, 128], strides = [1, 1]} : vector<72x128xbf16> to vector<8x128xbf16>
    %110 = tpu.concatenate %106, %107, %108, %109 in 1 : vector<8x128xbf16>, vector<8x128xbf16>, vector<8x128xbf16>, vector<8x128xbf16> -> vector<8x512xbf16>
    %111 = tpu.concatenate %95, %100, %105, %110 in 0 : vector<8x512xbf16>, vector<8x512xbf16>, vector<8x512xbf16>, vector<8x512xbf16> -> vector<32x512xbf16>
    %c0_7 = arith.constant 0 : index
    %c0_8 = arith.constant 0 : index
    %112 = vector.load %arg4[%c0_7, %c0_8] : memref<512x256xbf16, #tpu.memory_space<vmem>>, vector<512x256xbf16>
    %cst_9 = arith.constant dense<0.000000e+00> : vector<32x256xf32>
    %113 = tpu.matmul %111, %112, %cst_9 {dimension_numbers = #tpu.dot_dimension_numbers<[1], [0], [0], [1], [0, 0, 1, 1], [], []>} : vector<32x512xbf16>, vector<512x256xbf16>, vector<32x256xf32> -> vector<32x256xf32>
    %c0_10 = arith.constant 0 : index
    %c0_11 = arith.constant 0 : index
    %114 = vector.load %arg5[%c0_10, %c0_11] : memref<1x256xf32, #tpu.memory_space<vmem>>, vector<1x256xf32>
    %115 = vector.broadcast %114 : vector<1x256xf32> to vector<32x256xf32>
    %116 = arith.addf %113, %115 : vector<32x256xf32>
    %cst_12 = arith.constant 0.000000e+00 : f32
    %117 = vector.broadcast %cst_12 : f32 to vector<32x256xf32>
    %118 = arith.maximumf %116, %117 : vector<32x256xf32>
    %119 = arith.truncf %118 : vector<32x256xf32> to vector<32x256xbf16>
    %120 = vector.extract_strided_slice %119 {offsets = [0, 0], sizes = [8, 256], strides = [1, 1]} : vector<32x256xbf16> to vector<8x256xbf16>
    %121 = vector.extract_strided_slice %119 {offsets = [8, 0], sizes = [8, 256], strides = [1, 1]} : vector<32x256xbf16> to vector<8x256xbf16>
    %122 = vector.extract_strided_slice %119 {offsets = [16, 0], sizes = [8, 256], strides = [1, 1]} : vector<32x256xbf16> to vector<8x256xbf16>
    %123 = vector.extract_strided_slice %119 {offsets = [24, 0], sizes = [8, 256], strides = [1, 1]} : vector<32x256xbf16> to vector<8x256xbf16>
    %124 = tpu.concatenate %120, %121, %122, %123 in 1 : vector<8x256xbf16>, vector<8x256xbf16>, vector<8x256xbf16>, vector<8x256xbf16> -> vector<8x1024xbf16>
    %c0_13 = arith.constant 0 : index
    %c0_14 = arith.constant 0 : index
    %125 = vector.load %arg6[%c0_13, %c0_14] : memref<1024x256xbf16, #tpu.memory_space<vmem>>, vector<1024x256xbf16>
    %cst_15 = arith.constant dense<0.000000e+00> : vector<8x256xf32>
    %126 = tpu.matmul %124, %125, %cst_15 {dimension_numbers = #tpu.dot_dimension_numbers<[1], [0], [0], [1], [0, 0, 1, 1], [], []>} : vector<8x1024xbf16>, vector<1024x256xbf16>, vector<8x256xf32> -> vector<8x256xf32>
    %c0_16 = arith.constant 0 : index
    %c0_17 = arith.constant 0 : index
    %127 = vector.load %arg7[%c0_16, %c0_17] : memref<1x256xf32, #tpu.memory_space<vmem>>, vector<1x256xf32>
    %128 = vector.broadcast %127 : vector<1x256xf32> to vector<8x256xf32>
    %129 = arith.addf %126, %128 : vector<8x256xf32>
    %cst_18 = arith.constant 0.000000e+00 : f32
    %130 = vector.broadcast %cst_18 : f32 to vector<8x256xf32>
    %131 = arith.maximumf %129, %130 : vector<8x256xf32>
    %132 = arith.truncf %131 : vector<8x256xf32> to vector<8x256xbf16>
    %c0_19 = arith.constant 0 : index
    %c0_20 = arith.constant 0 : index
    %133 = vector.load %arg8[%c0_19, %c0_20] : memref<256x128xbf16, #tpu.memory_space<vmem>>, vector<256x128xbf16>
    %cst_21 = arith.constant dense<0.000000e+00> : vector<8x128xf32>
    %134 = tpu.matmul %132, %133, %cst_21 {dimension_numbers = #tpu.dot_dimension_numbers<[1], [0], [0], [1], [0, 0, 1, 1], [], []>} : vector<8x256xbf16>, vector<256x128xbf16>, vector<8x128xf32> -> vector<8x128xf32>
    %c0_22 = arith.constant 0 : index
    %c0_23 = arith.constant 0 : index
    %135 = vector.load %arg9[%c0_22, %c0_23] : memref<1x128xf32, #tpu.memory_space<vmem>>, vector<1x128xf32>
    %136 = vector.broadcast %135 : vector<1x128xf32> to vector<8x128xf32>
    %137 = arith.addf %134, %136 : vector<8x128xf32>
    %cst_24 = arith.constant 0.000000e+00 : f32
    %138 = vector.broadcast %cst_24 : f32 to vector<8x128xf32>
    %139 = arith.maximumf %137, %138 : vector<8x128xf32>
    %140 = arith.truncf %139 : vector<8x128xf32> to vector<8x128xbf16>
    %c0_25 = arith.constant 0 : index
    %c0_26 = arith.constant 0 : index
    %141 = vector.load %arg10[%c0_25, %c0_26] : memref<128x64xbf16, #tpu.memory_space<vmem>>, vector<128x64xbf16>
    %cst_27 = arith.constant dense<0.000000e+00> : vector<8x64xf32>
    %142 = tpu.matmul %140, %141, %cst_27 {dimension_numbers = #tpu.dot_dimension_numbers<[1], [0], [0], [1], [0, 0, 1, 1], [], []>} : vector<8x128xbf16>, vector<128x64xbf16>, vector<8x64xf32> -> vector<8x64xf32>
    %c0_28 = arith.constant 0 : index
    %c0_29 = arith.constant 0 : index
    %143 = vector.load %arg11[%c0_28, %c0_29] : memref<1x64xf32, #tpu.memory_space<vmem>>, vector<1x64xf32>
    %144 = vector.broadcast %143 : vector<1x64xf32> to vector<8x64xf32>
    %145 = arith.addf %142, %144 : vector<8x64xf32>
    %cst_30 = arith.constant dense<0xFF800000> : vector<8xf32>
    %146 = vector.multi_reduction <maximumf>, %145, %cst_30 [1] : vector<8x64xf32> to vector<8xf32>
    %147 = vector.shape_cast %146 : vector<8xf32> to vector<8x1xf32>
    %148 = vector.broadcast %147 : vector<8x1xf32> to vector<8x64xf32>
    %149 = arith.subf %145, %148 : vector<8x64xf32>
    %150 = math.exp %149 : vector<8x64xf32>
    %cst_31 = arith.constant dense<0.000000e+00> : vector<8xf32>
    %151 = vector.multi_reduction <add>, %150, %cst_31 [1] : vector<8x64xf32> to vector<8xf32>
    %152 = vector.shape_cast %151 : vector<8xf32> to vector<8x1xf32>
    %153 = tpu.reciprocal %152 {approx = true} : vector<8x1xf32> -> vector<8x1xf32>
    %154 = vector.broadcast %153 : vector<8x1xf32> to vector<8x64xf32>
    %155 = arith.mulf %150, %154 : vector<8x64xf32>
    %c0_32 = arith.constant 0 : index
    %c0_33 = arith.constant 0 : index
    %156 = vector.load %arg12[%c0_32, %c0_33] : memref<8x64xf32, #tpu.memory_space<vmem>>, vector<8x64xf32>
    tpu.vector_store %arg12[%c0_32, %c0_33], %155 {strides = array<i32>} : memref<8x64xf32, #tpu.memory_space<vmem>>, vector<8x64xf32>,
    return
  }
  func.func @transform_0(%arg0: i32) -> (i32, i32, i32) {
    %c0_i32 = arith.constant 0 : i32
    %c0_i32_0 = arith.constant 0 : i32
    %c0_i32_1 = arith.constant 0 : i32
    return %arg0, %c0_i32, %c0_i32_0 : i32, i32, i32
  }
  func.func @transform_1(%arg0: i32) -> (i32, i32) {
    %c0_i32 = arith.constant 0 : i32
    %c0_i32_0 = arith.constant 0 : i32
    %c0_i32_1 = arith.constant 0 : i32
    return %c0_i32, %c0_i32_0 : i32, i32
  }
  func.func @transform_2(%arg0: i32) -> (i32, i32) {
    %c0_i32 = arith.constant 0 : i32
    %c0_i32_0 = arith.constant 0 : i32
    %c0_i32_1 = arith.constant 0 : i32
    return %c0_i32, %c0_i32_0 : i32, i32
  }
  func.func @transform_3(%arg0: i32) -> (i32, i32) {
    %c0_i32 = arith.constant 0 : i32
    %c0_i32_0 = arith.constant 0 : i32
    %c0_i32_1 = arith.constant 0 : i32
    return %c0_i32, %c0_i32_0 : i32, i32
  }
  func.func @transform_4(%arg0: i32) -> (i32, i32) {
    %c0_i32 = arith.constant 0 : i32
    %c0_i32_0 = arith.constant 0 : i32
    %c0_i32_1 = arith.constant 0 : i32
    return %c0_i32, %c0_i32_0 : i32, i32
  }
  func.func @transform_5(%arg0: i32) -> (i32, i32) {
    %c0_i32 = arith.constant 0 : i32
    %c0_i32_0 = arith.constant 0 : i32
    %c0_i32_1 = arith.constant 0 : i32
    return %c0_i32, %c0_i32_0 : i32, i32
  }
  func.func @transform_6(%arg0: i32) -> (i32, i32) {
    %c0_i32 = arith.constant 0 : i32
    %c0_i32_0 = arith.constant 0 : i32
    %c0_i32_1 = arith.constant 0 : i32
    return %c0_i32, %c0_i32_0 : i32, i32
  }
  func.func @transform_7(%arg0: i32) -> (i32, i32) {
    %c0_i32 = arith.constant 0 : i32
    %c0_i32_0 = arith.constant 0 : i32
    %c0_i32_1 = arith.constant 0 : i32
    return %c0_i32, %c0_i32_0 : i32, i32
  }
  func.func @transform_8(%arg0: i32) -> (i32, i32) {
    %c0_i32 = arith.constant 0 : i32
    %c0_i32_0 = arith.constant 0 : i32
    %c0_i32_1 = arith.constant 0 : i32
    return %c0_i32, %c0_i32_0 : i32, i32
  }
  func.func @transform_9(%arg0: i32) -> (i32, i32) {
    %c0_i32 = arith.constant 0 : i32
    %c0_i32_0 = arith.constant 0 : i32
    %c0_i32_1 = arith.constant 0 : i32
    return %c0_i32, %c0_i32_0 : i32, i32
  }
  func.func @transform_10(%arg0: i32) -> (i32, i32) {
    %c0_i32 = arith.constant 0 : i32
    %c0_i32_0 = arith.constant 0 : i32
    %c0_i32_1 = arith.constant 0 : i32
    return %c0_i32, %c0_i32_0 : i32, i32
  }
  func.func @transform_11(%arg0: i32) -> (i32, i32) {
    %c0_i32 = arith.constant 0 : i32
    %c0_i32_0 = arith.constant 0 : i32
    return %arg0, %c0_i32 : i32, i32
  }
}

</mosaic_0001>

<bundles_post_ra>
// kernel: tpu_custom_call.1
= control target key start
LH: loop header
LB: loop body
LE: loop exit
PB: predicated region body
PF: predicated region fallthrough
CT: control target
= control target key end

     0   :  { %16 = vsyncpa [#allocation3], 0  ;;  %s7021_s0 = inlined_call_operand.hbm [shape: bf16[8,8,512], index: 0, kind: input, shape index: {}]   ;;  %s7022_s1 = inlined_call_operand.hbm [shape: bf16[1024,128], index: 1, kind: input, shape index: {}]   ;;  %s7023_s2 = inlined_call_operand.vmem [shape: f32[1,128], index: 2, kind: input, shape index: {}]   ;;  %s7024_s3 = inlined_call_operand.hbm [shape: bf16[512,256], index: 3, kind: input, shape index: {}]   ;;  %s7025_s4 = inlined_call_operand.vmem [shape: f32[1,256], index: 4, kind: input, shape index: {}]   ;;  %s7026_s5 = inlined_call_operand.hbm [shape: bf16[1024,256], index: 5, kind: input, shape index: {}]   ;;  %s7027_s6 = inlined_call_operand.vmem [shape: f32[1,256], index: 6, kind: input, shape index: {}]   ;;  %s7028_s7 = inlined_call_operand.hbm [shape: bf16[256,128], index: 7, kind: input, shape index: {}]   ;;  %s7029_s8 = inlined_call_operand.vmem [shape: f32[1,128], index: 8, kind: input, shape index: {}]   ;;  %s7030_s9 = inlined_call_operand.vmem [shape: bf16[128,64], index: 9, kind: input, shape index: {}]   ;;  %s7031_s10 = inlined_call_operand.vmem [shape: f32[1,64], index: 10, kind: input, shape index: {}]   ;;  %s7032_s11 = inlined_call_operand.hbm [shape: f32[8,64], index: 11, kind: output, shape index: {}]  }
   0x1   :  { %17 = vsyncpa [#allocation6], 0 }
   0x2   :  { %18 = vsyncpa [#allocation9], 0 }
   0x3   :  { %19 = vsyncpa [#allocation4], 0  ;;  %s4971_s17 = smov [#allocation5]  }
   0x4   :  { %s37_s18 = sshll.u32 %s4971_s17, 4  ;;  %s38_s18 = int_to_ptr.vmem [resolvable:$true] %s37_s18 }
   0x5   :  { %s4851_s19 = scalar_lea.vmem %s38_s18, 8192  ;;  %p4856_p1 = scmp.lt.s32.totalorder %s38_s18, %s38_s18 }
   0x6   :  { %p4852_p0 = scmp.ne.s32.totalorder %s38_s18, %s4851_s19  ;;  %p4857_p2 = scmp.lt.s32.totalorder %s4851_s19, %s4851_s19 }
   0x8   :  { %p4858_p3 = por %p4857_p2, %p4856_p1 }
   0xa   :  { %p4859_p4 = pnand %p4858_p3, %p4852_p0 }
   0xc   :  { %4862 = shalt.err (!%p4859_p4)
}
   0xd   :  { %s4972_s20 = smov 64   ;;  %s4973_s21 = smov 4  }
   0xe   :  { %43 = dma.hbm_to_vmem [thread:$0]  %s7022_s1, 8192, %s38_s18, [#allocation6], %s4972_s20, %s4972_s20, %s4973_s21  }
   0xf   :  { %s4974_s24 = smov [#allocation8]   ;;  %s4975_s26 = smov [#allocation2]  }
  0x10   :  { %s65_s25 = sshll.u32 %s4974_s24, 4  ;;  %s25_s27 = sshll.u32 %s4975_s26, 4  ;;  %s66_s25 = int_to_ptr.vmem [resolvable:$true] %s65_s25  ;;  %s26_s27 = int_to_ptr.vmem [resolvable:$true] %s25_s27 }
  0x11   :  { %s4871_s28 = scalar_lea.vmem %s66_s25, 16384  ;;  %p4876_p6 = scmp.lt.s32.totalorder %s66_s25, %s66_s25 }
  0x12   :  { %p4872_p5 = scmp.ne.s32.totalorder %s66_s25, %s4871_s28  ;;  %p4877_p7 = scmp.lt.s32.totalorder %s4871_s28, %s4871_s28 }
  0x14   :  { %p4878_p8 = por %p4877_p7, %p4876_p6 }
  0x16   :  { %p4879_p9 = pnand %p4878_p8, %p4872_p5 }
  0x18   :  { %4882 = shalt.err (!%p4879_p9)
}
  0x19   :  { %s4976_s29 = smov 128   ;;  %s4977_s30 = smov 8  }
  0x1a   :  { %71 = dma.hbm_to_vmem [thread:$0]  %s7026_s5, 16384, %s66_s25, [#allocation9], %s4976_s29, %s4976_s29, %s4977_s30  }
  0x1b   :  { %s4891_s1 = scalar_lea.vmem %s26_s27, 2048  ;;  %p4896_p11 = scmp.lt.s32.totalorder %s26_s27, %s26_s27 }
  0x1c   :  { %p4892_p10 = scmp.ne.s32.totalorder %s26_s27, %s4891_s1  ;;  %p4897_p12 = scmp.lt.s32.totalorder %s4891_s1, %s4891_s1 }
  0x1e   :  { %p4898_p13 = por %p4897_p12, %p4896_p11 }
  0x20   :  { %p4899_p0 = pnand %p4898_p13, %p4892_p10 }
  0x22   :  { %4902 = shalt.err (!%p4899_p0)
}
  0x23   :  { %s4978_s14 = smov 256   ;;  %s4979_s15 = smov 16  }
  0x24   :  { %31 = dma.hbm_to_vmem [thread:$0]  %s7021_s0, 2048, %s26_s27, [#allocation3], %s4978_s14, %s4978_s14, %s4979_s15  }
  0x25   :  { %s4980_s18 = smov [#allocation7]   ;;  %s4981_s22 = smov [#allocation10]  }
  0x26   :  { %s51_s19 = sshll.u32 %s4980_s18, 4  ;;  %s79_s23 = sshll.u32 %s4981_s22, 4  ;;  %s52_s19 = int_to_ptr.vmem [resolvable:$true] %s51_s19  ;;  %s80_s23 = int_to_ptr.vmem [resolvable:$true] %s79_s23 }
  0x27   :  { %s4911_s5 = scalar_lea.vmem %s52_s19, 8192  ;;  %p4916_p2 = scmp.lt.s32.totalorder %s52_s19, %s52_s19 }
  0x28   :  { %p4912_p1 = scmp.ne.s32.totalorder %s52_s19, %s4911_s5  ;;  %p4917_p3 = scmp.lt.s32.totalorder %s4911_s5, %s4911_s5 }
  0x2a   :  { %p4918_p4 = por %p4917_p3, %p4916_p2 }
  0x2c   :  { %p4919_p5 = pnand %p4918_p4, %p4912_p1 }
  0x2e   :  { %4922 = shalt.err (!%p4919_p5)
}
  0x2f   :  { %57 = dma.hbm_to_vmem [thread:$0]  %s7024_s3, 8192, %s52_s19, [#allocation6], %s4976_s29, %s4976_s29, %s4977_s30  }
  0x30   :  { %s4931_s26 = scalar_lea.vmem %s80_s23, 2048  ;;  %p4936_p7 = scmp.lt.s32.totalorder %s80_s23, %s80_s23 }
  0x31   :  { %p4932_p6 = scmp.ne.s32.totalorder %s80_s23, %s4931_s26  ;;  %p4937_p8 = scmp.lt.s32.totalorder %s4931_s26, %s4931_s26 }
  0x33   :  { %p4938_p9 = por %p4937_p8, %p4936_p7 }
  0x35   :  { %p4939_p10 = pnand %p4938_p9, %p4932_p6 }
  0x37   :  { %4942 = shalt.err (!%p4939_p10)
}
  0x38   :  { %85 = dma.hbm_to_vmem [thread:$0]  %s7028_s7, 2048, %s80_s23, [#allocation9], %s4972_s20, %s4972_s20, %s4973_s21  }
  0x39   :  { %4963 = dma.done.wait [#allocation3], 2048  }
  0x3a   :  { %4964 = vsyncadd [#allocation3], 4294965248 }
  0x3b   :  { %4965 = dma.done.wait [#allocation6], 16384  }
  0x3c   :  { %4966 = vsyncadd [#allocation6], 4294950912 }
  0x3d   :  { %4967 = dma.done.wait [#allocation9], 18432  }
  0x3e   :  { %4968 = vsyncadd [#allocation9], 4294948864  ;;  %v4431_v0 = vld [vmem:[#allocation5 + $0x78] sm:$0xff]   ;;  %v4435_v4 = vld [vmem:[#allocation5 + $0x70] sm:$0xff]   ;;  %vm181_vm0 = vcmask 1041409   ;;  %vm184_vm1 = vcmask 1042434  }
  0x3f   :  { %v4432_v1 = vld [vmem:[#allocation5 + $0xf8] sm:$0xff]   ;;  %4182 = vmatprep.subr.bf16.mxu0 %v4431_v0  ;;  %v4436_v5 = vld [vmem:[#allocation5 + $0xf0] sm:$0xff]   ;;  %v4439_v8 = vld [vmem:[#allocation5 + $0x68] sm:$0xff]   ;;  %vm331_vm2 = vcmask 1043456   ;;  %vm187_vm3 = vcmask 1043459   ;;  %vm190_vm4 = vcmask 1044484  }
  0x40   :  { %v4433_v2 = vld [vmem:[#allocation5 + $0x38] sm:$0xff]   ;;  %4228 = vmatprep.subr.bf16.mxu1 %v4432_v1  ;;  %v4437_v6 = vld [vmem:[#allocation5 + $0x30] sm:$0xff]   ;;  %v4440_v9 = vld [vmem:[#allocation5 + $0xe8] sm:$0xff]   ;;  %vm193_vm5 = vcmask 1045509   ;;  %vm196_vm6 = vcmask 1046534   ;;  %vm199_vm7 = vcmask 1047559  }
  0x41   :  { %v4434_v3 = vld [vmem:[#allocation5 + $0xb8] sm:$0xff]   ;;  %4183 = vmatpush3.bf16.msra.mxu0 %v4433_v2  ;;  %v4438_v7 = vld [vmem:[#allocation5 + $0xb0] sm:$0xff]   ;;  %v4441_v10 = vld [vmem:[#allocation5 + $0x28] sm:$0xff]   ;;  %vm4983_vm8 = vmmov 0   ;;  %vm3821_vm9 = vcmask 523264  }
  0x42   :  { %4229 = vmatpush3.bf16.msra.mxu1 %v4434_v3  ;;  %4184 = vmatprep.subr.bf16.mxu0 %v4435_v4  ;;  %v4442_v11 = vld [vmem:[#allocation5 + $0xa8] sm:$0xff]   ;;  %v4443_v12 = vld [vmem:[#allocation5 + $0x60] sm:$0xff]   ;;  %v4447_v16 = vld [vmem:[#allocation5 + $0x58] sm:$0xff]  }
  0x43   :  { %4230 = vmatprep.subr.bf16.mxu1 %v4436_v5  ;;  %v4444_v13 = vld [vmem:[#allocation5 + $0xe0] sm:$0xff]   ;;  %v4448_v17 = vld [vmem:[#allocation5 + $0xd8] sm:$0xff]   ;;  %v4451_v20 = vld [vmem:[#allocation5 + $0x50] sm:$0xff]  }
  0x44   :  { %v4445_v14 = vld [vmem:[#allocation5 + $0x20] sm:$0xff]   ;;  %v4449_v18 = vld [vmem:[#allocation5 + $0x18] sm:$0xff]   ;;  %v4452_v21 = vld [vmem:[#allocation5 + $0xd0] sm:$0xff]  }
  0x45   :  { %4185 = vmatpush3.bf16.msra.mxu0 %v4437_v6  ;;  %v4446_v15 = vld [vmem:[#allocation5 + $0xa0] sm:$0xff]   ;;  %v4450_v19 = vld [vmem:[#allocation5 + $0x98] sm:$0xff]   ;;  %v4453_v22 = vld [vmem:[#allocation5 + $0x10] sm:$0xff]  }
  0x46   :  { %4231 = vmatpush3.bf16.msra.mxu1 %v4438_v7  ;;  %4186 = vmatprep.subr.bf16.mxu0 %v4439_v8  ;;  %v4454_v23 = vld [vmem:[#allocation5 + $0x90] sm:$0xff]   ;;  %v4455_v24 = vld [vmem:[#allocation5 + $0x48] sm:$0xff]   ;;  %v4459_v28 = vld [vmem:[#allocation5 + $0x40] sm:$0xff]  }
  0x47   :  { %4232 = vmatprep.subr.bf16.mxu1 %v4440_v9  ;;  %v4456_v25 = vld [vmem:[#allocation5 + $0xc8] sm:$0xff]   ;;  %v4460_v29 = vld [vmem:[#allocation5 + $0xc0] sm:$0xff]   ;;  %v5070_v34 = vld [vmem:[#allocation2 + $0x10] sm:$0xff] }
  0x48   :  { %v4457_v26 = vld [vmem:[#allocation5 + $0x8] sm:$0xff]   ;;  %v4461_v30 = vld [vmem:[#allocation5] sm:$0xff]   ;;  %v5072_v35 = vld [vmem:[#allocation2 + $0x18] sm:$0xff]  ;;  %v3854_v39 = vcombine.high %v5070_v34, %v5070_v34  ;;  %v317_v45 = vrot.slane %v5070_v34, 4 }
  0x49   :  { %4187 = vmatpush3.bf16.msra.mxu0 %v4441_v10  ;;  %v4458_v27 = vld [vmem:[#allocation5 + $0x88] sm:$0xff]   ;;  %v4462_v31 = vld [vmem:[#allocation5 + $0x80] sm:$0xff]   ;;  %v5084_v42 = vld [vmem:[#allocation2 + $0x30] sm:$0xff]  ;;  %v318_v46 = vrot.slane %v5072_v35, 4 }
  0x4a   :  { %4233 = vmatpush3.bf16.msra.mxu1 %v4442_v11  ;;  %4188 = vmatprep.subr.bf16.mxu0 %v4443_v12  ;;  %v5066_v32 = vld [vmem:[#allocation2] sm:$0xff]  ;;  %v5068_v33 = vld [vmem:[#allocation2 + $0x8] sm:$0xff]  ;;  %v5093_v48 = vld [vmem:[#allocation2 + $0x38] sm:$0xff]  ;;  %v3858_v50 = vcombine.high %v5084_v42, %v5084_v42  ;;  %v5103_v53 = vunpack.c.l.b16 %v3854_v39  ;;  %v321_v60 = vrot.slane %v5084_v42, 4 }
  0x4b   :  { %4234 = vmatprep.subr.bf16.mxu1 %v4444_v13  ;;  %v5074_v36 = vld [vmem:[#allocation2 + $0x20] sm:$0xff]  ;;  %v5076_v37 = vld [vmem:[#allocation2 + $0x28] sm:$0xff]  ;;  %v3852_v38 = vcombine.high %v5066_v32, %v5066_v32  ;;  %v315_v40 = vrot.slane %v5066_v32, 4  ;;  %v316_v41 = vrot.slane %v5068_v33, 4  ;;  %v5095_v49 = vld [vmem:[#allocation2 + $0x50] sm:$0xff]  ;;  %v322_v5 = vrot.slane %v5093_v48, 4 }
  0x4c   :  { %v5086_v43 = vld [vmem:[#allocation2 + $0x40] sm:$0xff]  ;;  %v3856_v44 = vcombine.high %v5074_v36, %v5074_v36  ;;  %v319_v47 = vrot.slane %v5074_v36, 4  ;;  %v5105_v54 = vld [vmem:[#allocation2 + $0x48] sm:$0xff]  ;;  %v5109_v56 = vld [vmem:[#allocation2 + $0x70] sm:$0xff]  ;;  %v3862_v57 = vcombine.high %v5095_v49, %v5095_v49  ;;  %v320_v59 = vrot.slane %v5076_v37, 4 }
  0x4d   :  { %4189 = vmatpush3.bf16.msra.mxu0 %v4445_v14  ;;  %v3860_v51 = vcombine.high %v5086_v43, %v5086_v43  ;;  %v5101_v52 = vunpack.c.l.b16 %v3852_v38  ;;  %v5107_v55 = vld [vmem:[#allocation2 + $0x60] sm:$0xff]  ;;  %v5117_v61 = vld [vmem:[#allocation2 + $0x58] sm:$0xff]  ;;  %v3866_v63 = vcombine.high %v5109_v56, %v5109_v56  ;;  %v5123_v0 = vunpack.c.l.b16 %v3858_v50  ;;  %v5136_v7 = vld [vmem:[#allocation2 + $0x68] sm:$0xff] }
  0x4e   :  { %4235 = vmatpush3.bf16.msra.mxu1 %v4446_v15  ;;  %4190 = vmatprep.subr.bf16.mxu0 %v4447_v16  ;;  %v5113_v58 = vunpack.c.l.b16 %v3856_v44  ;;  %v3864_v62 = vcombine.high %v5107_v55, %v5107_v55  ;;  %v5127_v2 = vunpack.c.l.b16 %v3862_v57  ;;  %v5130_v3 = vrot.slane %v5103_v53, 7  ;;  %v4479_v6 = vld [vmem:[#allocation5 + $0x178] sm:$0xff]  }
  0x4f   :  { %4236 = vmatprep.subr.bf16.mxu1 %v4448_v17  ;;  %7338 = vst [vmem:[#allocation17_spill] sm:$0xff] %v5123_v0  ;;  %v5125_v1 = vunpack.c.l.b16 %v3860_v51  ;;  %v5140_v9 = vunpack.c.l.b16 %v3866_v63  ;;  %v5143_v10 = vrot.slane %v5123_v0, 5  ;;  %v4481_v12 = vld [vmem:[#allocation5 + $0x1f8] sm:$0xff]   ;;  %v323_v16 = vrot.slane %v5086_v43, 4 }
  0x50   :  { %7337 = vst [vmem:[#allocation16_spill] sm:$0xff] %v5113_v58  ;;  %7340 = vst [vmem:[#allocation19_spill] sm:$0xff] %v5127_v2  ;;  %v5133_v4 = vrot.slane %v5113_v58, 6  ;;  %v5138_v8 = vunpack.c.l.b16 %v3864_v62  ;;  %v5148_v13 = vld [vmem:[#allocation2 + $0x78] sm:$0xff]  ;;  %v202_v14 = vsel %vm181_vm0, %v5130_v3, %v5101_v52  ;;  %v5154_v15 = vrot.slane %v5127_v2, 3 }
  0x51   :  { %4191 = vmatpush3.bf16.msra.mxu0 %v4449_v18  ;;  %7339 = vst [vmem:[#allocation18_spill] sm:$0xff] %v5125_v1  ;;  %7341 = vst [vmem:[#allocation20_spill] sm:$0xff] %v5130_v3  ;;  %v5146_v11 = vrot.slane %v5125_v1, 4  ;;  %v324_v17 = vrot.slane %v5105_v54, 4  ;;  %v5185_v38 = vsel %vm331_vm2, %v319_v47, %v320_v59  ;;  %v5188_v39 = vsel %vm331_vm2, %v321_v60, %v322_v5 }
  0x52   :  { %4237 = vmatpush3.bf16.msra.mxu1 %v4450_v19  ;;  %4192 = vmatprep.subr.bf16.mxu0 %v4451_v20  ;;  %7342 = vst [vmem:[#allocation21_spill] sm:$0xff] %v5138_v8  ;;  %7343 = vst [vmem:[#allocation22_spill] sm:$0xff] %v5140_v9  ;;  %v204_v18 = vsel %vm184_vm1, %v5133_v4, %v202_v14  ;;  %v5161_v19 = vrot.slane %v5138_v8, 2  ;;  %v5164_v20 = vrot.slane %v5140_v9, 1  ;;  %v5287_v57 = vrot.slane %v5138_v8, 3 }
  0x53   :  { %4238 = vmatprep.subr.bf16.mxu1 %v4452_v21  ;;  %7344 = vst [vmem:[#allocation23_spill] sm:$0xff] %v5143_v10  ;;  %7345 = vst [vmem:[#allocation24_spill] sm:$0xff] %v5146_v11  ;;  %v325_v21 = vrot.slane %v5095_v49, 4  ;;  %v5193_v50 = vsel %vm331_vm2, %v323_v16, %v324_v17  ;;  %v3872_v59 = vcombine.high %v5185_v38, %v5185_v38 }
  0x54   :  { %7346 = vst [vmem:[#allocation25_spill] sm:$0xff] %v5154_v15  ;;  %7347 = vst [vmem:[#allocation26_spill] sm:$0xff] %v5161_v19  ;;  %v3874_v60 = vcombine.high %v5188_v39, %v5188_v39  ;;  %v3876_v62 = vcombine.high %v5193_v50, %v5193_v50 }
  0x55   :  { %4193 = vmatpush3.bf16.msra.mxu0 %v4453_v22  ;;  %7348 = vst [vmem:[#allocation27_spill] sm:$0xff] %v5164_v20  ;;  %v206_v22 = vsel %vm187_vm3, %v5143_v10, %v204_v18  ;;  %v5230_v16 = vunpack.c.l.b16 %v3872_v59  ;;  %7366 = vst [vmem:[#allocation45_spill] sm:$0xff] %v5287_v57 }
  0x56   :  { %4239 = vmatpush3.bf16.msra.mxu1 %v4454_v23  ;;  %4194 = vmatprep.subr.bf16.mxu0 %v4455_v24  ;;  %v326_v23 = vrot.slane %v5117_v61, 4  ;;  %v327_v24 = vrot.slane %v5107_v55, 4  ;;  %v5232_v17 = vunpack.c.l.b16 %v3874_v60  ;;  %v5234_v18 = vunpack.c.l.b16 %v3876_v62 }
  0x57   :  { %4240 = vmatprep.subr.bf16.mxu1 %v4456_v25  ;;  %v328_v25 = vrot.slane %v5136_v7, 4  ;;  %7351 = vst [vmem:[#allocation30_spill] sm:$0xff] %v5230_v16  ;;  %v5273_v60 = vrot.slane %v5113_v58, 7  ;;  %v5276_v62 = vrot.slane %v5123_v0, 6 }
  0x58   :  { %7352 = vst [vmem:[#allocation31_spill] sm:$0xff] %v5232_v17  ;;  %7353 = vst [vmem:[#allocation32_spill] sm:$0xff] %v5234_v18 }
  0x59   :  { %4195 = vmatpush3.bf16.msra.mxu0 %v4457_v26  ;;  %v208_v26 = vsel %vm190_vm4, %v5146_v11, %v206_v22  ;;  %7364 = vst [vmem:[#allocation43_spill] sm:$0xff] %v5276_v62 }
  0x5a   :  { %4241 = vmatpush3.bf16.msra.mxu1 %v4458_v27  ;;  %4196 = vmatprep.subr.bf16.mxu0 %v4459_v28  ;;  %v329_v27 = vrot.slane %v5109_v56, 4  ;;  %v330_v28 = vrot.slane %v5148_v13, 4 }
  0x5b   :  { %4242 = vmatprep.subr.bf16.mxu1 %v4460_v29  ;;  %v5177_v29 = vsel %vm331_vm2, %v315_v40, %v316_v41  ;;  %v5196_v40 = vsel %vm331_vm2, %v325_v21, %v326_v23  ;;  %v5199_v41 = vsel %vm331_vm2, %v327_v24, %v328_v25  ;;  %v5243_v24 = vrot.slane %v5101_v52, 1 }
  0x5c   :  { %v3868_v47 = vcombine.high %v5177_v29, %v5177_v29  ;;  %v3878_v63 = vcombine.high %v5196_v40, %v5196_v40  ;;  %v3880_v5 = vcombine.high %v5199_v41, %v5199_v41 }
  0x5d   :  { %4197 = vmatpush3.bf16.msra.mxu0 %v4461_v30  ;;  %v210_v30 = vsel %vm193_vm5, %v5154_v15, %v208_v26  ;;  %v5249_v26 = vrot.slane %v5230_v16, 6 }
  0x5e   :  { %4243 = vmatpush3.bf16.msra.mxu1 %v4462_v31  ;;  %4274 = vmatprep.subr.bf16.mxu0 %v4479_v6  ;;  %v5182_v31 = vsel %vm331_vm2, %v317_v45, %v318_v46  ;;  %v212_v44 = vsel %vm196_vm6, %v5161_v19, %v210_v30  ;;  %v5206_v46 = vsel %vm331_vm2, %v329_v27, %v330_v28  ;;  %v5236_v21 = vunpack.c.l.b16 %v3878_v63 }
  0x5f   :  { %4320 = vmatprep.subr.bf16.mxu1 %v4481_v12  ;;  %v5203_v45 = vsel %vm199_vm7, %v5164_v20, %v212_v44  ;;  %v3870_v51 = vcombine.high %v5182_v31, %v5182_v31  ;;  %v3882_v6 = vcombine.high %v5206_v46, %v5206_v46  ;;  %v5226_v12 = vunpack.c.l.b16 %v3868_v47  ;;  %7358 = vst [vmem:[#allocation37_spill] sm:$0xff] %v5249_v26 }
  0x60   :  { %7354 = vst [vmem:[#allocation33_spill] sm:$0xff] %v5236_v21  ;;  %v5238_v22 = vunpack.c.l.b16 %v3880_v5  ;;  %v5252_v27 = vrot.slane %v5232_v17, 5  ;;  %v5255_v28 = vrot.slane %v5234_v18, 4  ;;  %v5258_v30 = vrot.slane %v5236_v21, 3 }
  0x61   :  { %7349 = vst [vmem:[#allocation28_spill] sm:$0xff] %v5226_v12  ;;  %v5228_v14 = vunpack.c.l.b16 %v3870_v51  ;;  %v5240_v23 = vunpack.c.l.b16 %v3882_v6  ;;  %v232_v51 = vsel %vm181_vm0, %v5103_v53, %v5243_v24  ;;  %v5279_v63 = vrot.slane %v5125_v1, 5 }
  0x62   :  { %7355 = vst [vmem:[#allocation34_spill] sm:$0xff] %v5238_v22  ;;  %7359 = vst [vmem:[#allocation38_spill] sm:$0xff] %v5252_v27  ;;  %v5261_v44 = vrot.slane %v5238_v22, 2  ;;  %v5284_v6 = vrot.slane %v5127_v2, 4  ;;  %v234_v0 = vsel %vm184_vm1, %v5273_v60, %v232_v51  ;;  %v5297_v1 = vrot.slane %v5226_v12, 1 }
  0x63   :  { %7350 = vst [vmem:[#allocation29_spill] sm:$0xff] %v5228_v14  ;;  %7356 = vst [vmem:[#allocation35_spill] sm:$0xff] %v5240_v23  ;;  %v5246_v25 = vrot.slane %v5228_v14, 7  ;;  %v5264_v47 = vrot.slane %v5240_v23, 1  ;;  %v236_v8 = vsel %vm187_vm3, %v5276_v62, %v234_v0 }
  0x64   :  { %7360 = vst [vmem:[#allocation39_spill] sm:$0xff] %v5255_v28  ;;  %7361 = vst [vmem:[#allocation40_spill] sm:$0xff] %v5258_v30 }
  0x65   :  { %7357 = vst [vmem:[#allocation36_spill] sm:$0xff] %v5246_v25  ;;  %7362 = vst [vmem:[#allocation41_spill] sm:$0xff] %v5261_v44  ;;  %v403_v59 = vsel %vm181_vm0, %v5246_v25, %v5226_v12  ;;  %v5290_v25 = vrot.slane %v5140_v9, 2  ;;  %v5307_v9 = vrot.slane %v5232_v17, 6 }
  0x66   :  { %7363 = vst [vmem:[#allocation42_spill] sm:$0xff] %v5264_v47  ;;  %v405_v5 = vsel %vm184_vm1, %v5249_v26, %v403_v59  ;;  %7365 = vst [vmem:[#allocation44_spill] sm:$0xff] %v5284_v6  ;;  %v5300_v59 = vrot.slane %v5230_v16, 7  ;;  %v433_v16 = vsel %vm181_vm0, %v5228_v14, %v5297_v1 }
  0x67   :  { %7367 = vst [vmem:[#allocation46_spill] sm:$0xff] %v5290_v25  ;;  %v407_v58 = vsel %vm187_vm3, %v5252_v27, %v405_v5  ;;  %7368 = vst [vmem:[#allocation47_spill] sm:$0xff] %v5297_v1  ;;  %v5310_v5 = vrot.slane %v5234_v18, 5  ;;  %v238_v27 = vsel %vm190_vm4, %v5279_v63, %v236_v8 }
  0x68   :  { %7369 = vst [vmem:[#allocation48_spill] sm:$0xff] %v5300_v59  ;;  %v409_v2 = vsel %vm190_vm4, %v5255_v28, %v407_v58  ;;  %7370 = vst [vmem:[#allocation49_spill] sm:$0xff] %v5307_v9  ;;  %v5320_v58 = vrot.slane %v5236_v21, 4  ;;  %v240_v18 = vsel %vm193_vm5, %v5284_v6, %v238_v27  ;;  %v435_v17 = vsel %vm184_vm1, %v5300_v59, %v433_v16 }
  0x69   :  { %7371 = vst [vmem:[#allocation50_spill] sm:$0xff] %v5310_v5  ;;  %v411_v51 = vsel %vm193_vm5, %v5258_v30, %v409_v2  ;;  %v5329_v2 = vrot.slane %v5238_v22, 3  ;;  %v242_v14 = vsel %vm196_vm6, %v5287_v57, %v240_v18  ;;  %v437_v21 = vsel %vm187_vm3, %v5307_v9, %v435_v17 }
  0x6a   :  { %7372 = vst [vmem:[#allocation51_spill] sm:$0xff] %v5320_v58  ;;  %v413_v0 = vsel %vm196_vm6, %v5261_v44, %v411_v51  ;;  %v5338_v51 = vrot.slane %v5240_v23, 2  ;;  %v244_v27 = vsel %vm199_vm7, %v5290_v25, %v242_v14  ;;  %v439_v16 = vsel %vm190_vm4, %v5310_v5, %v437_v21 }
  0x6b   :  { %7373 = vst [vmem:[#allocation52_spill] sm:$0xff] %v5329_v2  ;;  %v415_v8 = vsel %vm199_vm7, %v5264_v47, %v413_v0  ;;  %v3851_v22 = vcombine.low %v5066_v32, %v5066_v32  ;;  %v246_v0 = vpack.c.b16 %v244_v27, %v244_v27  ;;  %v441_v18 = vsel %vm193_vm5, %v5320_v58, %v439_v16 }
  0x6c   :  { %7374 = vst [vmem:[#allocation53_spill] sm:$0xff] %v5338_v51  ;;  %v417_v1 = vpack.c.b16 %v415_v8, %v415_v8  ;;  %v3853_v17 = vcombine.low %v5070_v34, %v5070_v34  ;;  %v3855_v23 = vcombine.low %v5074_v36, %v5074_v36  ;;  %v443_v14 = vsel %vm196_vm6, %v5329_v2, %v441_v18 }
  0x6d   :  { %v3857_v21 = vcombine.low %v5084_v42, %v5084_v42  ;;  %v3859_v32 = vcombine.low %v5086_v43, %v5086_v43  ;;  %v445_v27 = vsel %vm199_vm7, %v5338_v51, %v443_v14  ;;  %v3861_v16 = vcombine.low %v5095_v49, %v5095_v49 }
  0x6e   :  { %v1013_v8 = vrot.slane %v417_v1, 4  ;;  %v3863_v34 = vcombine.low %v5107_v55, %v5107_v55  ;;  %v3865_v36 = vcombine.low %v5109_v56, %v5109_v56  ;;  %v7375_v1 = vpack.c.b16 %v5203_v45, %v5203_v45 }
  0x6f   :  { %v447_v18 = vpack.c.b16 %v445_v27, %v445_v27  ;;  %v5370_v58 = vunpack.c.l.b16 %v3851_v22  ;;  %v5372_v43 = vunpack.c.l.b16 %v3853_v17  ;;  %v5374_v14 = vunpack.c.l.b16 %v3855_v23 }
  0x70   :  { %v1083_v42 = vsel %vm331_vm2, %v7375_v1, %v1013_v8  ;;  %v5376_v49 = vunpack.c.l.b16 %v3857_v21  ;;  %v5378_v5 = vunpack.c.l.b16 %v3859_v32  ;;  %v5380_v55 = vunpack.c.l.b16 %v3861_v16 }
  0x71   :  { %7376 = vst [vmem:[#allocation54_spill] sm:$0xff] %v5370_v58  ;;  %7377 = vst [vmem:[#allocation55_spill] sm:$0xff] %v5372_v43  ;;  %1756 = vmatprep.mubr.bf16.mxu0 %v1083_v42  ;;  %v1015_v56 = vrot.slane %v447_v18, 4  ;;  %v5382_v9 = vunpack.c.l.b16 %v3863_v34  ;;  %v5384_v45 = vunpack.c.l.b16 %v3865_v36  ;;  %v5387_v8 = vrot.slane %v5372_v43, 7 }
  0x72   :  { %7378 = vst [vmem:[#allocation56_spill] sm:$0xff] %v5374_v14  ;;  %7379 = vst [vmem:[#allocation57_spill] sm:$0xff] %v5376_v49  ;;  %v5390_v22 = vrot.slane %v5374_v14, 6  ;;  %v5393_v23 = vrot.slane %v5376_v49, 5  ;;  %v5396_v17 = vrot.slane %v5378_v5, 4  ;;  %v5399_v21 = vrot.slane %v5380_v55, 3 }
  0x73   :  { %7380 = vst [vmem:[#allocation58_spill] sm:$0xff] %v5378_v5  ;;  %7381 = vst [vmem:[#allocation59_spill] sm:$0xff] %v5380_v55  ;;  %v1091_v32 = vsel %vm331_vm2, %v246_v0, %v1015_v56  ;;  %v182_v27 = vsel %vm181_vm0, %v5387_v8, %v5370_v58  ;;  %v5406_v16 = vrot.slane %v5382_v9, 2  ;;  %v5409_v34 = vrot.slane %v5384_v45, 1 }
  0x74   :  { %7382 = vst [vmem:[#allocation60_spill] sm:$0xff] %v5382_v9  ;;  %7383 = vst [vmem:[#allocation61_spill] sm:$0xff] %v5384_v45  ;;  %1828 = vmatprep.mubr.bf16.mxu1 %v1091_v32  ;;  %v185_v36 = vsel %vm184_vm1, %v5390_v22, %v182_v27  ;;  %v3867_v1 = vcombine.low %v5177_v29, %v5177_v29  ;;  %v3869_v0 = vcombine.low %v5182_v31, %v5182_v31 }
  0x75   :  { %7384 = vst [vmem:[#allocation62_spill] sm:$0xff] %v5387_v8  ;;  %7385 = vst [vmem:[#allocation63_spill] sm:$0xff] %v5390_v22  ;;  %v3871_v42 = vcombine.low %v5185_v38, %v5185_v38  ;;  %v188_v18 = vsel %vm187_vm3, %v5393_v23, %v185_v36  ;;  %v3873_v56 = vcombine.low %v5188_v39, %v5188_v39  ;;  %v5485_v30 = vrot.slane %v5374_v14, 7 }
  0x76   :  { %7386 = vst [vmem:[#allocation64_spill] sm:$0xff] %v5393_v23  ;;  %7387 = vst [vmem:[#allocation65_spill] sm:$0xff] %v5396_v17  ;;  %v3875_v32 = vcombine.low %v5193_v50, %v5193_v50  ;;  %v3877_v27 = vcombine.low %v5196_v40, %v5196_v40  ;;  %v191_v29 = vsel %vm190_vm4, %v5396_v17, %v188_v18  ;;  %v5433_v51 = vunpack.c.l.b16 %v3867_v1 }
  0x77   :  { %7388 = vst [vmem:[#allocation66_spill] sm:$0xff] %v5399_v21  ;;  %7389 = vst [vmem:[#allocation67_spill] sm:$0xff] %v5406_v16  ;;  %v3879_v31 = vcombine.low %v5199_v41, %v5199_v41  ;;  %v3881_v38 = vcombine.low %v5206_v46, %v5206_v46  ;;  %v194_v39 = vsel %vm193_vm5, %v5399_v21, %v191_v29  ;;  %v5437_v36 = vunpack.c.l.b16 %v3869_v0 }
  0x78   :  { %7390 = vst [vmem:[#allocation68_spill] sm:$0xff] %v5409_v34  ;;  %7391 = vst [vmem:[#allocation69_spill] sm:$0xff] %v5433_v51  ;;  %v5439_v50 = vunpack.c.l.b16 %v3871_v42  ;;  %v5441_v2 = vunpack.c.l.b16 %v3873_v56  ;;  %v197_v40 = vsel %vm196_vm6, %v5406_v16, %v194_v39  ;;  %v5445_v18 = vunpack.c.l.b16 %v3875_v32 }
  0x79   :  { %7392 = vst [vmem:[#allocation70_spill] sm:$0xff] %v5437_v36  ;;  %v5447_v41 = vunpack.c.l.b16 %v3877_v27  ;;  %v5449_v59 = vunpack.c.l.b16 %v3879_v31  ;;  %v200_v46 = vsel %vm199_vm7, %v5409_v34, %v197_v40  ;;  %v5453_v1 = vunpack.c.l.b16 %v3881_v38  ;;  %7407 = vst [vmem:[#allocation85_spill] sm:$0xff] %v5485_v30 }
  0x7a   :  { %7393 = vst [vmem:[#allocation71_spill] sm:$0xff] %v5439_v50  ;;  %7394 = vst [vmem:[#allocation72_spill] sm:$0xff] %v5441_v2  ;;  %v5456_v0 = vrot.slane %v5437_v36, 7  ;;  %v5459_v42 = vrot.slane %v5439_v50, 6  ;;  %v215_v56 = vpack.c.b16 %v200_v46, %v200_v46  ;;  %v5462_v29 = vrot.slane %v5441_v2, 5 }
  0x7b   :  { %7395 = vst [vmem:[#allocation73_spill] sm:$0xff] %v5445_v18  ;;  %7396 = vst [vmem:[#allocation74_spill] sm:$0xff] %v5447_v41  ;;  %v5465_v32 = vrot.slane %v5445_v18, 4  ;;  %v5468_v27 = vrot.slane %v5447_v41, 3  ;;  %v5474_v38 = vrot.slane %v5449_v59, 2  ;;  %v5477_v39 = vrot.slane %v5453_v1, 1 }
  0x7c   :  { %7397 = vst [vmem:[#allocation75_spill] sm:$0xff] %v5449_v59  ;;  %7398 = vst [vmem:[#allocation76_spill] sm:$0xff] %v5453_v1  ;;  %v389_v31 = vsel %vm181_vm0, %v5456_v0, %v5433_v51  ;;  %v5480_v40 = vrot.slane %v5370_v58, 1  ;;  %v5488_v28 = vrot.slane %v5376_v49, 6  ;;  %v5499_v26 = vrot.slane %v5380_v55, 4 }
  0x7d   :  { %7399 = vst [vmem:[#allocation77_spill] sm:$0xff] %v5456_v0  ;;  %7400 = vst [vmem:[#allocation78_spill] sm:$0xff] %v5459_v42  ;;  %v391_v46 = vsel %vm184_vm1, %v5459_v42, %v389_v31  ;;  %v5491_v0 = vrot.slane %v5378_v5, 5  ;;  %v5502_v31 = vrot.slane %v5382_v9, 3  ;;  %v5509_v49 = vrot.slane %v5384_v45, 2 }
  0x7e   :  { %7401 = vst [vmem:[#allocation79_spill] sm:$0xff] %v5462_v29  ;;  %7402 = vst [vmem:[#allocation80_spill] sm:$0xff] %v5465_v32  ;;  %v393_v47 = vsel %vm187_vm3, %v5462_v29, %v391_v46  ;;  %v218_v44 = vsel %vm181_vm0, %v5372_v43, %v5480_v40  ;;  %v5512_v46 = vrot.slane %v5433_v51, 1  ;;  %v5519_v9 = vrot.slane %v5439_v50, 7 }
  0x7f   :  { %7403 = vst [vmem:[#allocation81_spill] sm:$0xff] %v5468_v27  ;;  %7404 = vst [vmem:[#allocation82_spill] sm:$0xff] %v5474_v38  ;;  %v395_v14 = vsel %vm190_vm4, %v5465_v32, %v393_v47  ;;  %v220_v5 = vsel %vm184_vm1, %v5485_v30, %v218_v44  ;;  %v5522_v47 = vrot.slane %v5441_v2, 6  ;;  %v4505_v30 = vld [vmem:[#allocation5 + $0x1e8] sm:$0xff]  }
  0x80   :  { %7405 = vst [vmem:[#allocation83_spill] sm:$0xff] %v5477_v39  ;;  %7406 = vst [vmem:[#allocation84_spill] sm:$0xff] %v5480_v40  ;;  %v397_v29 = vsel %vm193_vm5, %v5468_v27, %v395_v14  ;;  %v222_v55 = vsel %vm187_vm3, %v5488_v28, %v220_v5  ;;  %v419_v32 = vsel %vm181_vm0, %v5437_v36, %v5512_v46  ;;  %v5532_v14 = vrot.slane %v5445_v18, 5 }
  0x81   :  { %7408 = vst [vmem:[#allocation86_spill] sm:$0xff] %v5488_v28  ;;  %7409 = vst [vmem:[#allocation87_spill] sm:$0xff] %v5491_v0  ;;  %v399_v44 = vsel %vm196_vm6, %v5474_v38, %v397_v29  ;;  %v224_v45 = vsel %vm190_vm4, %v5491_v0, %v222_v55  ;;  %v421_v2 = vsel %vm184_vm1, %v5519_v9, %v419_v32  ;;  %v5541_v29 = vrot.slane %v5447_v41, 4  ;;  %v4507_v28 = vld [vmem:[#allocation5 + $0x160] sm:$0xff]  }
  0x82   :  { %7410 = vst [vmem:[#allocation88_spill] sm:$0xff] %v5499_v26  ;;  %7411 = vst [vmem:[#allocation89_spill] sm:$0xff] %v5502_v31  ;;  %v401_v5 = vsel %vm199_vm7, %v5477_v39, %v399_v44  ;;  %v226_v50 = vsel %vm193_vm5, %v5499_v26, %v224_v45  ;;  %v423_v18 = vsel %vm187_vm3, %v5522_v47, %v421_v2  ;;  %v5548_v36 = vrot.slane %v5449_v59, 3  ;;  %v4480_v44 = vld [vmem:[#allocation5 + $0x138] sm:$0xff]  }
  0x83   :  { %7412 = vst [vmem:[#allocation90_spill] sm:$0xff] %v5509_v49  ;;  %7413 = vst [vmem:[#allocation91_spill] sm:$0xff] %v5512_v46  ;;  %v416_v55 = vpack.c.b16 %v401_v5, %v401_v5  ;;  %v228_v27 = vsel %vm196_vm6, %v5502_v31, %v226_v50  ;;  %v425_v32 = vsel %vm190_vm4, %v5532_v14, %v423_v18  ;;  %v5555_v41 = vrot.slane %v5453_v1, 2  ;;  %v4483_v5 = vld [vmem:[#allocation5 + $0x170] sm:$0xff]  }
  0x84   :  { %7414 = vst [vmem:[#allocation92_spill] sm:$0xff] %v5519_v9  ;;  %7415 = vst [vmem:[#allocation93_spill] sm:$0xff] %v5522_v47  ;;  %v230_v45 = vsel %vm199_vm7, %v5509_v49, %v228_v27  ;;  %v3884_v50 = vcombine.high %v5068_v33, %v5068_v33  ;;  %v427_v2 = vsel %vm193_vm5, %v5541_v29, %v425_v32  ;;  %v4484_v32 = vld [vmem:[#allocation5 + $0x130] sm:$0xff]  }
  0x85   :  { %7416 = vst [vmem:[#allocation94_spill] sm:$0xff] %v5532_v14  ;;  %7417 = vst [vmem:[#allocation95_spill] sm:$0xff] %v5541_v29  ;;  %v1012_v9 = vrot.slane %v416_v55, 4  ;;  %v245_v46 = vpack.c.b16 %v230_v45, %v230_v45  ;;  %v3886_v59 = vcombine.high %v5072_v35, %v5072_v35  ;;  %v429_v27 = vsel %vm196_vm6, %v5548_v36, %v427_v2 }
  0x86   :  { %7418 = vst [vmem:[#allocation96_spill] sm:$0xff] %v5548_v36  ;;  %7419 = vst [vmem:[#allocation97_spill] sm:$0xff] %v5555_v41  ;;  %v3888_v18 = vcombine.high %v5076_v37, %v5076_v37  ;;  %v3890_v1 = vcombine.high %v5093_v48, %v5093_v48  ;;  %v3892_v14 = vcombine.high %v5105_v54, %v5105_v54  ;;  %v4482_v36 = vld [vmem:[#allocation5 + $0x1b8] sm:$0xff]   ;;  %v5580_v38 = vunpack.c.l.b16 %v3884_v50 }
  0x87   :  { %v1079_v55 = vsel %vm331_vm2, %v215_v56, %v1012_v9  ;;  %v431_v45 = vsel %vm199_vm7, %v5555_v41, %v429_v27  ;;  %v3894_v29 = vcombine.high %v5117_v61, %v5117_v61  ;;  %v3896_v2 = vcombine.high %v5136_v7, %v5136_v7  ;;  %v4503_v9 = vld [vmem:[#allocation5 + $0x168] sm:$0xff]  }
  0x88   :  { %1757 = vmatmul.mubr.bf16.vlgmr.msra.gmra.mxu0 %v1079_v55  ;;  %v446_v47 = vpack.c.b16 %v431_v45, %v431_v45  ;;  %v3898_v39 = vcombine.high %v5148_v13, %v5148_v13  ;;  %7420 = vst [vmem:[#allocation98_spill] sm:$0xff] %v5580_v38  ;;  %v5582_v42 = vunpack.c.l.b16 %v3886_v59  ;;  %v5584_v56 = vunpack.c.l.b16 %v3888_v18  ;;  %v4493_v55 = vld [vmem:[#allocation5 + $0x1f0] sm:$0xff]  }
  0x89   :  { %4275 = vmatpush3.bf16.msra.mxu0 %v4480_v44  ;;  %v5586_v27 = vunpack.c.l.b16 %v3890_v1  ;;  %v5588_v41 = vunpack.c.l.b16 %v3892_v14  ;;  %v5590_v51 = vunpack.c.l.b16 %v3894_v29  ;;  %v5592_v26 = vunpack.c.l.b16 %v3896_v2  ;;  %v4502_v2 = vld [vmem:[#allocation5 + $0x1b0] sm:$0xff]  }
  0x8a   :  { %7421 = vst [vmem:[#allocation99_spill] sm:$0xff] %v5582_v42  ;;  %7422 = vst [vmem:[#allocation100_spill] sm:$0xff] %v5584_v56  ;;  %v1014_v45 = vrot.slane %v446_v47, 4  ;;  %4276 = vmatprep.subr.bf16.mxu0 %v4483_v5  ;;  %v5594_v0 = vunpack.c.l.b16 %v3898_v39  ;;  %v5597_v59 = vrot.slane %v5582_v42, 7  ;;  %v5600_v44 = vrot.slane %v5584_v56, 6  ;;  %v4504_v47 = vld [vmem:[#allocation5 + $0x128] sm:$0xff]  }
  0x8b   :  { %7423 = vst [vmem:[#allocation101_spill] sm:$0xff] %v5586_v27  ;;  %7424 = vst [vmem:[#allocation102_spill] sm:$0xff] %v5588_v41  ;;  %v5603_v1 = vrot.slane %v5586_v27, 5  ;;  %v5606_v14 = vrot.slane %v5588_v41, 4  ;;  %v5609_v29 = vrot.slane %v5590_v51, 3  ;;  %v5616_v50 = vrot.slane %v5592_v26, 2 }
  0x8c   :  { %7425 = vst [vmem:[#allocation103_spill] sm:$0xff] %v5590_v51  ;;  %7426 = vst [vmem:[#allocation104_spill] sm:$0xff] %v5592_v26  ;;  %v1087_v5 = vsel %vm331_vm2, %v245_v46, %v1014_v45  ;;  %v571_v39 = vsel %vm181_vm0, %v5597_v59, %v5580_v38  ;;  %v5619_v18 = vrot.slane %v5594_v0, 1  ;;  %v681_v46 = vsel %vm187_vm3, %v5130_v3, %v5101_v52 }
  0x8d   :  { %7427 = vst [vmem:[#allocation105_spill] sm:$0xff] %v5594_v0  ;;  %7428 = vst [vmem:[#allocation106_spill] sm:$0xff] %v5597_v59  ;;  %1829 = vmatmul.mubr.bf16.vlgmr.msra.gmra.mxu1 %v1087_v5  ;;  %4277 = vmatpush3.bf16.msra.mxu0 %v4484_v32  ;;  %v573_v12 = vsel %vm184_vm1, %v5600_v44, %v571_v39  ;;  %v687_v45 = vsel %vm181_vm0, %v5164_v20, %v5161_v19  ;;  %v5630_v59 = vrot.slane %v5580_v38, 1 }
  0x8e   :  { %7429 = vst [vmem:[#allocation107_spill] sm:$0xff] %v5600_v44  ;;  %7430 = vst [vmem:[#allocation108_spill] sm:$0xff] %v5603_v1  ;;  %4321 = vmatpush3.bf16.msra.mxu1 %v4482_v36  ;;  %v575_v5 = vsel %vm187_vm3, %v5603_v1, %v573_v12  ;;  %v682_v32 = vsel %vm190_vm4, %v5133_v4, %v681_v46  ;;  %v5637_v39 = vrot.slane %v5584_v56, 7  ;;  %v5640_v3 = vrot.slane %v5586_v27, 6  ;;  %v4508_v46 = vld [vmem:[#allocation5 + $0x120] sm:$0xff]   ;;  %v4506_v27 = vld [vmem:[#allocation5 + $0x1a8] sm:$0xff]  }
  0x8f   :  { %7431 = vst [vmem:[#allocation109_spill] sm:$0xff] %v5606_v14  ;;  %7432 = vst [vmem:[#allocation110_spill] sm:$0xff] %v5616_v50  ;;  %4278 = vmatprep.subr.bf16.mxu0 %v4503_v9  ;;  %v577_v20 = vsel %vm190_vm4, %v5606_v14, %v575_v5  ;;  %v683_v19 = vsel %vm193_vm5, %v5143_v10, %v682_v32  ;;  %v601_v12 = vsel %vm181_vm0, %v5582_v42, %v5630_v59 }
  0x90   :  { %7433 = vst [vmem:[#allocation111_spill] sm:$0xff] %v5619_v18  ;;  %7434 = vst [vmem:[#allocation112_spill] sm:$0xff] %v5637_v39  ;;  %v5650_v36 = vrot.slane %v5588_v41, 5  ;;  %4322 = vmatprep.subr.bf16.mxu1 %v4493_v55  ;;  %v579_v56 = vsel %vm193_vm5, %v5609_v29, %v577_v20  ;;  %v684_v9 = vsel %vm196_vm6, %v5146_v11, %v683_v19  ;;  %v5659_v32 = vrot.slane %v5590_v51, 4 }
  0x91   :  { %7435 = vst [vmem:[#allocation113_spill] sm:$0xff] %v5640_v3  ;;  %v603_v5 = vsel %vm184_vm1, %v5637_v39, %v601_v12  ;;  %v581_v10 = vsel %vm196_vm6, %v5616_v50, %v579_v56  ;;  %v685_v55 = vsel %vm199_vm7, %v5154_v15, %v684_v9  ;;  %v5668_v20 = vrot.slane %v5592_v26, 3  ;;  %4279 = vmatpush3.bf16.msra.mxu0 %v4504_v47  ;;  %v4509_v56 = vld [vmem:[#allocation5 + $0x1e0] sm:$0xff]   ;;  %v4511_v9 = vld [vmem:[#allocation5 + $0x158] sm:$0xff]  }
  0x92   :  { %7436 = vst [vmem:[#allocation114_spill] sm:$0xff] %v5650_v36  ;;  %7437 = vst [vmem:[#allocation115_spill] sm:$0xff] %v5659_v32  ;;  %v605_v41 = vsel %vm187_vm3, %v5640_v3, %v603_v5  ;;  %v583_v19 = vsel %vm199_vm7, %v5619_v18, %v581_v10  ;;  %v689_v12 = vpack.c.b16 %v687_v45, %v685_v55  ;;  %v5675_v11 = vrot.slane %v5594_v0, 2  ;;  %v4510_v55 = vld [vmem:[#allocation5 + $0x1a0] sm:$0xff]  }
  0x93   :  { %7438 = vst [vmem:[#allocation116_spill] sm:$0xff] %v5668_v20  ;;  %v607_v51 = vsel %vm190_vm4, %v5650_v36, %v605_v41  ;;  %4323 = vmatpush3.bf16.msra.mxu1 %v4502_v2  ;;  %4280 = vmatprep.subr.bf16.mxu0 %v4507_v28  ;;  %v585_v15 = vpack.c.b16 %v583_v19, %v583_v19  ;;  %v4512_v41 = vld [vmem:[#allocation5 + $0x118] sm:$0xff]   ;;  %v4515_v19 = vld [vmem:[#allocation5 + $0x150] sm:$0xff]  }
  0x94   :  { %7439 = vst [vmem:[#allocation117_spill] sm:$0xff] %v5675_v11  ;;  %v609_v5 = vsel %vm193_vm5, %v5659_v32, %v607_v51  ;;  %v695_v47 = vsel %vm187_vm3, %v5103_v53, %v5243_v24  ;;  %v701_v10 = vsel %vm181_vm0, %v5290_v25, %v5287_v57  ;;  %4324 = vmatprep.subr.bf16.mxu1 %v4505_v30  ;;  %v1021_v45 = vrot.slane %v689_v12, 5  ;;  %v4521_v57 = vld [vmem:[#allocation5 + $0x1c8] sm:$0xff]  }
  0x95   :  { %v611_v28 = vsel %vm196_vm6, %v5668_v20, %v609_v5  ;;  %v696_v2 = vsel %vm190_vm4, %v5273_v60, %v695_v47  ;;  %v3883_v51 = vcombine.low %v5068_v33, %v5068_v33  ;;  %v3885_v30 = vcombine.low %v5072_v35, %v5072_v35  ;;  %4281 = vmatpush3.bf16.msra.mxu0 %v4508_v46  ;;  %v4513_v5 = vld [vmem:[#allocation5 + $0x1d8] sm:$0xff]  }
  0x96   :  { %v613_v0 = vsel %vm199_vm7, %v5675_v11, %v611_v28  ;;  %v697_v26 = vsel %vm193_vm5, %v5276_v62, %v696_v2  ;;  %v3887_v12 = vcombine.low %v5076_v37, %v5076_v37  ;;  %v1115_v47 = vsel %vm331_vm2, %v585_v15, %v1021_v45  ;;  %4282 = vmatprep.subr.bf16.mxu0 %v4511_v9  ;;  %v4514_v45 = vld [vmem:[#allocation5 + $0x198] sm:$0xff]  }
  0x97   :  { %v615_v25 = vpack.c.b16 %v613_v0, %v613_v0  ;;  %v698_v33 = vsel %vm196_vm6, %v5279_v63, %v697_v26  ;;  %v3889_v28 = vcombine.low %v5093_v48, %v5093_v48  ;;  %4325 = vmatpush3.bf16.msra.mxu1 %v4506_v27  ;;  %1764 = vmatprep.mubr.bf16.mxu0 %v1115_v47  ;;  %v4516_v0 = vld [vmem:[#allocation5 + $0x110] sm:$0xff]   ;;  %v5714_v48 = vunpack.c.l.b16 %v3883_v51  ;;  %v4519_v47 = vld [vmem:[#allocation5 + $0x148] sm:$0xff]  }
  0x98   :  { %v699_v2 = vsel %vm199_vm7, %v5284_v6, %v698_v33  ;;  %v3891_v35 = vcombine.low %v5105_v54, %v5105_v54  ;;  %v3893_v37 = vcombine.low %v5117_v61, %v5117_v61  ;;  %v3895_v15 = vcombine.low %v5136_v7, %v5136_v7  ;;  %4326 = vmatprep.subr.bf16.mxu1 %v4509_v56  ;;  %v7468_v6 = vld [vmem:[#allocation106_spill] sm:$0xff] }
  0x99   :  { %v703_v46 = vpack.c.b16 %v701_v10, %v699_v2  ;;  %v3897_v26 = vcombine.low %v5148_v13, %v5148_v13  ;;  %7440 = vst [vmem:[#allocation118_spill] sm:$0xff] %v5714_v48  ;;  %v5716_v27 = vunpack.c.l.b16 %v3885_v30  ;;  %v5718_v54 = vunpack.c.l.b16 %v3887_v12  ;;  %4283 = vmatpush3.bf16.msra.mxu0 %v4512_v41  ;;  %v4517_v10 = vld [vmem:[#allocation5 + $0x1d0] sm:$0xff]  }
  0x9a   :  { %v5720_v33 = vunpack.c.l.b16 %v3889_v28  ;;  %v5722_v61 = vunpack.c.l.b16 %v3891_v35  ;;  %v5724_v7 = vunpack.c.l.b16 %v3893_v37  ;;  %v5726_v13 = vunpack.c.l.b16 %v3895_v15  ;;  %4284 = vmatprep.subr.bf16.mxu0 %v4515_v19  ;;  %v4520_v28 = vld [vmem:[#allocation5 + $0x108] sm:$0xff]   ;;  %v4518_v15 = vld [vmem:[#allocation5 + $0x190] sm:$0xff]  }
  0x9b   :  { %7441 = vst [vmem:[#allocation119_spill] sm:$0xff] %v5718_v54  ;;  %v1023_v2 = vrot.slane %v703_v46, 5  ;;  %v5728_v51 = vunpack.c.l.b16 %v3897_v26  ;;  %v5731_v56 = vrot.slane %v5716_v27, 7  ;;  %4327 = vmatpush3.bf16.msra.mxu1 %v4510_v55  ;;  %v5734_v9 = vrot.slane %v5718_v54, 6  ;;  %v4523_v46 = vld [vmem:[#allocation5 + $0x140] sm:$0xff]  }
  0x9c   :  { %7442 = vst [vmem:[#allocation120_spill] sm:$0xff] %v5720_v33  ;;  %7443 = vst [vmem:[#allocation121_spill] sm:$0xff] %v5722_v61  ;;  %v5737_v30 = vrot.slane %v5720_v33, 5  ;;  %v5740_v12 = vrot.slane %v5722_v61, 4  ;;  %v5743_v41 = vrot.slane %v5724_v7, 3  ;;  %4328 = vmatprep.subr.bf16.mxu1 %v4513_v5  ;;  %v5750_v19 = vrot.slane %v5726_v13, 2 }
  0x9d   :  { %7444 = vst [vmem:[#allocation122_spill] sm:$0xff] %v5724_v7  ;;  %7445 = vst [vmem:[#allocation123_spill] sm:$0xff] %v5726_v13  ;;  %v1123_v35 = vsel %vm331_vm2, %v615_v25, %v1023_v2  ;;  %v557_v55 = vsel %vm181_vm0, %v5731_v56, %v5714_v48  ;;  %v5753_v37 = vrot.slane %v5728_v51, 1  ;;  %v676_v25 = vsel %vm187_vm3, %v5387_v8, %v5370_v58 }
  0x9e   :  { %7446 = vst [vmem:[#allocation124_spill] sm:$0xff] %v5728_v51  ;;  %7447 = vst [vmem:[#allocation125_spill] sm:$0xff] %v5731_v56  ;;  %1836 = vmatprep.mubr.bf16.mxu1 %v1123_v35  ;;  %v559_v26 = vsel %vm184_vm1, %v5734_v9, %v557_v55  ;;  %v686_v5 = vsel %vm181_vm0, %v5409_v34, %v5406_v16  ;;  %v5764_v2 = vrot.slane %v5714_v48, 1  ;;  %4285 = vmatpush3.bf16.msra.mxu0 %v4516_v0 }
  0x9f   :  { %7448 = vst [vmem:[#allocation126_spill] sm:$0xff] %v5734_v9  ;;  %7449 = vst [vmem:[#allocation127_spill] sm:$0xff] %v5737_v30  ;;  %v561_v62 = vsel %vm187_vm3, %v5737_v30, %v559_v26  ;;  %v677_v35 = vsel %vm190_vm4, %v5390_v22, %v676_v25  ;;  %v5771_v55 = vrot.slane %v5718_v54, 7  ;;  %v5774_v8 = vrot.slane %v5720_v33, 6  ;;  %4329 = vmatpush3.bf16.msra.mxu1 %v4514_v45  ;;  %v4524_v54 = vld [vmem:[#allocation5 + $0x100] sm:$0xff]   ;;  %v7465_v22 = vld [vmem:[#allocation38_spill] sm:$0xff] }
  0xa0   :  { %7450 = vst [vmem:[#allocation128_spill] sm:$0xff] %v5740_v12  ;;  %7451 = vst [vmem:[#allocation129_spill] sm:$0xff] %v5750_v19  ;;  %4286 = vmatprep.subr.bf16.mxu0 %v4519_v47  ;;  %v563_v34 = vsel %vm190_vm4, %v5740_v12, %v561_v62  ;;  %v678_v0 = vsel %vm193_vm5, %v5393_v23, %v677_v35  ;;  %v587_v26 = vsel %vm181_vm0, %v5716_v27, %v5764_v2  ;;  %v4522_v35 = vld [vmem:[#allocation5 + $0x188] sm:$0xff]  }
  0xa1   :  { %7452 = vst [vmem:[#allocation130_spill] sm:$0xff] %v5753_v37  ;;  %7453 = vst [vmem:[#allocation131_spill] sm:$0xff] %v5771_v55  ;;  %v5784_v25 = vrot.slane %v5722_v61, 5  ;;  %4330 = vmatprep.subr.bf16.mxu1 %v4517_v10  ;;  %v565_v33 = vsel %vm193_vm5, %v5743_v41, %v563_v34  ;;  %v679_v45 = vsel %vm196_vm6, %v5396_v17, %v678_v0  ;;  %v5793_v47 = vrot.slane %v5724_v7, 4 }
  0xa2   :  { %7454 = vst [vmem:[#allocation132_spill] sm:$0xff] %v5774_v8  ;;  %v589_v62 = vsel %vm184_vm1, %v5771_v55, %v587_v26  ;;  %v567_v16 = vsel %vm196_vm6, %v5750_v19, %v565_v33  ;;  %v680_v10 = vsel %vm199_vm7, %v5399_v21, %v679_v45  ;;  %v5802_v34 = vrot.slane %v5726_v13, 3  ;;  %4287 = vmatpush3.bf16.msra.mxu0 %v4520_v28  ;;  %v4525_v33 = vld [vmem:[#allocation5 + $0x1c0] sm:$0xff]  }
  0xa3   :  { %v591_v61 = vsel %vm187_vm3, %v5774_v8, %v589_v62  ;;  %v569_v0 = vsel %vm199_vm7, %v5753_v37, %v567_v16  ;;  %v688_v26 = vpack.c.b16 %v686_v5, %v680_v10  ;;  %v5809_v23 = vrot.slane %v5728_v51, 2  ;;  %4331 = vmatpush3.bf16.msra.mxu1 %v4518_v15  ;;  %4288 = vmatprep.subr.bf16.mxu0 %v4523_v46  ;;  %v7457_v15 = vld [vmem:[#allocation85_spill] sm:$0xff]  ;;  %v7458_v10 = vld [vmem:[#allocation28_spill] sm:$0xff]  ;;  %v4526_v51 = vld [vmem:[#allocation5 + $0x180] sm:$0xff]  }
  0xa4   :  { %7455 = vst [vmem:[#allocation133_spill] sm:$0xff] %v5802_v34  ;;  %v593_v7 = vsel %vm190_vm4, %v5784_v25, %v591_v61  ;;  %v584_v45 = vpack.c.b16 %v569_v0, %v569_v0  ;;  %v690_v28 = vsel %vm187_vm3, %v5372_v43, %v5480_v40  ;;  %v700_v16 = vsel %vm181_vm0, %v5509_v49, %v5502_v31  ;;  %v7459_v0 = vld [vmem:[#allocation36_spill] sm:$0xff]  ;;  %v7460_v43 = vld [vmem:[#allocation86_spill] sm:$0xff]  ;;  %v7461_v49 = vld [vmem:[#allocation37_spill] sm:$0xff] }
  0xa5   :  { %7456 = vst [vmem:[#allocation134_spill] sm:$0xff] %v5809_v23  ;;  %v595_v62 = vsel %vm193_vm5, %v5793_v47, %v593_v7  ;;  %4332 = vmatprep.subr.bf16.mxu1 %v4521_v57  ;;  %v1020_v61 = vrot.slane %v688_v26, 5  ;;  %v691_v46 = vsel %vm190_vm4, %v7457_v15, %v690_v28  ;;  %v737_v7 = vsel %vm187_vm3, %v7459_v0, %v7458_v10  ;;  %v7462_v26 = vld [vmem:[#allocation41_spill] sm:$0xff]  ;;  %v7463_v31 = vld [vmem:[#allocation42_spill] sm:$0xff]  ;;  %v7464_v21 = vld [vmem:[#allocation87_spill] sm:$0xff] }
  0xa6   :  { %v597_v5 = vsel %vm196_vm6, %v5802_v34, %v595_v62  ;;  %v692_v40 = vsel %vm193_vm5, %v7460_v43, %v691_v46  ;;  %v738_v57 = vsel %vm190_vm4, %v7461_v49, %v737_v7  ;;  %v743_v62 = vsel %vm181_vm0, %v7463_v31, %v7462_v26  ;;  %4289 = vmatpush3.bf16.msra.mxu0 %v4524_v54  ;;  %v7466_v46 = vld [vmem:[#allocation88_spill] sm:$0xff]  ;;  %v7467_v7 = vld [vmem:[#allocation39_spill] sm:$0xff] }
  0xa7   :  { %v599_v13 = vsel %vm199_vm7, %v5809_v23, %v597_v5  ;;  %v1111_v28 = vsel %vm331_vm2, %v584_v45, %v1020_v61  ;;  %v693_v17 = vsel %vm196_vm6, %v7464_v21, %v692_v40  ;;  %v739_v5 = vsel %vm193_vm5, %v7465_v22, %v738_v57  ;;  %4333 = vmatpush3.bf16.msra.mxu1 %v4522_v35  ;;  %v7469_v45 = vld [vmem:[#allocation40_spill] sm:$0xff]  ;;  %v7470_v57 = vld [vmem:[#allocation47_spill] sm:$0xff] }
  0xa8   :  { %v614_v15 = vpack.c.b16 %v599_v13, %v599_v13  ;;  %1765 = vmatmul.mubr.bf16.gmra.mxu0 %v1111_v28  ;;  %v694_v43 = vsel %vm199_vm7, %v7466_v46, %v693_v17  ;;  %v740_v58 = vsel %vm196_vm6, %v7467_v7, %v739_v5  ;;  %v793_v54 = vsel %vm187_vm3, %v7468_v6, %v5580_v38  ;;  %v7471_v17 = vld [vmem:[#allocation29_spill] sm:$0xff]  ;;  %v7472_v38 = vld [vmem:[#allocation48_spill] sm:$0xff] }
  0xa9   :  { %v799_v13 = vsel %vm181_vm0, %v5619_v18, %v5616_v50  ;;  %v702_v40 = vpack.c.b16 %v700_v16, %v694_v43  ;;  %v741_v61 = vsel %vm199_vm7, %v7469_v45, %v740_v58  ;;  %v794_v35 = vsel %vm190_vm4, %v5600_v44, %v793_v54  ;;  %4334 = vmatprep.subr.bf16.mxu1 %v4525_v33  ;;  %v7473_v18 = vld [vmem:[#allocation52_spill] sm:$0xff]  ;;  %v7474_v43 = vld [vmem:[#allocation53_spill] sm:$0xff] }
  0xaa   :  { %v751_v28 = vsel %vm187_vm3, %v7471_v17, %v7470_v57  ;;  %v745_v5 = vpack.c.b16 %v743_v62, %v741_v61  ;;  %v795_v6 = vsel %vm193_vm5, %v5603_v1, %v794_v35  ;;  %v757_v16 = vsel %vm181_vm0, %v7474_v43, %v7473_v18  ;;  %v7475_v50 = vld [vmem:[#allocation49_spill] sm:$0xff]  ;;  %v7476_v35 = vld [vmem:[#allocation50_spill] sm:$0xff] }
  0xab   :  { %v752_v46 = vsel %vm190_vm4, %v7472_v38, %v751_v28  ;;  %v1022_v58 = vrot.slane %v702_v40, 5  ;;  %v796_v54 = vsel %vm196_vm6, %v5606_v14, %v795_v6  ;;  %v807_v33 = vsel %vm187_vm3, %v5582_v42, %v5630_v59  ;;  %4335 = vmatpush3.bf16.msra.mxu1 %v4526_v51  ;;  %v7477_v14 = vld [vmem:[#allocation51_spill] sm:$0xff] }
  0xac   :  { %v753_v44 = vsel %vm193_vm5, %v7475_v50, %v752_v46  ;;  %v797_v62 = vsel %vm199_vm7, %v5609_v29, %v796_v54  ;;  %v1029_v61 = vrot.slane %v745_v5, 1  ;;  %v808_v40 = vsel %vm190_vm4, %v5637_v39, %v807_v33  ;;  %v7478_v54 = vld [vmem:[#allocation69_spill] sm:$0xff] }
  0xad   :  { %v754_v28 = vsel %vm196_vm6, %v7476_v35, %v753_v44  ;;  %v1119_v6 = vsel %vm331_vm2, %v614_v15, %v1022_v58  ;;  %v801_v1 = vpack.c.b16 %v799_v13, %v797_v62  ;;  %v809_v42 = vsel %vm193_vm5, %v5640_v3, %v808_v40  ;;  %v7479_v33 = vld [vmem:[#allocation77_spill] sm:$0xff]  ;;  %v7480_v62 = vld [vmem:[#allocation78_spill] sm:$0xff]  ;;  %v7483_v3 = vld [vmem:[#allocation79_spill] sm:$0xff] }
  0xae   :  { %v755_v46 = vsel %vm199_vm7, %v7477_v14, %v754_v28  ;;  %1837 = vmatmul.mubr.bf16.gmra.mxu1 %v1119_v6  ;;  %v810_v5 = vsel %vm196_vm6, %v5650_v36, %v809_v42  ;;  %v813_v44 = vsel %vm181_vm0, %v5675_v11, %v5668_v20  ;;  %v732_v15 = vsel %vm187_vm3, %v7479_v33, %v7478_v54  ;;  %v7481_v40 = vld [vmem:[#allocation82_spill] sm:$0xff]  ;;  %v7484_v36 = vld [vmem:[#allocation80_spill] sm:$0xff] }
  0xaf   :  { %v759_v51 = vpack.c.b16 %v757_v16, %v755_v46  ;;  %v1037_v13 = vrot.slane %v801_v1, 5  ;;  %v811_v58 = vsel %vm199_vm7, %v5659_v32, %v810_v5  ;;  %v733_v28 = vsel %vm190_vm4, %v7480_v62, %v732_v15  ;;  %v7482_v16 = vld [vmem:[#allocation83_spill] sm:$0xff] }
  0xb0   :  { %v742_v6 = vsel %vm181_vm0, %v7482_v16, %v7481_v40  ;;  %v815_v42 = vpack.c.b16 %v813_v44, %v811_v58  ;;  %v734_v11 = vsel %vm193_vm5, %v7483_v3, %v733_v28  ;;  %v788_v20 = vsel %vm187_vm3, %v5731_v56, %v5714_v48  ;;  %v7485_v58 = vld [vmem:[#allocation81_spill] sm:$0xff]  ;;  %v7486_v48 = vld [vmem:[#allocation91_spill] sm:$0xff] }
  0xb1   :  { %v1031_v46 = vrot.slane %v759_v51, 1  ;;  %v1147_v1 = vsel %vm331_vm2, %v1029_v61, %v1037_v13  ;;  %v735_v5 = vsel %vm196_vm6, %v7484_v36, %v734_v11  ;;  %v789_v15 = vsel %vm190_vm4, %v5734_v9, %v788_v20  ;;  %v7487_v61 = vld [vmem:[#allocation70_spill] sm:$0xff]  ;;  %v7488_v9 = vld [vmem:[#allocation92_spill] sm:$0xff] }
  0xb2   :  { %v798_v44 = vsel %vm181_vm0, %v5753_v37, %v5750_v19  ;;  %1772 = vmatprep.mubr.bf16.mxu0 %v1147_v1  ;;  %v1039_v51 = vrot.slane %v815_v42, 5  ;;  %v736_v28 = vsel %vm199_vm7, %v7485_v58, %v735_v5  ;;  %v790_v56 = vsel %vm193_vm5, %v5737_v30, %v789_v15  ;;  %v7489_v37 = vld [vmem:[#allocation96_spill] sm:$0xff]  ;;  %v7490_v1 = vld [vmem:[#allocation97_spill] sm:$0xff] }
  0xb3   :  { %v746_v13 = vsel %vm187_vm3, %v7487_v61, %v7486_v48  ;;  %v744_v11 = vpack.c.b16 %v742_v6, %v736_v28  ;;  %v791_v20 = vsel %vm196_vm6, %v5740_v12, %v790_v56  ;;  %v756_v42 = vsel %vm181_vm0, %v7490_v1, %v7489_v37  ;;  %v7491_v19 = vld [vmem:[#allocation93_spill] sm:$0xff] }
  0xb4   :  { %v747_v32 = vsel %vm190_vm4, %v7488_v9, %v746_v13  ;;  %v1155_v5 = vsel %vm331_vm2, %v1031_v46, %v1039_v51  ;;  %v792_v15 = vsel %vm199_vm7, %v5743_v41, %v791_v20  ;;  %v802_v6 = vsel %vm187_vm3, %v5716_v27, %v5764_v2  ;;  %v7492_v13 = vld [vmem:[#allocation94_spill] sm:$0xff]  ;;  %v7493_v46 = vld [vmem:[#allocation95_spill] sm:$0xff] }
  0xb5   :  { %v748_v30 = vsel %vm193_vm5, %v7491_v19, %v747_v32  ;;  %1844 = vmatprep.mubr.bf16.mxu1 %v1155_v5  ;;  %v800_v56 = vpack.c.b16 %v798_v44, %v792_v15  ;;  %v1028_v28 = vrot.slane %v744_v11, 1  ;;  %v803_v39 = vsel %vm190_vm4, %v5771_v55, %v802_v6  ;;  %v7494_v5 = vld [vmem:[#allocation20_spill] sm:$0xff] }
  0xb6   :  { %v749_v12 = vsel %vm196_vm6, %v7492_v13, %v748_v30  ;;  %v804_v20 = vsel %vm193_vm5, %v5774_v8, %v803_v39  ;;  %v812_v32 = vsel %vm181_vm0, %v5809_v23, %v5802_v34  ;;  %v847_v44 = vsel %vm193_vm5, %v7494_v5, %v5101_v52  ;;  %v7495_v39 = vld [vmem:[#allocation23_spill] sm:$0xff]  ;;  %v7496_v55 = vld [vmem:[#allocation24_spill] sm:$0xff]  ;;  %v7497_v23 = vld [vmem:[#allocation25_spill] sm:$0xff] }
  0xb7   :  { %v750_v51 = vsel %vm199_vm7, %v7493_v46, %v749_v12  ;;  %v1036_v11 = vrot.slane %v800_v56, 5  ;;  %v805_v30 = vsel %vm196_vm6, %v5784_v25, %v804_v20  ;;  %v848_v6 = vsel %vm196_vm6, %v5133_v4, %v847_v44  ;;  %v7498_v5 = vld [vmem:[#allocation26_spill] sm:$0xff]  ;;  %v7499_v44 = vld [vmem:[#allocation27_spill] sm:$0xff] }
  0xb8   :  { %v758_v15 = vpack.c.b16 %v756_v42, %v750_v51  ;;  %v806_v12 = vsel %vm199_vm7, %v5793_v47, %v805_v30  ;;  %v849_v8 = vsel %vm199_vm7, %v7495_v39, %v848_v6  ;;  %v853_v34 = vsel %vm181_vm0, %v7497_v23, %v7496_v55 }
  0xb9   :  { %v903_v42 = vsel %vm193_vm5, %v7459_v0, %v7458_v10  ;;  %v1143_v56 = vsel %vm331_vm2, %v1028_v28, %v1036_v11  ;;  %v814_v51 = vpack.c.b16 %v812_v32, %v806_v12  ;;  %v854_v4 = vsel %vm184_vm1, %v7498_v5, %v853_v34  ;;  %v7501_v12 = vld [vmem:[#allocation43_spill] sm:$0xff] }
  0xba   :  { %v1030_v20 = vrot.slane %v758_v15, 1  ;;  %1773 = vmatmul.mubr.bf16.gmra.mxu0 %v1143_v56  ;;  %v855_v30 = vsel %vm187_vm3, %v7499_v44, %v854_v4  ;;  %v904_v6 = vsel %vm196_vm6, %v7461_v49, %v903_v42  ;;  %v909_v23 = vsel %vm181_vm0, %v7469_v45, %v7467_v7  ;;  %v7500_v7 = vld [vmem:[#allocation44_spill] sm:$0xff]  ;;  %v7503_v42 = vld [vmem:[#allocation54_spill] sm:$0xff] }
  0xbb   :  { %v861_v55 = vsel %vm193_vm5, %v5103_v53, %v5243_v24  ;;  %v1038_v0 = vrot.slane %v814_v51, 5  ;;  %v857_v28 = vpack.c.b16 %v855_v30, %v849_v8  ;;  %v905_v34 = vsel %vm199_vm7, %v7465_v22, %v904_v6  ;;  %v7506_v6 = vld [vmem:[#allocation63_spill] sm:$0xff] }
  0xbc   :  { %v910_v32 = vsel %vm184_vm1, %v7462_v26, %v909_v23  ;;  %v862_v49 = vsel %vm196_vm6, %v5273_v60, %v861_v55  ;;  %v867_v45 = vsel %vm181_vm0, %v7500_v7, %v5279_v63  ;;  %v917_v24 = vsel %vm193_vm5, %v7471_v17, %v7470_v57  ;;  %v7504_v57 = vld [vmem:[#allocation62_spill] sm:$0xff] }
  0xbd   :  { %v911_v11 = vsel %vm187_vm3, %v7463_v31, %v910_v32  ;;  %v1151_v8 = vsel %vm331_vm2, %v1030_v20, %v1038_v0  ;;  %v1045_v15 = vrot.slane %v857_v28, 2  ;;  %v863_v26 = vsel %vm199_vm7, %v7501_v12, %v862_v49  ;;  %v7502_v31 = vld [vmem:[#allocation45_spill] sm:$0xff]  ;;  %v7505_v20 = vld [vmem:[#allocation46_spill] sm:$0xff]  ;;  %v7510_v32 = vld [vmem:[#allocation67_spill] sm:$0xff] }
  0xbe   :  { %v913_v22 = vpack.c.b16 %v911_v11, %v905_v34  ;;  %1845 = vmatmul.mubr.bf16.gmra.mxu1 %v1151_v8  ;;  %v868_v39 = vsel %vm184_vm1, %v7502_v31, %v867_v45  ;;  %v918_v60 = vsel %vm196_vm6, %v7472_v38, %v917_v24  ;;  %v923_v63 = vsel %vm181_vm0, %v7477_v14, %v7476_v35  ;;  %v7507_v35 = vld [vmem:[#allocation65_spill] sm:$0xff]  ;;  %v7508_v23 = vld [vmem:[#allocation66_spill] sm:$0xff]  ;;  %v7509_v34 = vld [vmem:[#allocation64_spill] sm:$0xff] }
  0xbf   :  { %v844_v56 = vsel %vm193_vm5, %v7504_v57, %v7503_v42  ;;  %v869_v5 = vsel %vm187_vm3, %v7505_v20, %v868_v39  ;;  %v919_v4 = vsel %vm199_vm7, %v7475_v50, %v918_v60  ;;  %v924_v44 = vsel %vm184_vm1, %v7473_v18, %v923_v63  ;;  %v7511_v49 = vld [vmem:[#allocation68_spill] sm:$0xff]  ;;  %v7515_v57 = vld [vmem:[#allocation85_spill] sm:$0xff] }
  0xc0   :  { %v1053_v51 = vrot.slane %v913_v22, 6  ;;  %v871_v30 = vpack.c.b16 %v869_v5, %v863_v26  ;;  %v925_v38 = vsel %vm187_vm3, %v7474_v43, %v924_v44  ;;  %v845_v14 = vsel %vm196_vm6, %v7506_v6, %v844_v56  ;;  %v7512_v31 = vld [vmem:[#allocation84_spill] sm:$0xff] }
  0xc1   :  { %v850_v55 = vsel %vm181_vm0, %v7508_v23, %v7507_v35  ;;  %v927_v28 = vpack.c.b16 %v925_v38, %v919_v4  ;;  %v846_v50 = vsel %vm199_vm7, %v7509_v34, %v845_v14  ;;  %v900_v7 = vsel %vm193_vm5, %v7479_v33, %v7478_v54  ;;  %v7513_v33 = vld [vmem:[#allocation55_spill] sm:$0xff]  ;;  %v7518_v4 = vld [vmem:[#allocation90_spill] sm:$0xff] }
  0xc2   :  { %v1179_v0 = vsel %vm331_vm2, %v1045_v15, %v1053_v51  ;;  %v851_v18 = vsel %vm184_vm1, %v7510_v32, %v850_v55  ;;  %v1047_v11 = vrot.slane %v871_v30, 2  ;;  %v906_v45 = vsel %vm181_vm0, %v7485_v58, %v7484_v36  ;;  %v7514_v36 = vld [vmem:[#allocation88_spill] sm:$0xff]  ;;  %v7519_v35 = vld [vmem:[#allocation98_spill] sm:$0xff] }
  0xc3   :  { %1780 = vmatprep.mubr.bf16.mxu0 %v1179_v0  ;;  %v852_v43 = vsel %vm187_vm3, %v7511_v49, %v851_v18  ;;  %v1055_v24 = vrot.slane %v927_v28, 6  ;;  %v901_v22 = vsel %vm196_vm6, %v7480_v62, %v900_v7  ;;  %v907_v15 = vsel %vm184_vm1, %v7481_v40, %v906_v45  ;;  %v7520_v23 = vld [vmem:[#allocation106_spill] sm:$0xff]  ;;  %v7521_v0 = vld [vmem:[#allocation107_spill] sm:$0xff]  ;;  %v7522_v28 = vld [vmem:[#allocation109_spill] sm:$0xff] }
  0xc4   :  { %v856_v8 = vpack.c.b16 %v852_v43, %v846_v50  ;;  %v902_v12 = vsel %vm199_vm7, %v7483_v3, %v901_v22  ;;  %v908_v26 = vsel %vm187_vm3, %v7482_v16, %v907_v15  ;;  %v858_v39 = vsel %vm193_vm5, %v7513_v33, %v7512_v31  ;;  %v7516_v3 = vld [vmem:[#allocation86_spill] sm:$0xff]  ;;  %v7517_v16 = vld [vmem:[#allocation89_spill] sm:$0xff]  ;;  %v7525_v18 = vld [vmem:[#allocation99_spill] sm:$0xff] }
  0xc5   :  { %v864_v58 = vsel %vm181_vm0, %v7514_v36, %v7464_v21  ;;  %v1187_v60 = vsel %vm331_vm2, %v1047_v11, %v1055_v24  ;;  %v912_v62 = vpack.c.b16 %v908_v26, %v902_v12  ;;  %v859_v40 = vsel %vm196_vm6, %v7515_v57, %v858_v39  ;;  %v7526_v43 = vld [vmem:[#allocation111_spill] sm:$0xff]  ;;  %v7527_v45 = vld [vmem:[#allocation112_spill] sm:$0xff]  ;;  %v7530_v12 = vld [vmem:[#allocation113_spill] sm:$0xff] }
  0xc6   :  { %v1044_v63 = vrot.slane %v856_v8, 2  ;;  %1852 = vmatprep.mubr.bf16.mxu1 %v1187_v60  ;;  %v860_v56 = vsel %vm199_vm7, %v7516_v3, %v859_v40  ;;  %v865_v51 = vsel %vm184_vm1, %v7517_v16, %v864_v58  ;;  %v914_v20 = vsel %vm193_vm5, %v7487_v61, %v7486_v48  ;;  %v7529_v8 = vld [vmem:[#allocation115_spill] sm:$0xff]  ;;  %v7531_v31 = vld [vmem:[#allocation116_spill] sm:$0xff]  ;;  %v7532_v36 = vld [vmem:[#allocation118_spill] sm:$0xff] }
  0xc7   :  { %v920_v21 = vsel %vm181_vm0, %v7493_v46, %v7492_v13  ;;  %v1052_v5 = vrot.slane %v912_v62, 6  ;;  %v866_v44 = vsel %vm187_vm3, %v7518_v4, %v865_v51  ;;  %v915_v30 = vsel %vm196_vm6, %v7488_v9, %v914_v20  ;;  %v7534_v62 = vld [vmem:[#allocation117_spill] sm:$0xff]  ;;  %v7535_v57 = vld [vmem:[#allocation126_spill] sm:$0xff]  ;;  %v7536_v3 = vld [vmem:[#allocation128_spill] sm:$0xff] }
  0xc8   :  { %v921_v38 = vsel %vm184_vm1, %v7489_v37, %v920_v21  ;;  %v870_v6 = vpack.c.b16 %v866_v44, %v860_v56  ;;  %v916_v14 = vsel %vm199_vm7, %v7491_v19, %v915_v30  ;;  %v959_v13 = vsel %vm193_vm5, %v7520_v23, %v7519_v35  ;;  %v7523_v19 = vld [vmem:[#allocation108_spill] sm:$0xff]  ;;  %v7537_v20 = vld [vmem:[#allocation127_spill] sm:$0xff]  ;;  %v7539_v44 = vld [vmem:[#allocation130_spill] sm:$0xff] }
  0xc9   :  { %v922_v48 = vsel %vm187_vm3, %v7490_v1, %v921_v38  ;;  %v1175_v46 = vsel %vm331_vm2, %v1044_v63, %v1052_v5  ;;  %v960_v9 = vsel %vm196_vm6, %v7521_v0, %v959_v13  ;;  %v965_v37 = vsel %vm181_vm0, %v5609_v29, %v7522_v28  ;;  %v7524_v1 = vld [vmem:[#allocation110_spill] sm:$0xff]  ;;  %v7538_v5 = vld [vmem:[#allocation129_spill] sm:$0xff]  ;;  %v7541_v23 = vld [vmem:[#allocation131_spill] sm:$0xff] }
  0xca   :  { %v926_v55 = vpack.c.b16 %v922_v48, %v916_v14  ;;  %1781 = vmatmul.mubr.bf16.gmra.mxu0 %v1175_v46  ;;  %v1046_v34 = vrot.slane %v870_v6, 2  ;;  %v961_v50 = vsel %vm199_vm7, %v7523_v19, %v960_v9  ;;  %v966_v32 = vsel %vm184_vm1, %v7524_v1, %v965_v37  ;;  %v7528_v29 = vld [vmem:[#allocation114_spill] sm:$0xff]  ;;  %v7542_v46 = vld [vmem:[#allocation133_spill] sm:$0xff]  ;;  %v7543_v0 = vld [vmem:[#allocation132_spill] sm:$0xff] }
  0xcb   :  { %v973_v11 = vsel %vm193_vm5, %v7525_v18, %v5630_v59  ;;  %v967_v7 = vsel %vm187_vm3, %v7526_v43, %v966_v32  ;;  %v979_v22 = vsel %vm181_vm0, %v7529_v8, %v7528_v29  ;;  %v7533_v59 = vld [vmem:[#allocation125_spill] sm:$0xff]  ;;  %v962_v56 = vsel %vm181_vm0, %v5743_v41, %v7536_v3  ;;  %v7550_v32 = vld [vmem:[#allocation19_spill] sm:$0xff] }
  0xcc   :  { %v1054_v49 = vrot.slane %v926_v55, 6  ;;  %v974_v24 = vsel %vm196_vm6, %v7527_v45, %v973_v11  ;;  %v969_v15 = vpack.c.b16 %v967_v7, %v961_v50  ;;  %v980_v39 = vsel %vm184_vm1, %v7531_v31, %v979_v22  ;;  %v7548_v50 = vld [vmem:[#allocation18_spill] sm:$0xff]  ;;  %v7552_v43 = vld [vmem:[#allocation21_spill] sm:$0xff]  ;;  %v7556_v22 = vld [vmem:[#allocation16_spill] sm:$0xff] }
  0xcd   :  { %v975_v26 = vsel %vm199_vm7, %v7530_v12, %v974_v24  ;;  %v956_v58 = vsel %vm193_vm5, %v7533_v59, %v7532_v36  ;;  %v981_v63 = vsel %vm187_vm3, %v7534_v62, %v980_v39  ;;  %v963_v4 = vsel %vm184_vm1, %v7538_v5, %v962_v56  ;;  %v7554_v45 = vld [vmem:[#allocation22_spill] sm:$0xff]  ;;  %v7560_v62 = vld [vmem:[#allocation33_spill] sm:$0xff] }
  0xce   :  { %v1183_v60 = vsel %vm331_vm2, %v1046_v34, %v1054_v49  ;;  %v957_v40 = vsel %vm196_vm6, %v7535_v57, %v956_v58  ;;  %v1061_v16 = vrot.slane %v969_v15, 2  ;;  %v983_v51 = vpack.c.b16 %v981_v63, %v975_v26  ;;  %v7557_v26 = vld [vmem:[#allocation31_spill] sm:$0xff]  ;;  %v4529_v39 = vld [vmem:[#allocation7 + $0x74] ss:$8 sps:$4 sm:$0xff]   ;;  %v7558_v58 = vld [vmem:[#allocation32_spill] sm:$0xff] }
  0xcf   :  { %1853 = vmatmul.mubr.bf16.gmra.mxu1 %v1183_v60  ;;  %v958_v21 = vsel %vm199_vm7, %v7537_v20, %v957_v40  ;;  %v964_v30 = vsel %vm187_vm3, %v7539_v44, %v963_v4  ;;  %v970_v38 = vsel %vm193_vm5, %v5716_v27, %v5764_v2  ;;  %v976_v41 = vsel %vm181_vm0, %v5793_v47, %v5784_v25  ;;  %v7544_v2 = vld [vmem:[#allocation134_spill] sm:$0xff]  ;;  %v7546_v47 = vld [vmem:[#allocation17_spill] sm:$0xff] }
  0xd0   :  { %v6114_v6 = vrot.slane %v5101_v52, 2  ;;  %1788 = vmatprep.mubr.bf16.mxu0 %v1061_v16  ;;  %v1063_v14 = vrot.slane %v983_v51, 2  ;;  %v968_v48 = vpack.c.b16 %v964_v30, %v958_v21  ;;  %v971_v13 = vsel %vm196_vm6, %v7541_v23, %v970_v38  ;;  %v7562_v57 = vld [vmem:[#allocation34_spill] sm:$0xff]  ;;  %v7564_v16 = vld [vmem:[#allocation35_spill] sm:$0xff]  ;;  %2455 = vmatprep.subr.bf16.mxu0 %v4529_v39 }
  0xd1   :  { %v977_v55 = vsel %vm184_vm1, %v7542_v46, %v976_v41  ;;  %v972_v9 = vsel %vm199_vm7, %v7543_v0, %v971_v13  ;;  %v6125_v25 = vrot.slane %v5103_v53, 1  ;;  %v6128_v37 = vrot.slane %v7546_v47, 7  ;;  %v7567_v5 = vld [vmem:[#allocation30_spill] sm:$0xff] }
  0xd2   :  { %7540 = vst [vmem:[#allocation28_spill] sm:$0xff] %v6114_v6  ;;  %v978_v28 = vsel %vm187_vm3, %v7544_v2, %v977_v55  ;;  %1860 = vmatprep.mubr.bf16.mxu1 %v1063_v14  ;;  %v1060_v34 = vrot.slane %v968_v48, 2  ;;  %v6131_v1 = vrot.slane %v7548_v50, 6  ;;  %v6134_v11 = vrot.slane %v7550_v32, 5 }
  0xd3   :  { %7545 = vst [vmem:[#allocation36_spill] sm:$0xff] %v6125_v25  ;;  %7547 = vst [vmem:[#allocation37_spill] sm:$0xff] %v6128_v37  ;;  %v982_v19 = vpack.c.b16 %v978_v28, %v972_v9  ;;  %v263_v49 = vsel %vm181_vm0, %v6125_v25, %v6114_v6  ;;  %v6140_v7 = vrot.slane %v7552_v43, 4  ;;  %v6143_v24 = vrot.slane %v7554_v45, 3 }
  0xd4   :  { %7549 = vst [vmem:[#allocation41_spill] sm:$0xff] %v6131_v1  ;;  %7551 = vst [vmem:[#allocation42_spill] sm:$0xff] %v6134_v11  ;;  %v6146_v29 = vrot.slane %v7458_v10, 2  ;;  %1789 = vmatmul.mubr.bf16.gmra.mxu0 %v1060_v34  ;;  %v264_v15 = vsel %vm184_vm1, %v7556_v22, %v263_v49  ;;  %v6151_v12 = vrot.slane %v7471_v17, 1  ;;  %v6154_v31 = vrot.slane %v7557_v26, 7 }
  0xd5   :  { %7553 = vst [vmem:[#allocation87_spill] sm:$0xff] %v6140_v7  ;;  %7555 = vst [vmem:[#allocation38_spill] sm:$0xff] %v6143_v24  ;;  %v1062_v8 = vrot.slane %v982_v19, 2  ;;  %v266_v59 = vsel %vm187_vm3, %v6128_v37, %v264_v15  ;;  %v6159_v60 = vrot.slane %v7558_v58, 6  ;;  %v6162_v63 = vrot.slane %v7560_v62, 5 }
  0xd6   :  { %v6165_v40 = vrot.slane %v7562_v57, 4  ;;  %v268_v3 = vsel %vm190_vm4, %v6131_v1, %v266_v59  ;;  %v464_v56 = vsel %vm181_vm0, %v6151_v12, %v6146_v29  ;;  %v6173_v51 = vrot.slane %v7564_v16, 3 }
  0xd7   :  { %7559 = vst [vmem:[#allocation39_spill] sm:$0xff] %v6159_v60  ;;  %7561 = vst [vmem:[#allocation40_spill] sm:$0xff] %v6162_v63  ;;  %1861 = vmatmul.mubr.bf16.gmra.mxu1 %v1062_v8  ;;  %v6176_v20 = vrot.slane %v5101_v52, 3  ;;  %v270_v21 = vsel %vm193_vm5, %v6134_v11, %v268_v3  ;;  %v465_v4 = vsel %vm184_vm1, %v7567_v5, %v464_v56  ;;  %v6183_v44 = vrot.slane %v5103_v53, 2 }
  0xd8   :  { %7563 = vst [vmem:[#allocation47_spill] sm:$0xff] %v6165_v40  ;;  %7565 = vst [vmem:[#allocation29_spill] sm:$0xff] %v6173_v51  ;;  %v6186_v30 = vrot.slane %v7556_v22, 1  ;;  %v272_v38 = vsel %vm196_vm6, %v6140_v7, %v270_v21  ;;  %v467_v52 = vsel %vm187_vm3, %v6154_v31, %v465_v4  ;;  %v6193_v41 = vrot.slane %v7548_v50, 7 }
  0xd9   :  { %7566 = vst [vmem:[#allocation48_spill] sm:$0xff] %v6176_v20  ;;  %7568 = vst [vmem:[#allocation52_spill] sm:$0xff] %v6183_v44  ;;  %v6196_v14 = vrot.slane %v7550_v32, 6  ;;  %v274_v48 = vsel %vm199_vm7, %v6143_v24, %v272_v38  ;;  %v469_v53 = vsel %vm190_vm4, %v6159_v60, %v467_v52  ;;  %v293_v23 = vsel %vm181_vm0, %v6183_v44, %v6176_v20  ;;  %v7582_v52 = vld [vmem:[#allocation57_spill] sm:$0xff] }
  0xda   :  { %7569 = vst [vmem:[#allocation53_spill] sm:$0xff] %v6186_v30  ;;  %7570 = vst [vmem:[#allocation49_spill] sm:$0xff] %v6193_v41  ;;  %v6206_v13 = vrot.slane %v7552_v43, 5  ;;  %v276_v46 = vpack.c.b16 %v274_v48, %v274_v48  ;;  %v471_v55 = vsel %vm193_vm5, %v6162_v63, %v469_v53  ;;  %v295_v0 = vsel %vm184_vm1, %v6186_v30, %v293_v23  ;;  %v7583_v23 = vld [vmem:[#allocation58_spill] sm:$0xff]  ;;  %v7601_v63 = vld [vmem:[#allocation76_spill] sm:$0xff] }
  0xdb   :  { %7571 = vst [vmem:[#allocation50_spill] sm:$0xff] %v6196_v14  ;;  %v6213_v9 = vrot.slane %v7554_v45, 4  ;;  %v473_v2 = vsel %vm196_vm6, %v6165_v40, %v471_v55  ;;  %v296_v28 = vsel %vm187_vm3, %v7546_v47, %v295_v0  ;;  %v6220_v34 = vrot.slane %v7458_v10, 3  ;;  %v7584_v0 = vld [vmem:[#allocation59_spill] sm:$0xff] }
  0xdc   :  { %7572 = vst [vmem:[#allocation51_spill] sm:$0xff] %v6206_v13  ;;  %v6223_v19 = vrot.slane %v7471_v17, 2  ;;  %v475_v50 = vsel %vm199_vm7, %v6173_v51, %v473_v2  ;;  %v298_v32 = vsel %vm190_vm4, %v6193_v41, %v296_v28  ;;  %v6230_v49 = vrot.slane %v7567_v5, 1 }
  0xdd   :  { %7573 = vst [vmem:[#allocation69_spill] sm:$0xff] %v6213_v9  ;;  %7574 = vst [vmem:[#allocation77_spill] sm:$0xff] %v6220_v34  ;;  %v6233_v43 = vrot.slane %v7558_v58, 7  ;;  %v477_v45 = vpack.c.b16 %v475_v50, %v475_v50  ;;  %v300_v10 = vsel %vm193_vm5, %v6196_v14, %v298_v32  ;;  %v6241_v8 = vrot.slane %v7560_v62, 6  ;;  %v7585_v32 = vld [vmem:[#allocation60_spill] sm:$0xff] }
  0xde   :  { %7575 = vst [vmem:[#allocation78_spill] sm:$0xff] %v6223_v19  ;;  %7576 = vst [vmem:[#allocation82_spill] sm:$0xff] %v6230_v49  ;;  %v494_v17 = vsel %vm181_vm0, %v6223_v19, %v6220_v34  ;;  %v302_v15 = vsel %vm196_vm6, %v6206_v13, %v300_v10  ;;  %v6248_v59 = vrot.slane %v7562_v57, 5  ;;  %v6251_v58 = vrot.slane %v7564_v16, 4  ;;  %v7600_v19 = vld [vmem:[#allocation71_spill] sm:$0xff] }
  0xdf   :  { %7577 = vst [vmem:[#allocation83_spill] sm:$0xff] %v6233_v43  ;;  %7578 = vst [vmem:[#allocation79_spill] sm:$0xff] %v6241_v8  ;;  %v496_v39 = vsel %vm184_vm1, %v6230_v49, %v494_v17  ;;  %v1017_v3 = vrot.slane %v477_v45, 4  ;;  %v304_v56 = vsel %vm199_vm7, %v6213_v9, %v302_v15  ;;  %v6258_v21 = vrot.slane %v7503_v42, 2  ;;  %v7589_v15 = vld [vmem:[#allocation56_spill] sm:$0xff] }
  0xe0   :  { %7579 = vst [vmem:[#allocation80_spill] sm:$0xff] %v6248_v59  ;;  %7580 = vst [vmem:[#allocation81_spill] sm:$0xff] %v6251_v58  ;;  %v497_v62 = vsel %vm187_vm3, %v7557_v26, %v496_v39  ;;  %v306_v4 = vpack.c.b16 %v304_v56, %v304_v56  ;;  %v6263_v57 = vrot.slane %v7513_v33, 1  ;;  %v6266_v16 = vrot.slane %v7582_v52, 7  ;;  %v7596_v26 = vld [vmem:[#allocation74_spill] sm:$0xff] }
  0xe1   :  { %v499_v38 = vsel %vm190_vm4, %v6233_v43, %v497_v62  ;;  %v1099_v48 = vsel %vm331_vm2, %v276_v46, %v1017_v3  ;;  %v6272_v55 = vrot.slane %v7583_v23, 6  ;;  %v6275_v2 = vrot.slane %v7584_v0, 5  ;;  %v7587_v46 = vld [vmem:[#allocation61_spill] sm:$0xff] }
  0xe2   :  { %7581 = vst [vmem:[#allocation91_spill] sm:$0xff] %v6263_v57  ;;  %v501_v53 = vsel %vm193_vm5, %v6241_v8, %v499_v38  ;;  %1900 = vmatprep.mubr.bf16.mxu0 %v1099_v48  ;;  %v249_v50 = vsel %vm181_vm0, %v6263_v57, %v6258_v21  ;;  %v6283_v45 = vrot.slane %v7585_v32, 4  ;;  %v6286_v10 = vrot.slane %v7587_v46, 3  ;;  %v7592_v48 = vld [vmem:[#allocation72_spill] sm:$0xff]  ;;  %v7594_v8 = vld [vmem:[#allocation73_spill] sm:$0xff] }
  0xe3   :  { %v503_v28 = vsel %vm196_vm6, %v6248_v59, %v501_v53  ;;  %v250_v39 = vsel %vm184_vm1, %v7589_v15, %v249_v50  ;;  %v6293_v3 = vrot.slane %v7478_v54, 2  ;;  %v6296_v56 = vrot.slane %v7487_v61, 1 }
  0xe4   :  { %7586 = vst [vmem:[#allocation70_spill] sm:$0xff] %v6283_v45  ;;  %7588 = vst [vmem:[#allocation92_spill] sm:$0xff] %v6286_v10  ;;  %v505_v17 = vsel %vm199_vm7, %v6251_v58, %v503_v28  ;;  %v252_v38 = vsel %vm187_vm3, %v6266_v16, %v250_v39  ;;  %v6301_v53 = vrot.slane %v7592_v48, 7  ;;  %v6304_v43 = vrot.slane %v7594_v8, 6 }
  0xe5   :  { %7590 = vst [vmem:[#allocation96_spill] sm:$0xff] %v6293_v3  ;;  %7591 = vst [vmem:[#allocation97_spill] sm:$0xff] %v6296_v56  ;;  %v507_v62 = vpack.c.b16 %v505_v17, %v505_v17  ;;  %v254_v28 = vsel %vm190_vm4, %v6272_v55, %v252_v38  ;;  %v450_v50 = vsel %vm181_vm0, %v6296_v56, %v6293_v3  ;;  %v6312_v49 = vrot.slane %v7596_v26, 5  ;;  %v7598_v17 = vld [vmem:[#allocation75_spill] sm:$0xff] }
  0xe6   :  { %7593 = vst [vmem:[#allocation93_spill] sm:$0xff] %v6301_v53  ;;  %7595 = vst [vmem:[#allocation94_spill] sm:$0xff] %v6304_v43  ;;  %v6315_v58 = vrot.slane %v7598_v17, 4  ;;  %v256_v59 = vsel %vm193_vm5, %v6275_v2, %v254_v28  ;;  %v451_v34 = vsel %vm184_vm1, %v7600_v19, %v450_v50  ;;  %v6322_v60 = vrot.slane %v7601_v63, 3 }
  0xe7   :  { %7597 = vst [vmem:[#allocation95_spill] sm:$0xff] %v6312_v49  ;;  %v1019_v39 = vrot.slane %v507_v62, 4  ;;  %v258_v38 = vsel %vm196_vm6, %v6283_v45, %v256_v59  ;;  %v453_v56 = vsel %vm187_vm3, %v6301_v53, %v451_v34  ;;  %v6329_v3 = vrot.slane %v7503_v42, 3 }
  0xe8   :  { %7599 = vst [vmem:[#allocation20_spill] sm:$0xff] %v6315_v58  ;;  %7602 = vst [vmem:[#allocation23_spill] sm:$0xff] %v6322_v60  ;;  %v6332_v62 = vrot.slane %v7513_v33, 2  ;;  %v260_v50 = vsel %vm199_vm7, %v6286_v10, %v258_v38  ;;  %v455_v51 = vsel %vm190_vm4, %v6304_v43, %v453_v56  ;;  %v6340_v40 = vrot.slane %v7589_v15, 1 }
  0xe9   :  { %7603 = vst [vmem:[#allocation24_spill] sm:$0xff] %v6329_v3  ;;  %v1107_v28 = vsel %vm331_vm2, %v306_v4, %v1019_v39  ;;  %v275_v59 = vpack.c.b16 %v260_v50, %v260_v50  ;;  %v457_v42 = vsel %vm193_vm5, %v6312_v49, %v455_v51  ;;  %v6348_v34 = vrot.slane %v7583_v23, 7 }
  0xea   :  { %7604 = vst [vmem:[#allocation25_spill] sm:$0xff] %v6332_v62  ;;  %7605 = vst [vmem:[#allocation26_spill] sm:$0xff] %v6340_v40  ;;  %1972 = vmatprep.mubr.bf16.mxu1 %v1107_v28  ;;  %v279_v33 = vsel %vm181_vm0, %v6332_v62, %v6329_v3  ;;  %v459_v4 = vsel %vm196_vm6, %v6315_v58, %v457_v42  ;;  %v6355_v39 = vrot.slane %v7584_v0, 6  ;;  %v6358_v38 = vrot.slane %v7585_v32, 5  ;;  %v4530_v58 = vld [vmem:[#allocation7 + $0x60] ss:$8 sps:$4 sm:$0xff]  }
  0xeb   :  { %7606 = vst [vmem:[#allocation27_spill] sm:$0xff] %v6348_v34  ;;  %v281_v56 = vsel %vm184_vm1, %v6340_v40, %v279_v33  ;;  %v461_v51 = vsel %vm199_vm7, %v6322_v60, %v459_v4  ;;  %v6365_v23 = vrot.slane %v7587_v46, 4  ;;  %v6368_v50 = vrot.slane %v7478_v54, 3  ;;  %v7622_v60 = vld [vmem:[#allocation103_spill] sm:$0xff] }
  0xec   :  { %7607 = vst [vmem:[#allocation44_spill] sm:$0xff] %v6355_v39  ;;  %7608 = vst [vmem:[#allocation43_spill] sm:$0xff] %v6358_v38  ;;  %v282_v28 = vsel %vm187_vm3, %v7582_v52, %v281_v56  ;;  %v476_v42 = vpack.c.b16 %v461_v51, %v461_v51  ;;  %v6373_v33 = vrot.slane %v7487_v61, 2  ;;  %v6376_v32 = vrot.slane %v7600_v19, 1 }
  0xed   :  { %7609 = vst [vmem:[#allocation45_spill] sm:$0xff] %v6365_v23  ;;  %7610 = vst [vmem:[#allocation54_spill] sm:$0xff] %v6368_v50  ;;  %v284_v0 = vsel %vm190_vm4, %v6348_v34, %v282_v28  ;;  %v6381_v56 = vrot.slane %v7594_v8, 7  ;;  %v6384_v46 = vrot.slane %v7596_v26, 6  ;;  %v6387_v54 = vrot.slane %v7598_v17, 5 }
  0xee   :  { %7611 = vst [vmem:[#allocation62_spill] sm:$0xff] %v6373_v33  ;;  %7612 = vst [vmem:[#allocation46_spill] sm:$0xff] %v6376_v32  ;;  %v286_v4 = vsel %vm193_vm5, %v6355_v39, %v284_v0  ;;  %v1016_v51 = vrot.slane %v476_v42, 4  ;;  %v480_v28 = vsel %vm181_vm0, %v6373_v33, %v6368_v50  ;;  %v6395_v49 = vrot.slane %v7601_v63, 4  ;;  %v4527_v0 = vld [vmem:[#allocation7 + $0x70] ss:$8 sps:$4 sm:$0xff]  }
  0xef   :  { %7613 = vst [vmem:[#allocation63_spill] sm:$0xff] %v6381_v56  ;;  %7614 = vst [vmem:[#allocation65_spill] sm:$0xff] %v6384_v46  ;;  %v288_v61 = vsel %vm196_vm6, %v6358_v38, %v286_v4  ;;  %v482_v26 = vsel %vm184_vm1, %v6376_v32, %v480_v28  ;;  %v6402_v17 = vrot.slane %v7519_v35, 2  ;;  %v6405_v42 = vrot.slane %v7525_v18, 1  ;;  %v4532_v4 = vld [vmem:[#allocation7 + $0x64] ss:$8 sps:$4 sm:$0xff]  }
  0xf0   :  { %7615 = vst [vmem:[#allocation66_spill] sm:$0xff] %v6387_v54  ;;  %v290_v8 = vsel %vm199_vm7, %v6365_v23, %v288_v61  ;;  %v1095_v43 = vsel %vm331_vm2, %v275_v59, %v1016_v51  ;;  %v483_v63 = vsel %vm187_vm3, %v7592_v48, %v482_v26  ;;  %v7618_v50 = vld [vmem:[#allocation101_spill] sm:$0xff]  ;;  %v7620_v32 = vld [vmem:[#allocation102_spill] sm:$0xff]  ;;  %v6422_v59 = vrot.slane %v7622_v60, 5 }
  0xf1   :  { %7616 = vst [vmem:[#allocation64_spill] sm:$0xff] %v6402_v17  ;;  %7617 = vst [vmem:[#allocation67_spill] sm:$0xff] %v6405_v42  ;;  %v305_v33 = vpack.c.b16 %v290_v8, %v290_v8  ;;  %v6411_v53 = vrot.slane %v7618_v50, 7  ;;  %1901 = vmatmul.mubr.bf16.vlgmr.msra.gmra.mxu0 %v1095_v43  ;;  %v485_v61 = vsel %vm190_vm4, %v6381_v56, %v483_v63  ;;  %v6419_v19 = vrot.slane %v7620_v32, 6  ;;  %v7624_v8 = vld [vmem:[#allocation100_spill] sm:$0xff]  ;;  %v7627_v63 = vld [vmem:[#allocation105_spill] sm:$0xff] }
  0xf2   :  { %v632_v28 = vsel %vm181_vm0, %v6405_v42, %v6402_v17  ;;  %7623 = vst [vmem:[#allocation55_spill] sm:$0xff] %v6422_v59  ;;  %v487_v51 = vsel %vm193_vm5, %v6384_v46, %v485_v61  ;;  %v7625_v43 = vld [vmem:[#allocation104_spill] sm:$0xff]  ;;  %v6432_v56 = vrot.slane %v7627_v63, 3  ;;  %2456 = vmatpush1.bf16.msra.mxu0 %v4527_v0  ;;  %v709_v61 = vsel %vm187_vm3, %v6125_v25, %v6114_v6  ;;  %v4535_v46 = vld [vmem:[#allocation7 + $0x174] ss:$8 sps:$4 sm:$0xff]  }
  0xf3   :  { %7619 = vst [vmem:[#allocation68_spill] sm:$0xff] %v6411_v53  ;;  %7621 = vst [vmem:[#allocation84_spill] sm:$0xff] %v6419_v19  ;;  %v633_v26 = vsel %vm184_vm1, %v7624_v8, %v632_v28  ;;  %v6429_v48 = vrot.slane %v7625_v43, 4  ;;  %v489_v42 = vsel %vm196_vm6, %v6387_v54, %v487_v51  ;;  %v715_v28 = vsel %vm181_vm0, %v6143_v24, %v6140_v7  ;;  %v4538_v54 = vld [vmem:[#allocation7 + $0x54] ss:$8 sps:$4 sm:$0xff]  }
  0xf4   :  { %7628 = vst [vmem:[#allocation85_spill] sm:$0xff] %v6432_v56  ;;  %v635_v17 = vsel %vm187_vm3, %v6411_v53, %v633_v26  ;;  %2457 = vmatprep.subr.bf16.mxu0 %v4532_v4  ;;  %v491_v0 = vsel %vm199_vm7, %v6395_v49, %v489_v42  ;;  %v710_v51 = vsel %vm190_vm4, %v7556_v22, %v709_v61  ;;  %v6451_v26 = vrot.slane %v7519_v35, 3 }
  0xf5   :  { %7626 = vst [vmem:[#allocation88_spill] sm:$0xff] %v6429_v48  ;;  %v637_v39 = vsel %vm190_vm4, %v6419_v19, %v635_v17  ;;  %v506_v25 = vpack.c.b16 %v491_v0, %v491_v0  ;;  %v711_v4 = vsel %vm193_vm5, %v6128_v37, %v710_v51  ;;  %v6458_v24 = vrot.slane %v7525_v18, 2  ;;  %2508 = vmatprep.subr.bf16.mxu1 %v4535_v46  ;;  %v4533_v51 = vld [vmem:[#allocation7 + $0x170] ss:$8 sps:$4 sm:$0xff]  }
  0xf6   :  { %7629 = vst [vmem:[#allocation86_spill] sm:$0xff] %v6451_v26  ;;  %v639_v6 = vsel %vm193_vm5, %v6422_v59, %v637_v39  ;;  %v712_v42 = vsel %vm196_vm6, %v6131_v1, %v711_v4  ;;  %v6465_v35 = vrot.slane %v7624_v8, 1  ;;  %v6468_v61 = vrot.slane %v7620_v32, 7  ;;  %2458 = vmatpush1.bf16.msra.mxu0 %v4530_v58  ;;  %v4536_v39 = vld [vmem:[#allocation7 + $0x50] ss:$8 sps:$4 sm:$0xff]  }
  0xf7   :  { %7630 = vst [vmem:[#allocation89_spill] sm:$0xff] %v6458_v24  ;;  %v641_v17 = vsel %vm196_vm6, %v6429_v48, %v639_v6  ;;  %v1018_v0 = vrot.slane %v506_v25, 4  ;;  %v713_v46 = vsel %vm199_vm7, %v6134_v11, %v712_v42  ;;  %v662_v6 = vsel %vm181_vm0, %v6458_v24, %v6451_v26  ;;  %2459 = vmatprep.subr.bf16.mxu0 %v4538_v54 }
  0xf8   :  { %7631 = vst [vmem:[#allocation90_spill] sm:$0xff] %v6465_v35  ;;  %7632 = vst [vmem:[#allocation98_spill] sm:$0xff] %v6468_v61  ;;  %v643_v18 = vsel %vm199_vm7, %v6432_v56, %v641_v17  ;;  %v717_v7 = vpack.c.b16 %v715_v28, %v713_v46  ;;  %v664_v32 = vsel %vm184_vm1, %v6465_v35, %v662_v6  ;;  %v6480_v58 = vrot.slane %v7622_v60, 6  ;;  %v7637_v6 = vld [vmem:[#allocation120_spill] sm:$0xff] }
  0xf9   :  { %v645_v4 = vpack.c.b16 %v643_v18, %v643_v18  ;;  %v1103_v25 = vsel %vm331_vm2, %v305_v33, %v1018_v0  ;;  %v665_v17 = vsel %vm187_vm3, %v7618_v50, %v664_v32  ;;  %v6486_v42 = vrot.slane %v7625_v43, 5 }
  0xfa   :  { %7633 = vst [vmem:[#allocation106_spill] sm:$0xff] %v6480_v58  ;;  %v6489_v11 = vrot.slane %v7627_v63, 4  ;;  %1973 = vmatmul.mubr.bf16.vlgmr.msra.gmra.mxu1 %v1103_v25  ;;  %v1025_v54 = vrot.slane %v717_v7, 5  ;;  %v667_v28 = vsel %vm190_vm4, %v6468_v61, %v665_v17  ;;  %v723_v60 = vsel %vm187_vm3, %v6183_v44, %v6176_v20  ;;  %2460 = vmatpush1.bf16.msra.mxu0 %v4536_v39  ;;  %v7646_v44 = vld [vmem:[#allocation124_spill] sm:$0xff] }
  0xfb   :  { %7634 = vst [vmem:[#allocation107_spill] sm:$0xff] %v6486_v42  ;;  %v729_v33 = vsel %vm181_vm0, %v6213_v9, %v6206_v13  ;;  %v669_v43 = vsel %vm193_vm5, %v6480_v58, %v667_v28  ;;  %v724_v63 = vsel %vm190_vm4, %v6186_v30, %v723_v60  ;;  %v6504_v7 = vrot.slane %v7532_v36, 2  ;;  %2509 = vmatpush1.bf16.msra.mxu1 %v4533_v51  ;;  %v4541_v13 = vld [vmem:[#allocation7 + $0x164] ss:$8 sps:$4 sm:$0xff]   ;;  %v4542_v20 = vld [vmem:[#allocation7 + $0x40] ss:$8 sps:$4 sm:$0xff]  }
  0xfc   :  { %7635 = vst [vmem:[#allocation109_spill] sm:$0xff] %v6489_v11  ;;  %v6507_v0 = vrot.slane %v5716_v27, 1  ;;  %v1131_v18 = vsel %vm331_vm2, %v645_v4, %v1025_v54  ;;  %v671_v46 = vsel %vm196_vm6, %v6486_v42, %v669_v43  ;;  %v725_v39 = vsel %vm193_vm5, %v7546_v47, %v724_v63  ;;  %v7639_v4 = vld [vmem:[#allocation121_spill] sm:$0xff]  ;;  %v7641_v43 = vld [vmem:[#allocation119_spill] sm:$0xff]  ;;  %2510 = vmatprep.subr.bf16.mxu1 %v4541_v13 }
  0xfd   :  { %v6515_v32 = vrot.slane %v7637_v6, 7  ;;  %1908 = vmatprep.mubr.bf16.mxu0 %v1131_v18  ;;  %v673_v25 = vsel %vm199_vm7, %v6489_v11, %v671_v46  ;;  %v726_v17 = vsel %vm196_vm6, %v6193_v41, %v725_v39  ;;  %v6525_v54 = vrot.slane %v7639_v4, 6  ;;  %v7642_v18 = vld [vmem:[#allocation122_spill] sm:$0xff]  ;;  %v4539_v46 = vld [vmem:[#allocation7 + $0x160] ss:$8 sps:$4 sm:$0xff]  }
  0xfe   :  { %7636 = vst [vmem:[#allocation108_spill] sm:$0xff] %v6507_v0  ;;  %v618_v51 = vsel %vm181_vm0, %v6507_v0, %v6504_v7  ;;  %v675_v28 = vpack.c.b16 %v673_v25, %v673_v25  ;;  %v727_v60 = vsel %vm199_vm7, %v6196_v14, %v726_v17  ;;  %v6532_v9 = vrot.slane %v7642_v18, 5  ;;  %v7644_v41 = vld [vmem:[#allocation123_spill] sm:$0xff] }
  0xff   :  { %7638 = vst [vmem:[#allocation110_spill] sm:$0xff] %v6515_v32  ;;  %7640 = vst [vmem:[#allocation99_spill] sm:$0xff] %v6525_v54  ;;  %v619_v63 = vsel %vm184_vm1, %v7641_v43, %v618_v51  ;;  %v731_v39 = vpack.c.b16 %v729_v33, %v727_v60  ;;  %v6537_v30 = vrot.slane %v7644_v41, 4  ;;  %v6540_v25 = vrot.slane %v7646_v44, 3  ;;  %v4544_v17 = vld [vmem:[#allocation7 + $0x44] ss:$8 sps:$4 sm:$0xff]   ;;  %2511 = vmatpush1.bf16.msra.mxu1 %v4539_v46 }
 0x100   :  { %7643 = vst [vmem:[#allocation111_spill] sm:$0xff] %v6532_v9  ;;  %v621_v47 = vsel %vm187_vm3, %v6515_v32, %v619_v63  ;;  %v704_v14 = vsel %vm187_vm3, %v6263_v57, %v6258_v21  ;;  %v714_v33 = vsel %vm181_vm0, %v6286_v10, %v6283_v45  ;;  %v6551_v60 = vrot.slane %v7532_v36, 3  ;;  %2461 = vmatprep.subr.bf16.mxu0 %v4544_v17  ;;  %v4547_v17 = vld [vmem:[#allocation7 + $0x154] ss:$8 sps:$4 sm:$0xff]  }
 0x101   :  { %7645 = vst [vmem:[#allocation112_spill] sm:$0xff] %v6537_v30  ;;  %7647 = vst [vmem:[#allocation114_spill] sm:$0xff] %v6540_v25  ;;  %v623_v51 = vsel %vm190_vm4, %v6525_v54, %v621_v47  ;;  %v1027_v63 = vrot.slane %v731_v39, 5  ;;  %v705_v37 = vsel %vm190_vm4, %v7589_v15, %v704_v14  ;;  %v6558_v47 = vrot.slane %v5716_v27, 2  ;;  %2462 = vmatpush1.bf16.msra.mxu0 %v4542_v20 }
 0x102   :  { %v625_v1 = vsel %vm193_vm5, %v6532_v9, %v623_v51  ;;  %v706_v36 = vsel %vm193_vm5, %v6266_v16, %v705_v37  ;;  %v6565_v13 = vrot.slane %v7641_v43, 1  ;;  %v6568_v39 = vrot.slane %v7639_v4, 7  ;;  %v4545_v37 = vld [vmem:[#allocation7 + $0x150] ss:$8 sps:$4 sm:$0xff]   ;;  %2512 = vmatprep.subr.bf16.mxu1 %v4547_v17 }
 0x103   :  { %v627_v57 = vsel %vm196_vm6, %v6537_v30, %v625_v1  ;;  %v1139_v14 = vsel %vm331_vm2, %v675_v28, %v1027_v63  ;;  %v707_v46 = vsel %vm196_vm6, %v6272_v55, %v706_v36  ;;  %v648_v1 = vsel %vm181_vm0, %v6558_v47, %v6551_v60  ;;  %v4548_v51 = vld [vmem:[#allocation7 + $0x30] ss:$8 sps:$4 sm:$0xff]   ;;  %v4550_v28 = vld [vmem:[#allocation7 + $0x34] ss:$8 sps:$4 sm:$0xff]   ;;  %2513 = vmatpush1.bf16.msra.mxu1 %v4545_v37 }
 0x104   :  { %7648 = vst [vmem:[#allocation115_spill] sm:$0xff] %v6565_v13  ;;  %v629_v27 = vsel %vm199_vm7, %v6540_v25, %v627_v57  ;;  %1980 = vmatprep.mubr.bf16.mxu1 %v1139_v14  ;;  %v708_v20 = vsel %vm199_vm7, %v6275_v2, %v707_v46  ;;  %v650_v4 = vsel %vm184_vm1, %v6565_v13, %v648_v1  ;;  %v6583_v57 = vrot.slane %v7642_v18, 6 }
 0x105   :  { %v644_v10 = vpack.c.b16 %v629_v27, %v629_v27  ;;  %v716_v63 = vpack.c.b16 %v714_v33, %v708_v20  ;;  %v651_v36 = vsel %vm187_vm3, %v7637_v6, %v650_v4  ;;  %v6588_v45 = vrot.slane %v7644_v41, 5  ;;  %2463 = vmatprep.subr.bf16.mxu0 %v4550_v28 }
 0x106   :  { %v6591_v14 = vrot.slane %v7646_v44, 4  ;;  %v653_v27 = vsel %vm190_vm4, %v6568_v39, %v651_v36  ;;  %v718_v18 = vsel %vm187_vm3, %v6332_v62, %v6329_v3  ;;  %v728_v33 = vsel %vm181_vm0, %v6365_v23, %v6358_v38  ;;  %2464 = vmatpush1.bf16.msra.mxu0 %v4548_v51  ;;  %v7652_v36 = vld [vmem:[#allocation29_spill] sm:$0xff]  ;;  %v7653_v51 = vld [vmem:[#allocation39_spill] sm:$0xff]  ;;  %v7654_v23 = vld [vmem:[#allocation44_spill] sm:$0xff] }
 0x107   :  { %7649 = vst [vmem:[#allocation113_spill] sm:$0xff] %v6588_v45  ;;  %v765_v41 = vsel %vm187_vm3, %v6151_v12, %v6146_v29  ;;  %v1024_v46 = vrot.slane %v716_v63, 5  ;;  %v655_v44 = vsel %vm193_vm5, %v6583_v57, %v653_v27  ;;  %v719_v1 = vsel %vm190_vm4, %v6340_v40, %v718_v18  ;;  %v7651_v63 = vld [vmem:[#allocation47_spill] sm:$0xff]  ;;  %v7655_v38 = vld [vmem:[#allocation40_spill] sm:$0xff] }
 0x108   :  { %7650 = vst [vmem:[#allocation116_spill] sm:$0xff] %v6591_v14  ;;  %v766_v17 = vsel %vm190_vm4, %v7567_v5, %v765_v41  ;;  %v657_v20 = vsel %vm196_vm6, %v6588_v45, %v655_v44  ;;  %v720_v4 = vsel %vm193_vm5, %v7582_v52, %v719_v1  ;;  %v771_v27 = vsel %vm181_vm0, %v7652_v36, %v7651_v63  ;;  %v7656_v40 = vld [vmem:[#allocation64_spill] sm:$0xff]  ;;  %v7657_v62 = vld [vmem:[#allocation67_spill] sm:$0xff] }
 0x109   :  { %v767_v28 = vsel %vm193_vm5, %v6154_v31, %v766_v17  ;;  %v1127_v18 = vsel %vm331_vm2, %v644_v10, %v1024_v46  ;;  %v659_v41 = vsel %vm199_vm7, %v6591_v14, %v657_v20  ;;  %v721_v37 = vsel %vm196_vm6, %v6348_v34, %v720_v4  ;;  %v7661_v34 = vld [vmem:[#allocation81_spill] sm:$0xff] }
 0x10a   :  { %v768_v44 = vsel %vm196_vm6, %v7653_v51, %v767_v28  ;;  %1909 = vmatmul.mubr.bf16.gmra.mxu0 %v1127_v18  ;;  %v674_v1 = vpack.c.b16 %v659_v41, %v659_v41  ;;  %v722_v17 = vsel %vm199_vm7, %v7654_v23, %v721_v37  ;;  %v821_v10 = vsel %vm187_vm3, %v7657_v62, %v7656_v40  ;;  %v7658_v41 = vld [vmem:[#allocation77_spill] sm:$0xff]  ;;  %v7659_v37 = vld [vmem:[#allocation78_spill] sm:$0xff]  ;;  %v7660_v23 = vld [vmem:[#allocation80_spill] sm:$0xff] }
 0x10b   :  { %v769_v52 = vsel %vm199_vm7, %v7655_v38, %v768_v44  ;;  %v730_v46 = vpack.c.b16 %v728_v33, %v722_v17  ;;  %v822_v4 = vsel %vm190_vm4, %v7624_v8, %v821_v10  ;;  %v827_v28 = vsel %vm181_vm0, %v6432_v56, %v6429_v48  ;;  %v7662_v10 = vld [vmem:[#allocation82_spill] sm:$0xff]  ;;  %v7663_v48 = vld [vmem:[#allocation31_spill] sm:$0xff] }
 0x10c   :  { %v773_v20 = vpack.c.b16 %v771_v27, %v769_v52  ;;  %v823_v18 = vsel %vm193_vm5, %v6411_v53, %v822_v4  ;;  %v779_v44 = vsel %vm187_vm3, %v7659_v37, %v7658_v41  ;;  %v785_v62 = vsel %vm181_vm0, %v7661_v34, %v7660_v23  ;;  %v7665_v40 = vld [vmem:[#allocation79_spill] sm:$0xff] }
 0x10d   :  { %v835_v52 = vsel %vm187_vm3, %v6458_v24, %v6451_v26  ;;  %v1026_v33 = vrot.slane %v730_v46, 5  ;;  %v824_v27 = vsel %vm196_vm6, %v6419_v19, %v823_v18  ;;  %v780_v4 = vsel %vm190_vm4, %v7662_v10, %v779_v44  ;;  %v4551_v24 = vld [vmem:[#allocation7 + $0x140] ss:$8 sps:$4 sm:$0xff]   ;;  %v4553_v26 = vld [vmem:[#allocation7 + $0x144] ss:$8 sps:$4 sm:$0xff]  }
 0x10e   :  { %v1033_v17 = vrot.slane %v773_v20, 1  ;;  %v825_v56 = vsel %vm199_vm7, %v6422_v59, %v824_v27  ;;  %v781_v53 = vsel %vm193_vm5, %v7663_v48, %v780_v4  ;;  %v836_v8 = vsel %vm190_vm4, %v6465_v35, %v835_v52  ;;  %v7664_v19 = vld [vmem:[#allocation83_spill] sm:$0xff]  ;;  %v7667_v35 = vld [vmem:[#allocation97_spill] sm:$0xff]  ;;  %2514 = vmatprep.subr.bf16.mxu1 %v4553_v26 }
 0x10f   :  { %v841_v46 = vsel %vm181_vm0, %v6489_v11, %v6486_v42  ;;  %v1135_v20 = vsel %vm331_vm2, %v674_v1, %v1026_v33  ;;  %v829_v18 = vpack.c.b16 %v827_v28, %v825_v56  ;;  %v782_v44 = vsel %vm196_vm6, %v7664_v19, %v781_v53  ;;  %v4554_v59 = vld [vmem:[#allocation7 + $0x20] ss:$8 sps:$4 sm:$0xff]   ;;  %v4556_v4 = vld [vmem:[#allocation7 + $0x24] ss:$8 sps:$4 sm:$0xff]   ;;  %2515 = vmatpush1.bf16.msra.mxu1 %v4551_v24 }
 0x110   :  { %v837_v27 = vsel %vm193_vm5, %v7618_v50, %v836_v8  ;;  %1981 = vmatmul.mubr.bf16.gmra.mxu1 %v1135_v20  ;;  %v783_v52 = vsel %vm199_vm7, %v7665_v40, %v782_v44  ;;  %v7666_v42 = vld [vmem:[#allocation96_spill] sm:$0xff]  ;;  %v7669_v28 = vld [vmem:[#allocation23_spill] sm:$0xff]  ;;  %2465 = vmatprep.subr.bf16.mxu0 %v4556_v4  ;;  %v816_v34 = vsel %vm187_vm3, %v6507_v0, %v6504_v7  ;;  %v4559_v4 = vld [vmem:[#allocation7 + $0x134] ss:$8 sps:$4 sm:$0xff]  }
 0x111   :  { %v838_v11 = vsel %vm196_vm6, %v6468_v61, %v837_v27  ;;  %v760_v1 = vsel %vm187_vm3, %v7667_v35, %v7666_v42  ;;  %v7668_v56 = vld [vmem:[#allocation20_spill] sm:$0xff]  ;;  %v1041_v33 = vrot.slane %v829_v18, 5  ;;  %v787_v3 = vpack.c.b16 %v785_v62, %v783_v52  ;;  %v7670_v20 = vld [vmem:[#allocation71_spill] sm:$0xff]  ;;  %v7671_v27 = vld [vmem:[#allocation93_spill] sm:$0xff]  ;;  %2466 = vmatpush1.bf16.msra.mxu0 %v4554_v59  ;;  %2516 = vmatprep.subr.bf16.mxu1 %v4559_v4 }
 0x112   :  { %v770_v53 = vsel %vm181_vm0, %v7669_v28, %v7668_v56  ;;  %v839_v8 = vsel %vm199_vm7, %v6480_v58, %v838_v11  ;;  %v761_v50 = vsel %vm190_vm4, %v7670_v20, %v760_v1  ;;  %v826_v62 = vsel %vm181_vm0, %v6540_v25, %v6537_v30  ;;  %v7672_v52 = vld [vmem:[#allocation94_spill] sm:$0xff]  ;;  %v4563_v4 = vld [vmem:[#allocation7 + $0x120] ss:$8 sps:$4 sm:$0xff]  }
 0x113   :  { %v843_v44 = vpack.c.b16 %v841_v46, %v839_v8  ;;  %v762_v61 = vsel %vm193_vm5, %v7671_v27, %v761_v50  ;;  %v1163_v11 = vsel %vm331_vm2, %v1033_v17, %v1041_v33  ;;  %v1035_v18 = vrot.slane %v787_v3, 1  ;;  %v4557_v50 = vld [vmem:[#allocation7 + $0x130] ss:$8 sps:$4 sm:$0xff]   ;;  %v7673_v8 = vld [vmem:[#allocation95_spill] sm:$0xff] }
 0x114   :  { %v763_v26 = vsel %vm196_vm6, %v7672_v52, %v762_v61  ;;  %v817_v46 = vsel %vm190_vm4, %v7641_v43, %v816_v34  ;;  %1916 = vmatprep.mubr.bf16.mxu0 %v1163_v11  ;;  %v7674_v25 = vld [vmem:[#allocation54_spill] sm:$0xff]  ;;  %v7678_v43 = vld [vmem:[#allocation72_spill] sm:$0xff]  ;;  %2517 = vmatpush1.bf16.msra.mxu1 %v4557_v50 }
 0x115   :  { %v1043_v1 = vrot.slane %v843_v44, 5  ;;  %v764_v58 = vsel %vm199_vm7, %v7673_v8, %v763_v26  ;;  %v818_v24 = vsel %vm193_vm5, %v6515_v32, %v817_v46  ;;  %v7675_v17 = vld [vmem:[#allocation62_spill] sm:$0xff] }
 0x116   :  { %v774_v3 = vsel %vm187_vm3, %v7675_v17, %v7674_v25  ;;  %v4560_v33 = vld [vmem:[#allocation7 + $0x10] ss:$8 sps:$4 sm:$0xff]   ;;  %v4562_v61 = vld [vmem:[#allocation7 + $0x14] ss:$8 sps:$4 sm:$0xff]   ;;  %v772_v30 = vpack.c.b16 %v770_v53, %v764_v58  ;;  %v819_v34 = vsel %vm196_vm6, %v6525_v54, %v818_v24  ;;  %v830_v58 = vsel %vm187_vm3, %v6558_v47, %v6551_v60 }
 0x117   :  { %v7676_v59 = vld [vmem:[#allocation46_spill] sm:$0xff]  ;;  %v1171_v46 = vsel %vm331_vm2, %v1035_v18, %v1043_v1  ;;  %v820_v32 = vsel %vm199_vm7, %v6532_v9, %v819_v34  ;;  %2467 = vmatprep.subr.bf16.mxu0 %v4562_v61  ;;  %v831_v18 = vsel %vm190_vm4, %v6565_v13, %v830_v58  ;;  %v4565_v1 = vld [vmem:[#allocation7 + $0x124] ss:$8 sps:$4 sm:$0xff]   ;;  %v7680_v34 = vld [vmem:[#allocation65_spill] sm:$0xff] }
 0x118   :  { %v775_v11 = vsel %vm190_vm4, %v7676_v59, %v774_v3  ;;  %v7677_v44 = vld [vmem:[#allocation66_spill] sm:$0xff]  ;;  %1988 = vmatprep.mubr.bf16.mxu1 %v1171_v46  ;;  %v828_v53 = vpack.c.b16 %v826_v62, %v820_v32  ;;  %v1032_v24 = vrot.slane %v772_v30, 1  ;;  %v7679_v3 = vld [vmem:[#allocation63_spill] sm:$0xff]  ;;  %v832_v9 = vsel %vm193_vm5, %v7637_v6, %v831_v18  ;;  %v7681_v30 = vld [vmem:[#allocation28_spill] sm:$0xff]  ;;  %2468 = vmatpush1.bf16.msra.mxu0 %v4560_v33 }
 0x119   :  { %v784_v26 = vsel %vm181_vm0, %v6395_v49, %v7677_v44  ;;  %v776_v0 = vsel %vm193_vm5, %v7678_v43, %v775_v11  ;;  %v840_v32 = vsel %vm181_vm0, %v6591_v14, %v6588_v45  ;;  %v7682_v62 = vld [vmem:[#allocation36_spill] sm:$0xff]  ;;  %v833_v58 = vsel %vm196_vm6, %v6568_v39, %v832_v9  ;;  %2518 = vmatprep.subr.bf16.mxu1 %v4565_v1  ;;  %v7683_v14 = vld [vmem:[#allocation37_spill] sm:$0xff]  ;;  %v7686_v1 = vld [vmem:[#allocation87_spill] sm:$0xff] }
 0x11a   :  { %v777_v54 = vsel %vm196_vm6, %v7679_v3, %v776_v0  ;;  %v875_v0 = vsel %vm193_vm5, %v7682_v62, %v7681_v30  ;;  %v4568_v61 = vld [vmem:[#allocation7 + $0x4] ss:$8 sps:$4 sm:$0xff]   ;;  %v1040_v46 = vrot.slane %v828_v53, 5  ;;  %v4566_v18 = vld [vmem:[#allocation7] ss:$8 sps:$4 sm:$0xff]   ;;  %v834_v6 = vsel %vm199_vm7, %v6583_v57, %v833_v58  ;;  %v7684_v13 = vld [vmem:[#allocation41_spill] sm:$0xff]  ;;  %2519 = vmatpush1.bf16.msra.mxu1 %v4563_v4 }
 0x11b   :  { %v778_v11 = vsel %vm199_vm7, %v7680_v34, %v777_v54  ;;  %v876_v54 = vsel %vm196_vm6, %v7556_v22, %v875_v0  ;;  %v7685_v30 = vld [vmem:[#allocation42_spill] sm:$0xff]  ;;  %2469 = vmatprep.subr.bf16.mxu0 %v4568_v61  ;;  %v842_v22 = vpack.c.b16 %v840_v32, %v834_v6 }
 0x11c   :  { %v786_v50 = vpack.c.b16 %v784_v26, %v778_v11  ;;  %v877_v45 = vsel %vm199_vm7, %v7683_v14, %v876_v54  ;;  %v881_v33 = vsel %vm181_vm0, %v7685_v30, %v7684_v13  ;;  %v931_v26 = vsel %vm193_vm5, %v6151_v12, %v6146_v29  ;;  %v4569_v62 = vld [vmem:[#allocation7 + $0x110] ss:$8 sps:$4 sm:$0xff]   ;;  %v4571_v0 = vld [vmem:[#allocation7 + $0x114] ss:$8 sps:$4 sm:$0xff]   ;;  %v7688_v12 = vld [vmem:[#allocation91_spill] sm:$0xff]  ;;  %2470 = vmatpush1.bf16.msra.mxu0 %v4566_v18 }
 0x11d   :  { %v1159_v9 = vsel %vm331_vm2, %v1032_v24, %v1040_v46  ;;  %v882_v11 = vsel %vm184_vm1, %v7686_v1, %v881_v33  ;;  %v7687_v14 = vld [vmem:[#allocation38_spill] sm:$0xff]  ;;  %v932_v13 = vsel %vm196_vm6, %v7567_v5, %v931_v26  ;;  %v937_v29 = vsel %vm181_vm0, %v7655_v38, %v7653_v51  ;;  %2520 = vmatprep.subr.bf16.mxu1 %v4571_v0  ;;  %v7692_v33 = vld [vmem:[#allocation92_spill] sm:$0xff] }
 0x11e   :  { %v1034_v53 = vrot.slane %v786_v50, 1  ;;  %1917 = vmatmul.mubr.bf16.gmra.mxu0 %v1159_v9  ;;  %v883_v58 = vsel %vm187_vm3, %v7687_v14, %v882_v11  ;;  %v872_v6 = vsel %vm193_vm5, %v7688_v12, %v6258_v21  ;;  %v4574_v24 = vld [vmem:[#allocation7 + $0xf4] ss:$8 sps:$4 sm:$0xff]   ;;  %v1042_v32 = vrot.slane %v842_v22, 5  ;;  %v4572_v5 = vld [vmem:[#allocation7 + $0xf0] ss:$8 sps:$4 sm:$0xff]   ;;  %2521 = vmatpush1.bf16.msra.mxu1 %v4569_v62 }
 0x11f   :  { %v885_v4 = vpack.c.b16 %v883_v58, %v877_v45  ;;  %v933_v61 = vsel %vm199_vm7, %v6154_v31, %v932_v13  ;;  %v938_v46 = vsel %vm184_vm1, %v7651_v63, %v937_v29  ;;  %v873_v38 = vsel %vm196_vm6, %v7589_v15, %v872_v6  ;;  %2471 = vmatprep.subr.bf16.mxu0 %v4574_v24  ;;  %v7695_v1 = vld [vmem:[#allocation50_spill] sm:$0xff]  ;;  %v7696_v14 = vld [vmem:[#allocation17_spill] sm:$0xff]  ;;  %v7697_v58 = vld [vmem:[#allocation51_spill] sm:$0xff] }
 0x120   :  { %v939_v50 = vsel %vm187_vm3, %v7652_v36, %v938_v46  ;;  %v878_v21 = vsel %vm181_vm0, %v6275_v2, %v6272_v55  ;;  %v928_v31 = vsel %vm193_vm5, %v7667_v35, %v7666_v42  ;;  %v1167_v45 = vsel %vm331_vm2, %v1034_v53, %v1042_v32  ;;  %v7689_v36 = vld [vmem:[#allocation70_spill] sm:$0xff]  ;;  %v7690_v35 = vld [vmem:[#allocation48_spill] sm:$0xff]  ;;  %2472 = vmatpush2.bf16.msra.mxu0 %v4572_v5  ;;  %v7694_v53 = vld [vmem:[#allocation49_spill] sm:$0xff] }
 0x121   :  { %v941_v63 = vpack.c.b16 %v939_v50, %v933_v61  ;;  %v1049_v51 = vrot.slane %v885_v4, 2  ;;  %v874_v54 = vsel %vm199_vm7, %v6266_v16, %v873_v38  ;;  %1989 = vmatmul.mubr.bf16.gmra.mxu1 %v1167_v45  ;;  %v879_v15 = vsel %vm184_vm1, %v7689_v36, %v878_v21  ;;  %v7691_v42 = vld [vmem:[#allocation52_spill] sm:$0xff]  ;;  %v7698_v29 = vld [vmem:[#allocation69_spill] sm:$0xff]  ;;  %v7702_v21 = vld [vmem:[#allocation27_spill] sm:$0xff] }
 0x122   :  { %v929_v55 = vsel %vm196_vm6, %v7670_v20, %v928_v31  ;;  %v934_v2 = vsel %vm181_vm0, %v7673_v8, %v7672_v52  ;;  %v889_v18 = vsel %vm193_vm5, %v7691_v42, %v7690_v35  ;;  %v880_v16 = vsel %vm187_vm3, %v7692_v33, %v879_v15  ;;  %v7693_v52 = vld [vmem:[#allocation53_spill] sm:$0xff]  ;;  %v7700_v38 = vld [vmem:[#allocation24_spill] sm:$0xff] }
 0x123   :  { %v1057_v30 = vrot.slane %v941_v63, 6  ;;  %v930_v26 = vsel %vm199_vm7, %v7671_v27, %v929_v55  ;;  %v935_v9 = vsel %vm184_vm1, %v7668_v56, %v934_v2  ;;  %v884_v20 = vpack.c.b16 %v880_v16, %v874_v54  ;;  %v7699_v5 = vld [vmem:[#allocation81_spill] sm:$0xff]  ;;  %v7704_v63 = vld [vmem:[#allocation26_spill] sm:$0xff]  ;;  %v7706_v54 = vld [vmem:[#allocation43_spill] sm:$0xff] }
 0x124   :  { %v936_v22 = vsel %vm187_vm3, %v7669_v28, %v935_v9  ;;  %v890_v8 = vsel %vm196_vm6, %v7693_v52, %v889_v18  ;;  %v895_v11 = vsel %vm181_vm0, %v7695_v1, %v7694_v53  ;;  %v945_v12 = vsel %vm193_vm5, %v7659_v37, %v7658_v41  ;;  %v7701_v41 = vld [vmem:[#allocation25_spill] sm:$0xff]  ;;  %v7712_v52 = vld [vmem:[#allocation55_spill] sm:$0xff] }
 0x125   :  { %v1195_v62 = vsel %vm331_vm2, %v1049_v51, %v1057_v30  ;;  %v940_v0 = vpack.c.b16 %v936_v22, %v930_v26  ;;  %v891_v27 = vsel %vm199_vm7, %v7696_v14, %v890_v8  ;;  %v896_v56 = vsel %vm184_vm1, %v7697_v58, %v895_v11  ;;  %v7707_v35 = vld [vmem:[#allocation45_spill] sm:$0xff]  ;;  %v7709_v26 = vld [vmem:[#allocation67_spill] sm:$0xff]  ;;  %v7711_v22 = vld [vmem:[#allocation84_spill] sm:$0xff] }
 0x126   :  { %1924 = vmatprep.mubr.bf16.mxu0 %v1195_v62  ;;  %v1048_v13 = vrot.slane %v884_v20, 2  ;;  %v897_v28 = vsel %vm187_vm3, %v7698_v29, %v896_v56  ;;  %v951_v6 = vsel %vm181_vm0, %v7665_v40, %v7664_v19  ;;  %v946_v4 = vsel %vm196_vm6, %v7662_v10, %v945_v12  ;;  %v7703_v40 = vld [vmem:[#allocation44_spill] sm:$0xff]  ;;  %v7716_v14 = vld [vmem:[#allocation85_spill] sm:$0xff]  ;;  %v7717_v58 = vld [vmem:[#allocation119_spill] sm:$0xff] }
 0x127   :  { %v1056_v24 = vrot.slane %v940_v0, 6  ;;  %v899_v32 = vpack.c.b16 %v897_v28, %v891_v27  ;;  %v952_v61 = vsel %vm184_vm1, %v7660_v23, %v951_v6  ;;  %v947_v46 = vsel %vm199_vm7, %v7663_v48, %v946_v4  ;;  %v7705_v48 = vld [vmem:[#allocation57_spill] sm:$0xff]  ;;  %v7710_v20 = vld [vmem:[#allocation100_spill] sm:$0xff]  ;;  %v7719_v29 = vld [vmem:[#allocation111_spill] sm:$0xff] }
 0x128   :  { %v953_v50 = vsel %vm187_vm3, %v7699_v5, %v952_v61  ;;  %v886_v37 = vsel %vm193_vm5, %v7701_v41, %v7700_v38  ;;  %v892_v19 = vsel %vm181_vm0, %v7703_v40, %v7702_v21  ;;  %v942_v15 = vsel %vm193_vm5, %v7675_v17, %v7674_v25  ;;  %v7708_v17 = vld [vmem:[#allocation64_spill] sm:$0xff]  ;;  %v7720_v6 = vld [vmem:[#allocation110_spill] sm:$0xff] }
 0x129   :  { %v1191_v31 = vsel %vm331_vm2, %v1048_v13, %v1056_v24  ;;  %v955_v10 = vpack.c.b16 %v953_v50, %v947_v46  ;;  %v1051_v45 = vrot.slane %v899_v32, 2  ;;  %v887_v23 = vsel %vm196_vm6, %v7704_v63, %v886_v37  ;;  %v7715_v11 = vld [vmem:[#allocation108_spill] sm:$0xff]  ;;  %v7718_v13 = vld [vmem:[#allocation99_spill] sm:$0xff]  ;;  %v7722_v61 = vld [vmem:[#allocation86_spill] sm:$0xff] }
 0x12a   :  { %1925 = vmatmul.mubr.bf16.gmra.mxu0 %v1191_v31  ;;  %v888_v51 = vsel %vm199_vm7, %v7705_v48, %v887_v23  ;;  %v893_v36 = vsel %vm184_vm1, %v7706_v54, %v892_v19  ;;  %v948_v55 = vsel %vm181_vm0, %v7680_v34, %v7679_v3  ;;  %v943_v18 = vsel %vm196_vm6, %v7676_v59, %v942_v15  ;;  %v7721_v32 = vld [vmem:[#allocation112_spill] sm:$0xff]  ;;  %v7724_v50 = vld [vmem:[#allocation114_spill] sm:$0xff]  ;;  %v7729_v23 = vld [vmem:[#allocation107_spill] sm:$0xff] }
 0x12b   :  { %v1059_v2 = vrot.slane %v955_v10, 6  ;;  %v894_v42 = vsel %vm187_vm3, %v7707_v35, %v893_v36  ;;  %v949_v30 = vsel %vm184_vm1, %v7677_v44, %v948_v55  ;;  %v944_v16 = vsel %vm199_vm7, %v7678_v43, %v943_v18  ;;  %v7713_v43 = vld [vmem:[#allocation68_spill] sm:$0xff]  ;;  %v7725_v41 = vld [vmem:[#allocation90_spill] sm:$0xff]  ;;  %v7731_v35 = vld [vmem:[#allocation115_spill] sm:$0xff] }
 0x12c   :  { %v898_v33 = vpack.c.b16 %v894_v42, %v888_v51  ;;  %v950_v25 = vsel %vm187_vm3, %v6395_v49, %v949_v30  ;;  %v987_v3 = vsel %vm193_vm5, %v7709_v26, %v7708_v17  ;;  %v993_v44 = vsel %vm181_vm0, %v7712_v52, %v7711_v22  ;;  %v7714_v49 = vld [vmem:[#allocation88_spill] sm:$0xff]  ;;  %v7726_v21 = vld [vmem:[#allocation98_spill] sm:$0xff]  ;;  %v7730_v51 = vld [vmem:[#allocation109_spill] sm:$0xff] }
 0x12d   :  { %v1203_v34 = vsel %vm331_vm2, %v1051_v45, %v1059_v2  ;;  %v954_v9 = vpack.c.b16 %v950_v25, %v944_v16  ;;  %v988_v59 = vsel %vm196_vm6, %v7710_v20, %v987_v3  ;;  %v994_v1 = vsel %vm184_vm1, %v7714_v49, %v993_v44  ;;  %v7727_v40 = vld [vmem:[#allocation106_spill] sm:$0xff]  ;;  %v7728_v45 = vld [vmem:[#allocation101_spill] sm:$0xff]  ;;  %v7734_v25 = vld [vmem:[#allocation116_spill] sm:$0xff] }
 0x12e   :  { %1996 = vmatprep.mubr.bf16.mxu1 %v1203_v34  ;;  %v1050_v8 = vrot.slane %v898_v33, 2  ;;  %v989_v53 = vsel %vm199_vm7, %v7713_v43, %v988_v59  ;;  %v984_v62 = vsel %vm193_vm5, %v7715_v11, %v6504_v7  ;;  %v995_v27 = vsel %vm187_vm3, %v7716_v14, %v994_v1  ;;  %v7723_v7 = vld [vmem:[#allocation89_spill] sm:$0xff]  ;;  %v7733_v33 = vld [vmem:[#allocation120_spill] sm:$0xff] }
 0x12f   :  { %v1058_v0 = vrot.slane %v954_v9, 6  ;;  %v985_v56 = vsel %vm196_vm6, %v7717_v58, %v984_v62  ;;  %v990_v28 = vsel %vm181_vm0, %v7719_v29, %v7718_v13  ;;  %v997_v12 = vpack.c.b16 %v995_v27, %v989_v53  ;;  %v7732_v18 = vld [vmem:[#allocation113_spill] sm:$0xff]  ;;  %v4577_v26 = vld [vmem:[#allocation7 + $0x104] ss:$8 sps:$4 sm:$0xff]   ;;  %v4578_v3 = vld [vmem:[#allocation7 + $0xe0] ss:$8 sps:$4 sm:$0xff]  }
 0x130   :  { %v986_v24 = vsel %vm199_vm7, %v7720_v6, %v985_v56  ;;  %v991_v4 = vsel %vm184_vm1, %v7721_v32, %v990_v28  ;;  %v1001_v46 = vsel %vm193_vm5, %v7723_v7, %v7722_v61  ;;  %v1007_v19 = vsel %vm181_vm0, %v7727_v40, %v7726_v21  ;;  %v4580_v34 = vld [vmem:[#allocation7 + $0xe4] ss:$8 sps:$4 sm:$0xff]   ;;  %2522 = vmatprep.subr.bf16.mxu1 %v4577_v26  ;;  %v4581_v9 = vld [vmem:[#allocation7 + $0x1f0] ss:$8 sps:$4 sm:$0xff]   ;;  %v4583_v20 = vld [vmem:[#allocation7 + $0x1f4] ss:$8 sps:$4 sm:$0xff]  }
 0x131   :  { %v1199_v5 = vsel %vm331_vm2, %v1050_v8, %v1058_v0  ;;  %v992_v38 = vsel %vm187_vm3, %v7724_v50, %v991_v4  ;;  %v1002_v37 = vsel %vm196_vm6, %v7725_v41, %v1001_v46  ;;  %v1065_v31 = vrot.slane %v997_v12, 2  ;;  %2473 = vmatprep.subr.bf16.mxu0 %v4580_v34  ;;  %v4584_v59 = vld [vmem:[#allocation7 + $0xd0] ss:$8 sps:$4 sm:$0xff]   ;;  %v4586_v22 = vld [vmem:[#allocation7 + $0xd4] ss:$8 sps:$4 sm:$0xff]  }
 0x132   :  { %1997 = vmatmul.mubr.bf16.gmra.mxu1 %v1199_v5  ;;  %v996_v10 = vpack.c.b16 %v992_v38, %v986_v24  ;;  %v1003_v63 = vsel %vm199_vm7, %v7728_v45, %v1002_v37  ;;  %v1008_v48 = vsel %vm184_vm1, %v7729_v23, %v1007_v19  ;;  %v998_v36 = vsel %vm193_vm5, %v6558_v47, %v6551_v60  ;;  %v6908_v8 = vld [vmem:[%s7023_s2] ss:$0 sm:$0xff]  ;;  %v4589_v27 = vld [vmem:[#allocation7 + $0x1e4] ss:$8 sps:$4 sm:$0xff]   ;;  %v4593_v4 = vld [vmem:[#allocation7 + $0x1d0] ss:$8 sps:$4 sm:$0xff]  }
 0x133   :  { %v1009_v54 = vsel %vm187_vm3, %v7730_v51, %v1008_v48  ;;  %v1004_v15 = vsel %vm181_vm0, %v6583_v57, %v6568_v39  ;;  %1932 = vmatprep.mubr.bf16.mxu0 %v1065_v31  ;;  %v999_v42 = vsel %vm196_vm6, %v7731_v35, %v998_v36  ;;  %v4575_v57 = vld [vmem:[#allocation7 + $0x100] ss:$8 sps:$4 sm:$0xff]   ;;  %2474 = vmatpush2.bf16.msra.mxu0 %v4578_v3  ;;  %v4592_v13 = vld [vmem:[#allocation7 + $0xc4] ss:$8 sps:$4 sm:$0xff]   ;;  %v4595_v61 = vld [vmem:[#allocation7 + $0x1d4] ss:$8 sps:$4 sm:$0xff]  }
 0x134   :  { %v1064_v55 = vrot.slane %v996_v10, 2  ;;  %v1011_v2 = vpack.c.b16 %v1009_v54, %v1003_v63  ;;  %v1005_v30 = vsel %vm184_vm1, %v7732_v18, %v1004_v15  ;;  %v1000_v16 = vsel %vm199_vm7, %v7733_v33, %v999_v42  ;;  %2523 = vmatpush1.bf16.msra.mxu1 %v4575_v57  ;;  %2475 = vmatprep.subr.bf16.mxu0 %v4586_v22  ;;  %v4587_v14 = vld [vmem:[#allocation7 + $0x1e0] ss:$8 sps:$4 sm:$0xff]   ;;  %v4596_v7 = vld [vmem:[#allocation7 + $0xb0] ss:$8 sps:$4 sm:$0xff]  }
 0x135   :  { %v1006_v17 = vsel %vm187_vm3, %v7734_v25, %v1005_v30  ;;  %2524 = vmatprep.subr.bf16.mxu1 %v4583_v20  ;;  %v4590_v58 = vld [vmem:[#allocation7 + $0xc0] ss:$8 sps:$4 sm:$0xff]   ;;  %v4598_v46 = vld [vmem:[#allocation7 + $0xb4] ss:$8 sps:$4 sm:$0xff]   ;;  %v4601_v50 = vld [vmem:[#allocation7 + $0x1c4] ss:$8 sps:$4 sm:$0xff]  }
 0x136   :  { %1933 = vmatmul.mubr.bf16.gmra.mxu0 %v1064_v55  ;;  %v1067_v60 = vrot.slane %v1011_v2, 2  ;;  %v1010_v47 = vpack.c.b16 %v1006_v17, %v1000_v16  ;;  %v4599_v5 = vld [vmem:[#allocation7 + $0x1c0] ss:$8 sps:$4 sm:$0xff]   ;;  %v4604_v41 = vld [vmem:[#allocation7 + $0xa4] ss:$8 sps:$4 sm:$0xff]  }
 0x137   :  { %2476 = vmatpush2.bf16.msra.mxu0 %v4584_v59  ;;  %v4602_v38 = vld [vmem:[#allocation7 + $0xa0] ss:$8 sps:$4 sm:$0xff]   ;;  %v4605_v37 = vld [vmem:[#allocation7 + $0x1b0] ss:$8 sps:$4 sm:$0xff]   ;;  %v4607_v21 = vld [vmem:[#allocation7 + $0x1b4] ss:$8 sps:$4 sm:$0xff]  }
 0x138   :  { %2004 = vmatprep.mubr.bf16.mxu1 %v1067_v60  ;;  %v1066_v39 = vrot.slane %v1010_v47, 2  ;;  %2525 = vmatpush2.bf16.msra.mxu1 %v4581_v9  ;;  %v4608_v40 = vld [vmem:[#allocation7 + $0x90] ss:$8 sps:$4 sm:$0xff]   ;;  %v4610_v31 = vld [vmem:[#allocation7 + $0x94] ss:$8 sps:$4 sm:$0xff]  }
 0x139   :  { %2526 = vmatprep.subr.bf16.mxu1 %v4589_v27  ;;  %2477 = vmatprep.subr.bf16.mxu0 %v4592_v13  ;;  %v4611_v63 = vld [vmem:[#allocation7 + $0x1a0] ss:$8 sps:$4 sm:$0xff]   ;;  %v4613_v23 = vld [vmem:[#allocation7 + $0x1a4] ss:$8 sps:$4 sm:$0xff]   ;;  %v4619_v42 = vld [vmem:[#allocation7 + $0x194] ss:$8 sps:$4 sm:$0xff]  }
 0x13a   :  { %2005 = vmatmul.mubr.bf16.gmra.mxu1 %v1066_v39  ;;  %v4614_v48 = vld [vmem:[#allocation7 + $0x80] ss:$8 sps:$4 sm:$0xff]   ;;  %v4616_v54 = vld [vmem:[#allocation7 + $0x84] ss:$8 sps:$4 sm:$0xff]   ;;  %v4617_v30 = vld [vmem:[#allocation7 + $0x190] ss:$8 sps:$4 sm:$0xff]  }
 0x13b   :  { %2478 = vmatpush2.bf16.msra.mxu0 %v4590_v58  ;;  %v4622_v60 = vld [vmem:[#allocation7 + $0x184] ss:$8 sps:$4 sm:$0xff]   ;;  %v4620_v39 = vld [vmem:[#allocation7 + $0x180] ss:$8 sps:$4 sm:$0xff]   ;;  %v4628_v27 = vld [vmem:[#allocation8 + $0x174] ss:$8 sps:$4 sm:$0xff]  }
 0x13c   :  { %2527 = vmatpush2.bf16.msra.mxu1 %v4587_v14  ;;  %2479 = vmatprep.subr.bf16.mxu0 %v4598_v46  ;;  %v4625_v14 = vld [vmem:[#allocation8 + $0x74] ss:$8 sps:$4 sm:$0xff]  }
 0x13d   :  { %2528 = vmatprep.subr.bf16.mxu1 %v4595_v61 }
 0x13f   :  { %2480 = vmatpush2.bf16.msra.mxu0 %v4596_v7 }
 0x140   :  { %2529 = vmatpush2.bf16.msra.mxu1 %v4593_v4  ;;  %2481 = vmatprep.subr.bf16.mxu0 %v4604_v41 }
 0x141   :  { %2530 = vmatprep.subr.bf16.mxu1 %v4601_v50 }
 0x143   :  { %2482 = vmatpush2.bf16.msra.mxu0 %v4602_v38 }
 0x144   :  { %2531 = vmatpush2.bf16.msra.mxu1 %v4599_v5  ;;  %2483 = vmatprep.subr.bf16.mxu0 %v4610_v31 }
 0x145   :  { %2532 = vmatprep.subr.bf16.mxu1 %v4607_v21 }
 0x147   :  { %2484 = vmatpush2.bf16.msra.mxu0 %v4608_v40 }
 0x148   :  { %v4198_v52 = vpop.f32.mrf.mxu0  ;;  %2533 = vmatpush2.bf16.msra.mxu1 %v4605_v37  ;;  %2485 = vmatprep.subr.bf16.mxu0 %v4616_v54 }
 0x149   :  { %2534 = vmatprep.subr.bf16.mxu1 %v4613_v23 }
 0x14a   :  { %v4199_v44 = vpop.f32.mrf.mxu0 }
 0x14b   :  { %v4200_v43 = vadd.f32 %v4199_v44, %v4198_v52  ;;  %2486 = vmatpush2.bf16.msra.mxu0 %v4614_v48 }
 0x14c   :  { %v4201_v53 = vpop.f32.mrf.mxu0  ;;  %2535 = vmatpush2.bf16.msra.mxu1 %v4611_v63  ;;  %3365 = vmatprep.subr.bf16.mxu0 %v4625_v14 }
 0x14d   :  { %v4244_v49 = vpop.f32.mrf.mxu1  ;;  %v1759_v1 = vadd.f32 %v4200_v43, %v6908_v8  ;;  %2536 = vmatprep.subr.bf16.mxu1 %v4619_v42 }
 0x14e   :  { %v4202_v11 = vpop.f32.mrf.mxu0 }
 0x14f   :  { %v4245_v62 = vpop.f32.mrf.mxu1  ;;  %v4203_v0 = vadd.f32 %v4202_v11, %v4201_v53 }
 0x150   :  { %v4246_v56 = vadd.f32 %v4245_v62, %v4244_v49  ;;  %2537 = vmatpush2.bf16.msra.mxu1 %v4617_v30 }
 0x151   :  { %v4247_v29 = vpop.f32.mrf.mxu1  ;;  %v1762_v12 = vadd.f32 %v4203_v0, %v6908_v8  ;;  %2538 = vmatprep.subr.bf16.mxu1 %v4622_v60 }
 0x152   :  { %v6911_v28 = vadd.f32 %v4246_v56, %v1759_v1 }
 0x153   :  { %v4248_v6 = vpop.f32.mrf.mxu1 }
 0x154   :  { %v4249_v24 = vadd.f32 %v4248_v6, %v4247_v29  ;;  %2539 = vmatpush2.bf16.msra.mxu1 %v4620_v39 }
 0x155   :  { %3406 = vmatprep.subr.bf16.mxu1 %v4628_v27 }
 0x156   :  { %v6914_v32 = vadd.f32 %v4249_v24, %v1762_v12 }
 0x168   :  { %v4204_v19 = vpop.f32.mrf.mxu0 }
 0x16a   :  { %v4205_v10 = vpop.f32.mrf.mxu0 }
 0x16b   :  { %v4206_v45 = vadd.f32 %v4205_v10, %v4204_v19 }
 0x16c   :  { %v4207_v51 = vpop.f32.mrf.mxu0 }
 0x16d   :  { %v1767_v55 = vadd.f32 %v4206_v45, %v6908_v8 }
 0x16e   :  { %v4250_v36 = vpop.f32.mrf.mxu1  ;;  %v4208_v15 = vpop.f32.mrf.mxu0 }
 0x16f   :  { %v4209_v2 = vadd.f32 %v4208_v15, %v4207_v51 }
 0x170   :  { %v4251_v35 = vpop.f32.mrf.mxu1 }
 0x171   :  { %v4252_v18 = vadd.f32 %v4251_v35, %v4250_v36  ;;  %v1770_v25 = vadd.f32 %v4209_v2, %v6908_v8 }
 0x172   :  { %v4253_v33 = vpop.f32.mrf.mxu1 }
 0x173   :  { %v6917_v16 = vadd.f32 %v4252_v18, %v1767_v55 }
 0x174   :  { %v4254_v17 = vpop.f32.mrf.mxu1 }
 0x175   :  { %v4255_v47 = vadd.f32 %v4254_v17, %v4253_v33 }
 0x177   :  { %v6920_v57 = vadd.f32 %v4255_v47, %v1770_v25 }
 0x17a   :  { %v4210_v26 = vpop.f32.mrf.mxu0 }
 0x17c   :  { %v4211_v3 = vpop.f32.mrf.mxu0 }
 0x17d   :  { %v4212_v34 = vadd.f32 %v4211_v3, %v4210_v26 }
 0x17e   :  { %v4256_v9 = vpop.f32.mrf.mxu1  ;;  %v4213_v20 = vpop.f32.mrf.mxu0 }
 0x17f   :  { %v1775_v59 = vadd.f32 %v4212_v34, %v6908_v8 }
 0x180   :  { %v4257_v22 = vpop.f32.mrf.mxu1  ;;  %v4214_v52 = vpop.f32.mrf.mxu0 }
 0x181   :  { %v4258_v44 = vadd.f32 %v4257_v22, %v4256_v9  ;;  %v4215_v43 = vadd.f32 %v4214_v52, %v4213_v20 }
 0x182   :  { %v4259_v53 = vpop.f32.mrf.mxu1 }
 0x183   :  { %v6923_v49 = vadd.f32 %v4258_v44, %v1775_v59  ;;  %v1778_v1 = vadd.f32 %v4215_v43, %v6908_v8 }
 0x184   :  { %v4260_v11 = vpop.f32.mrf.mxu1 }
 0x185   :  { %v4261_v62 = vadd.f32 %v4260_v11, %v4259_v53 }
 0x187   :  { %v6926_v0 = vadd.f32 %v4261_v62, %v1778_v1 }
 0x18a   :  { %v4216_v58 = vpop.f32.mrf.mxu0 }
 0x18c   :  { %v4217_v56 = vpop.f32.mrf.mxu0 }
 0x18d   :  { %v4218_v13 = vadd.f32 %v4217_v56, %v4216_v58 }
 0x18e   :  { %v4219_v12 = vpop.f32.mrf.mxu0 }
 0x18f   :  { %v4262_v29 = vpop.f32.mrf.mxu1  ;;  %v1783_v6 = vadd.f32 %v4218_v13, %v6908_v8 }
 0x190   :  { %v4220_v4 = vpop.f32.mrf.mxu0 }
 0x191   :  { %v4263_v24 = vpop.f32.mrf.mxu1  ;;  %v4221_v7 = vadd.f32 %v4220_v4, %v4219_v12 }
 0x192   :  { %v4264_v61 = vadd.f32 %v4263_v24, %v4262_v29 }
 0x193   :  { %v4265_v46 = vpop.f32.mrf.mxu1  ;;  %v1786_v50 = vadd.f32 %v4221_v7, %v6908_v8 }
 0x194   :  { %v6929_v5 = vadd.f32 %v4264_v61, %v1783_v6  ;;  %v4222_v41 = vpop.f32.mrf.mxu0 }
 0x195   :  { %v4266_v38 = vpop.f32.mrf.mxu1 }
 0x196   :  { %v4267_v37 = vadd.f32 %v4266_v38, %v4265_v46  ;;  %v4223_v40 = vpop.f32.mrf.mxu0 }
 0x197   :  { %v4268_v21 = vpop.f32.mrf.mxu1  ;;  %v4224_v31 = vadd.f32 %v4223_v40, %v4222_v41  ;;  %v4623_v41 = vld [vmem:[#allocation8 + $0x70] ss:$8 sps:$4 sm:$0xff]  }
 0x198   :  { %v6932_v19 = vadd.f32 %v4267_v37, %v1786_v50  ;;  %v4225_v45 = vpop.f32.mrf.mxu0  ;;  %v4631_v37 = vld [vmem:[#allocation8 + $0x64] ss:$8 sps:$4 sm:$0xff]  }
 0x199   :  { %v4269_v10 = vpop.f32.mrf.mxu1  ;;  %v1791_v63 = vadd.f32 %v4224_v31, %v6908_v8  ;;  %v4629_v45 = vld [vmem:[#allocation8 + $0x60] ss:$8 sps:$4 sm:$0xff]  }
 0x19a   :  { %v4270_v23 = vadd.f32 %v4269_v10, %v4268_v21  ;;  %v4226_v51 = vpop.f32.mrf.mxu0 }
 0x19b   :  { %v4271_v48 = vpop.f32.mrf.mxu1 }
 0x19c   :  { %v6935_v54 = vadd.f32 %v4270_v23, %v1791_v63  ;;  %v4637_v48 = vld [vmem:[#allocation8 + $0x54] ss:$8 sps:$4 sm:$0xff]  }
 0x19d   :  { %v4272_v36 = vpop.f32.mrf.mxu1 }
 0x1b1   :  { %v4290_v15 = vpop.f32.mrf.mxu0 }
 0x1b3   :  { %v4291_v55 = vpop.f32.mrf.mxu0 }
 0x1b4   :  { %v4292_v42 = vadd.f32 %v4291_v55, %v4290_v15 }
 0x1b5   :  { %v4293_v2 = vpop.f32.mrf.mxu0 }
 0x1b6   :  { %v1903_v25 = vadd.f32 %v4292_v42, %v6911_v28  ;;  %v4643_v42 = vld [vmem:[#allocation8 + $0x44] ss:$8 sps:$4 sm:$0xff]  }
 0x1b7   :  { %v4294_v35 = vpop.f32.mrf.mxu0 }
 0x1b8   :  { %v4295_v30 = vadd.f32 %v4294_v35, %v4293_v2  ;;  %v4635_v2 = vld [vmem:[#allocation8 + $0x50] ss:$8 sps:$4 sm:$0xff]  }
 0x1ba   :  { %v4336_v18 = vpop.f32.mrf.mxu1  ;;  %v1906_v8 = vadd.f32 %v4295_v30, %v6914_v32 }
 0x1bc   :  { %v4337_v33 = vpop.f32.mrf.mxu1 }
 0x1bd   :  { %v4338_v60 = vadd.f32 %v4337_v33, %v4336_v18 }
 0x1be   :  { %v4339_v17 = vpop.f32.mrf.mxu1 }
 0x1bf   :  { %v1975_v39 = vadd.f32 %v4338_v60, %v1903_v25  ;;  %v4641_v25 = vld [vmem:[#allocation8 + $0x40] ss:$8 sps:$4 sm:$0xff]  }
 0x1c0   :  { %v4340_v47 = vpop.f32.mrf.mxu1 }
 0x1c1   :  { %v4341_v26 = vadd.f32 %v4340_v47, %v4339_v17  ;;  %v2012_v34 = vmax.f32 %v1975_v39, 0.0  ;;  %v4626_v39 = vld [vmem:[#allocation8 + $0x170] ss:$8 sps:$4 sm:$0xff]  }
 0x1c3   :  { %v1978_v3 = vadd.f32 %v4341_v26, %v1906_v8 }
 0x1c5   :  { %v2013_v9 = vmax.f32 %v1978_v3, 0.0  ;;  %v4634_v3 = vld [vmem:[#allocation8 + $0x164] ss:$8 sps:$4 sm:$0xff]  }
 0x1c7   :  { %v2021_v20 = vpack.c.bf16 %v2013_v9, %v2012_v34 }
 0x1c9   :  { %v2027_v46 = vrot.slane %v2021_v20, 4 }
 0x1ca   :  { %v4296_v59 = vpop.f32.mrf.mxu0 }
 0x1cc   :  { %v4297_v22 = vpop.f32.mrf.mxu0 }
 0x1cd   :  { %v4298_v44 = vadd.f32 %v4297_v22, %v4296_v59  ;;  %v4647_v59 = vld [vmem:[#allocation8 + $0x30] ss:$8 sps:$4 sm:$0xff]  }
 0x1ce   :  { %v4299_v52 = vpop.f32.mrf.mxu0 }
 0x1cf   :  { %v1911_v28 = vadd.f32 %v4298_v44, %v6917_v16 }
 0x1d0   :  { %v4342_v43 = vpop.f32.mrf.mxu1  ;;  %v4300_v53 = vpop.f32.mrf.mxu0 }
 0x1d1   :  { %v4301_v1 = vadd.f32 %v4300_v53, %v4299_v52  ;;  %v4655_v52 = vld [vmem:[#allocation8 + $0x24] ss:$8 sps:$4 sm:$0xff]   ;;  %v4632_v53 = vld [vmem:[#allocation8 + $0x160] ss:$8 sps:$4 sm:$0xff]  }
 0x1d2   :  { %v4343_v11 = vpop.f32.mrf.mxu1 }
 0x1d3   :  { %v4344_v14 = vadd.f32 %v4343_v11, %v4342_v43  ;;  %v1914_v32 = vadd.f32 %v4301_v1, %v6920_v57 }
 0x1d4   :  { %v4345_v62 = vpop.f32.mrf.mxu1 }
 0x1d5   :  { %v1983_v58 = vadd.f32 %v4344_v14, %v1911_v28  ;;  %v4640_v28 = vld [vmem:[#allocation8 + $0x154] ss:$8 sps:$4 sm:$0xff]   ;;  %v4653_v14 = vld [vmem:[#allocation8 + $0x20] ss:$8 sps:$4 sm:$0xff]  }
 0x1d6   :  { %v4346_v27 = vpop.f32.mrf.mxu1 }
 0x1d7   :  { %v4347_v56 = vadd.f32 %v4346_v27, %v4345_v62  ;;  %v2014_v29 = vmax.f32 %v1983_v58, 0.0  ;;  %v4661_v58 = vld [vmem:[#allocation8 + $0x14] ss:$8 sps:$4 sm:$0xff]  }
 0x1d9   :  { %v1986_v13 = vadd.f32 %v4347_v56, %v1914_v32 }
 0x1db   :  { %v2015_v12 = vmax.f32 %v1986_v13, 0.0 }
 0x1dd   :  { %v2022_v24 = vpack.c.bf16 %v2015_v12, %v2014_v29  ;;  %v4638_v29 = vld [vmem:[#allocation8 + $0x150] ss:$8 sps:$4 sm:$0xff]  }
 0x1de   :  { %v4302_v6 = vpop.f32.mrf.mxu0 }
 0x1df   :  { %v2029_v61 = vrot.slane %v2022_v24, 4  ;;  %v4646_v24 = vld [vmem:[#allocation8 + $0x144] ss:$8 sps:$4 sm:$0xff]  }
 0x1e0   :  { %v4303_v4 = vpop.f32.mrf.mxu0 }
 0x1e1   :  { %v4304_v7 = vadd.f32 %v4303_v4, %v4302_v6  ;;  %v4348_v50 = vpop.f32.mrf.mxu1  ;;  %v2042_v16 = vsel %vm331_vm2, %v2027_v46, %v2029_v61 }
 0x1e2   :  { %v4305_v38 = vpop.f32.mrf.mxu0  ;;  %2487 = vmatprep.mubr.bf16.mxu0 %v2042_v16 }
 0x1e3   :  { %v4349_v21 = vpop.f32.mrf.mxu1  ;;  %v1919_v40 = vadd.f32 %v4304_v7, %v6923_v49  ;;  %2488 = vmatmul.mubr.bf16.vlgmr.msra.gmra.mxu0 %v2021_v20 }
 0x1e4   :  { %v4306_v57 = vpop.f32.mrf.mxu0  ;;  %3366 = vmatpush1.bf16.msra.mxu0 %v4623_v41  ;;  %v4350_v63 = vadd.f32 %v4349_v21, %v4348_v50  ;;  %v4667_v50 = vld [vmem:[#allocation8 + $0x4] ss:$8 sps:$4 sm:$0xff]  }
 0x1e5   :  { %v4307_v31 = vadd.f32 %v4306_v57, %v4305_v38  ;;  %v4351_v10 = vpop.f32.mrf.mxu1  ;;  %3367 = vmatprep.subr.bf16.mxu0 %v4631_v37  ;;  %v4644_v37 = vld [vmem:[#allocation8 + $0x140] ss:$8 sps:$4 sm:$0xff]   ;;  %v4652_v57 = vld [vmem:[#allocation8 + $0x134] ss:$8 sps:$4 sm:$0xff]  }
 0x1e6   :  { %v1991_v36 = vadd.f32 %v4350_v63, %v1919_v40 }
 0x1e7   :  { %v1922_v23 = vadd.f32 %v4307_v31, %v6926_v0  ;;  %v4352_v51 = vpop.f32.mrf.mxu1  ;;  %v4649_v0 = vld [vmem:[#allocation8 + $0x34] ss:$8 sps:$4 sm:$0xff]  }
 0x1e8   :  { %v4353_v15 = vadd.f32 %v4352_v51, %v4351_v10  ;;  %3368 = vmatpush1.bf16.msra.mxu0 %v4629_v45  ;;  %v2016_v18 = vmax.f32 %v1991_v36, 0.0  ;;  %v4665_v10 = vld [vmem:[#allocation8] ss:$8 sps:$4 sm:$0xff]  }
 0x1e9   :  { %3369 = vmatprep.subr.bf16.mxu0 %v4637_v48  ;;  %v4658_v48 = vld [vmem:[#allocation8 + $0x124] ss:$8 sps:$4 sm:$0xff]  }
 0x1ea   :  { %v4308_v55 = vpop.f32.mrf.mxu0  ;;  %v1994_v35 = vadd.f32 %v4353_v15, %v1922_v23  ;;  %v4650_v23 = vld [vmem:[#allocation8 + $0x130] ss:$8 sps:$4 sm:$0xff]  }
 0x1eb   :  { %v4671_v15 = vld [vmem:[#allocation8 + $0xf0] ss:$8 sps:$4 sm:$0xff]  }
 0x1ec   :  { %v4309_v49 = vpop.f32.mrf.mxu0  ;;  %v2017_v30 = vmax.f32 %v1994_v35, 0.0  ;;  %3370 = vmatpush1.bf16.msra.mxu0 %v4635_v2  ;;  %v4656_v35 = vld [vmem:[#allocation8 + $0x120] ss:$8 sps:$4 sm:$0xff]  }
 0x1ed   :  { %3371 = vmatprep.subr.bf16.mxu0 %v4643_v42  ;;  %v4310_v8 = vadd.f32 %v4309_v49, %v4308_v55  ;;  %v4679_v55 = vld [vmem:[#allocation8 + $0xe4] ss:$8 sps:$4 sm:$0xff]  }
 0x1ee   :  { %v4311_v33 = vpop.f32.mrf.mxu0  ;;  %v2023_v17 = vpack.c.bf16 %v2017_v30, %v2016_v18  ;;  %v4664_v18 = vld [vmem:[#allocation8 + $0x114] ss:$8 sps:$4 sm:$0xff]   ;;  %v4677_v30 = vld [vmem:[#allocation8 + $0xe0] ss:$8 sps:$4 sm:$0xff]  }
 0x1ef   :  { %v1927_v44 = vadd.f32 %v4310_v8, %v6929_v5  ;;  %v4676_v8 = vld [vmem:[#allocation8 + $0x1f4] ss:$8 sps:$4 sm:$0xff]  }
 0x1f0   :  { %v4312_v60 = vpop.f32.mrf.mxu0  ;;  %v2031_v47 = vrot.slane %v2023_v17, 4  ;;  %2540 = vmatprep.mubr.bf16.mxu1 %v2023_v17  ;;  %3372 = vmatpush1.bf16.msra.mxu0 %v4641_v25  ;;  %v4662_v25 = vld [vmem:[#allocation8 + $0x110] ss:$8 sps:$4 sm:$0xff]   ;;  %v4670_v17 = vld [vmem:[#allocation8 + $0x104] ss:$8 sps:$4 sm:$0xff]  }
 0x1f1   :  { %v4313_v34 = vadd.f32 %v4312_v60, %v4311_v33  ;;  %3373 = vmatprep.subr.bf16.mxu0 %v4649_v0  ;;  %v4685_v33 = vld [vmem:[#allocation8 + $0xd4] ss:$8 sps:$4 sm:$0xff]   ;;  %v4683_v0 = vld [vmem:[#allocation8 + $0xd0] ss:$8 sps:$4 sm:$0xff]   ;;  %v4668_v60 = vld [vmem:[#allocation8 + $0x100] ss:$8 sps:$4 sm:$0xff]  }
 0x1f2   :  { %v4354_v26 = vpop.f32.mrf.mxu1  ;;  %v2045_v9 = vsel %vm331_vm2, %v2029_v61, %v2031_v47  ;;  %v2034_v20 = vrot.slane %v2031_v47, 4  ;;  %v4674_v47 = vld [vmem:[#allocation8 + $0x1f0] ss:$8 sps:$4 sm:$0xff]  }
 0x1f3   :  { %2541 = vmatmul.mubr.bf16.vlgmr.msra.gmra.mxu1 %v2045_v9  ;;  %v1930_v62 = vadd.f32 %v4313_v34, %v6932_v19  ;;  %v4659_v19 = vld [vmem:[#allocation8 + $0x10] ss:$8 sps:$4 sm:$0xff]  }
 0x1f4   :  { %v4355_v22 = vpop.f32.mrf.mxu1  ;;  %2497 = vmatprep.mubr.bf16.mxu0 %v2034_v20  ;;  %3407 = vmatpush1.bf16.msra.mxu1 %v4626_v39  ;;  %v4682_v39 = vld [vmem:[#allocation8 + $0x1e4] ss:$8 sps:$4 sm:$0xff]   ;;  %v4686_v34 = vld [vmem:[#allocation8 + $0x1d0] ss:$8 sps:$4 sm:$0xff]  }
 0x1f5   :  { %v4356_v43 = vadd.f32 %v4355_v22, %v4354_v26  ;;  %2498 = vmatmul.mubr.bf16.gmra.mxu0 %v2045_v9  ;;  %3408 = vmatprep.subr.bf16.mxu1 %v4634_v3  ;;  %v4680_v26 = vld [vmem:[#allocation8 + $0x1e0] ss:$8 sps:$4 sm:$0xff]   ;;  %v4688_v3 = vld [vmem:[#allocation8 + $0x1d4] ss:$8 sps:$4 sm:$0xff]   ;;  %v4691_v20 = vld [vmem:[#allocation8 + $0xc4] ss:$8 sps:$4 sm:$0xff]  }
 0x1f6   :  { %v4357_v1 = vpop.f32.mrf.mxu1  ;;  %v4314_v11 = vpop.f32.mrf.mxu0  ;;  %3374 = vmatpush1.bf16.msra.mxu0 %v4647_v59  ;;  %v4689_v9 = vld [vmem:[#allocation8 + $0xc0] ss:$8 sps:$4 sm:$0xff]   ;;  %v4694_v22 = vld [vmem:[#allocation8 + $0x1c4] ss:$8 sps:$4 sm:$0xff]  }
 0x1f7   :  { %3375 = vmatprep.subr.bf16.mxu0 %v4655_v52  ;;  %v1999_v56 = vadd.f32 %v4356_v43, %v1927_v44  ;;  %v4692_v59 = vld [vmem:[#allocation8 + $0x1c0] ss:$8 sps:$4 sm:$0xff]   ;;  %v4695_v52 = vld [vmem:[#allocation8 + $0xb0] ss:$8 sps:$4 sm:$0xff]   ;;  %v4697_v44 = vld [vmem:[#allocation8 + $0xb4] ss:$8 sps:$4 sm:$0xff]  }
 0x1f8   :  { %v4358_v32 = vpop.f32.mrf.mxu1  ;;  %v4315_v27 = vpop.f32.mrf.mxu0  ;;  %3409 = vmatpush1.bf16.msra.mxu1 %v4632_v53  ;;  %v4698_v43 = vld [vmem:[#allocation8 + $0x1b0] ss:$8 sps:$4 sm:$0xff]   ;;  %v4700_v53 = vld [vmem:[#allocation8 + $0x1b4] ss:$8 sps:$4 sm:$0xff]  }
 0x1f9   :  { %v4359_v13 = vadd.f32 %v4358_v32, %v4357_v1  ;;  %v4316_v5 = vadd.f32 %v4315_v27, %v4314_v11  ;;  %3410 = vmatprep.subr.bf16.mxu1 %v4640_v28  ;;  %v2018_v38 = vmax.f32 %v1999_v56, 0.0  ;;  %v4701_v1 = vld [vmem:[#allocation8 + $0xa0] ss:$8 sps:$4 sm:$0xff]   ;;  %v4703_v11 = vld [vmem:[#allocation8 + $0xa4] ss:$8 sps:$4 sm:$0xff]  }
 0x1fa   :  { %v4360_v12 = vpop.f32.mrf.mxu1  ;;  %v4317_v6 = vpop.f32.mrf.mxu0  ;;  %3376 = vmatpush1.bf16.msra.mxu0 %v4653_v14  ;;  %v4704_v28 = vld [vmem:[#allocation8 + $0x1a0] ss:$8 sps:$4 sm:$0xff]   ;;  %v4707_v14 = vld [vmem:[#allocation8 + $0x90] ss:$8 sps:$4 sm:$0xff]   ;;  %v4709_v32 = vld [vmem:[#allocation8 + $0x94] ss:$8 sps:$4 sm:$0xff]  }
 0x1fb   :  { %v2002_v4 = vadd.f32 %v4359_v13, %v1930_v62  ;;  %v1935_v61 = vadd.f32 %v4316_v5, %v6935_v54  ;;  %3377 = vmatprep.subr.bf16.mxu0 %v4661_v58  ;;  %v4673_v54 = vld [vmem:[#allocation8 + $0xf4] ss:$8 sps:$4 sm:$0xff]   ;;  %v4706_v62 = vld [vmem:[#allocation8 + $0x1a4] ss:$8 sps:$4 sm:$0xff]   ;;  %v4710_v27 = vld [vmem:[#allocation8 + $0x190] ss:$8 sps:$4 sm:$0xff]  }
 0x1fc   :  { %v4361_v7 = vpop.f32.mrf.mxu1  ;;  %v4318_v46 = vpop.f32.mrf.mxu0  ;;  %3411 = vmatpush1.bf16.msra.mxu1 %v4638_v29  ;;  %v4712_v58 = vld [vmem:[#allocation8 + $0x194] ss:$8 sps:$4 sm:$0xff]   ;;  %v4715_v56 = vld [vmem:[#allocation8 + $0x84] ss:$8 sps:$4 sm:$0xff]   ;;  %v4713_v5 = vld [vmem:[#allocation8 + $0x80] ss:$8 sps:$4 sm:$0xff]  }
 0x1fd   :  { %v2019_v41 = vmax.f32 %v2002_v4, 0.0  ;;  %v4362_v16 = vadd.f32 %v4361_v7, %v4360_v12  ;;  %3412 = vmatprep.subr.bf16.mxu1 %v4646_v24  ;;  %v4718_v13 = vld [vmem:[#allocation8 + $0x184] ss:$8 sps:$4 sm:$0xff]   ;;  %v4716_v29 = vld [vmem:[#allocation8 + $0x180] ss:$8 sps:$4 sm:$0xff]   ;;  %v2125_v24 = vlaneseq }
 0x1fe   :  { %v4363_v21 = vpop.f32.mrf.mxu1  ;;  %3378 = vmatpush1.bf16.msra.mxu0 %v4659_v19  ;;  %v4721_v12 = vld [vmem:[#allocation8 + $0x274] ss:$8 sps:$4 sm:$0xff]   ;;  %v2123_v46 = vld [vmem:[%s7025_s4] sm:$0x3] }
 0x1ff   :  { %v2024_v40 = vpack.c.bf16 %v2019_v41, %v2018_v38  ;;  %v2007_v31 = vadd.f32 %v4362_v16, %v1935_v61  ;;  %3379 = vmatprep.subr.bf16.mxu0 %v4667_v50  ;;  %v4724_v6 = vld [vmem:[#allocation8 + $0x374] ss:$8 sps:$4 sm:$0xff]   ;;  %v6949_v4 = vshrl.u32 %v2125_v24, 7  ;;  %v4754_v24 = vld [vmem:[#allocation8 + $0x324] ss:$8 sps:$4 sm:$0xff]  }
 0x200   :  { %v4364_v45 = vpop.f32.mrf.mxu1  ;;  %3413 = vmatpush1.bf16.msra.mxu1 %v4644_v37 }
 0x201   :  { %v2020_v63 = vmax.f32 %v2007_v31, 0.0  ;;  %3414 = vmatprep.subr.bf16.mxu1 %v4652_v57  ;;  %v2033_v51 = vrot.slane %v2024_v40, 4  ;;  %v2127_v19 = vsub.s32 0, %v6949_v4  ;;  %v2131_v50 = vsub.s32 1, %v6949_v4 }
 0x202   :  { %3380 = vmatpush1.bf16.msra.mxu0 %v4665_v10 }
 0x203   :  { %v2025_v36 = vpack.c.bf16 %v2020_v63, %v2020_v63  ;;  %3381 = vmatprep.subr.bf16.mxu0 %v4673_v54  ;;  %v2035_v49 = vrot.slane %v2033_v51, 4  ;;  %v6958_v38 = vrot.slane %v2123_v46, %v2127_v19  ;;  %v2132_v16 = vrot.slane %v2123_v46, %v2131_v50  ;;  %v4757_v46 = vld [vmem:[#allocation8 + $0x214] ss:$8 sps:$4 sm:$0xff]  }
 0x204   :  { %3415 = vmatpush1.bf16.msra.mxu1 %v4650_v23 }
 0x205   :  { %v2037_v2 = vrot.slane %v2025_v36, 4  ;;  %3416 = vmatprep.subr.bf16.mxu1 %v4658_v48 }
 0x206   :  { %3382 = vmatpush2.bf16.msra.mxu0 %v4671_v15 }
 0x207   :  { %v2057_v42 = vsel %vm331_vm2, %v2033_v51, %v2037_v2  ;;  %3383 = vmatprep.subr.bf16.mxu0 %v4679_v55 }
 0x208   :  { %2550 = vmatprep.mubr.bf16.mxu1 %v2057_v42  ;;  %3417 = vmatpush1.bf16.msra.mxu1 %v4656_v35 }
 0x209   :  { %2551 = vmatmul.mubr.bf16.gmra.mxu1 %v2035_v49  ;;  %3418 = vmatprep.subr.bf16.mxu1 %v4664_v18 }
 0x20a   :  { %3384 = vmatpush2.bf16.msra.mxu0 %v4677_v30  ;;  %v4719_v30 = vld [vmem:[#allocation8 + $0x270] ss:$8 sps:$4 sm:$0xff]  }
 0x20b   :  { %3385 = vmatprep.subr.bf16.mxu0 %v4685_v33  ;;  %v4727_v33 = vld [vmem:[#allocation8 + $0x264] ss:$8 sps:$4 sm:$0xff]  }
 0x20c   :  { %3419 = vmatpush1.bf16.msra.mxu1 %v4662_v25 }
 0x20d   :  { %3420 = vmatprep.subr.bf16.mxu1 %v4670_v17  ;;  %v4722_v17 = vld [vmem:[#allocation8 + $0x370] ss:$8 sps:$4 sm:$0xff]  }
 0x20e   :  { %3386 = vmatpush2.bf16.msra.mxu0 %v4683_v0 }
 0x20f   :  { %3387 = vmatprep.subr.bf16.mxu0 %v4691_v20  ;;  %v4739_v20 = vld [vmem:[#allocation8 + $0x244] ss:$8 sps:$4 sm:$0xff]  }
 0x210   :  { %3421 = vmatpush1.bf16.msra.mxu1 %v4668_v60  ;;  %v4730_v60 = vld [vmem:[#allocation8 + $0x364] ss:$8 sps:$4 sm:$0xff]  }
 0x211   :  { %3422 = vmatprep.subr.bf16.mxu1 %v4676_v8 }
 0x212   :  { %3388 = vmatpush2.bf16.msra.mxu0 %v4689_v9  ;;  %v4731_v9 = vld [vmem:[#allocation8 + $0x250] ss:$8 sps:$4 sm:$0xff]  }
 0x213   :  { %3389 = vmatprep.subr.bf16.mxu0 %v4697_v44 }
 0x214   :  { %3423 = vmatpush2.bf16.msra.mxu1 %v4674_v47  ;;  %v4725_v47 = vld [vmem:[#allocation8 + $0x260] ss:$8 sps:$4 sm:$0xff]  }
 0x215   :  { %3424 = vmatprep.subr.bf16.mxu1 %v4682_v39  ;;  %v4733_v39 = vld [vmem:[#allocation8 + $0x254] ss:$8 sps:$4 sm:$0xff]  }
 0x216   :  { %3390 = vmatpush2.bf16.msra.mxu0 %v4695_v52  ;;  %v4742_v52 = vld [vmem:[#allocation8 + $0x344] ss:$8 sps:$4 sm:$0xff]  }
 0x217   :  { %3391 = vmatprep.subr.bf16.mxu0 %v4703_v11  ;;  %v4745_v11 = vld [vmem:[#allocation8 + $0x234] ss:$8 sps:$4 sm:$0xff]  }
 0x218   :  { %3425 = vmatpush2.bf16.msra.mxu1 %v4680_v26  ;;  %v4728_v26 = vld [vmem:[#allocation8 + $0x360] ss:$8 sps:$4 sm:$0xff]  }
 0x219   :  { %3426 = vmatprep.subr.bf16.mxu1 %v4688_v3  ;;  %v4736_v3 = vld [vmem:[#allocation8 + $0x354] ss:$8 sps:$4 sm:$0xff]  }
 0x21a   :  { %3392 = vmatpush2.bf16.msra.mxu0 %v4701_v1 }
 0x21b   :  { %3393 = vmatprep.subr.bf16.mxu0 %v4709_v32 }
 0x21c   :  { %3427 = vmatpush2.bf16.msra.mxu1 %v4686_v34 }
 0x21d   :  { %3428 = vmatprep.subr.bf16.mxu1 %v4694_v22  ;;  %v4734_v22 = vld [vmem:[#allocation8 + $0x350] ss:$8 sps:$4 sm:$0xff]  }
 0x21e   :  { %3394 = vmatpush2.bf16.msra.mxu0 %v4707_v14 }
 0x21f   :  { %3395 = vmatprep.subr.bf16.mxu0 %v4715_v56  ;;  %v4743_v56 = vld [vmem:[#allocation8 + $0x230] ss:$8 sps:$4 sm:$0xff]  }
 0x220   :  { %3429 = vmatpush2.bf16.msra.mxu1 %v4692_v59 }
 0x221   :  { %3430 = vmatprep.subr.bf16.mxu1 %v4700_v53  ;;  %v4737_v53 = vld [vmem:[#allocation8 + $0x240] ss:$8 sps:$4 sm:$0xff]  }
 0x222   :  { %3396 = vmatpush2.bf16.msra.mxu0 %v4713_v5  ;;  %v4751_v5 = vld [vmem:[#allocation8 + $0x224] ss:$8 sps:$4 sm:$0xff]  }
 0x223   :  { %3447 = vmatprep.subr.bf16.mxu0 %v4721_v12 }
 0x224   :  { %3431 = vmatpush2.bf16.msra.mxu1 %v4698_v43 }
 0x225   :  { %3432 = vmatprep.subr.bf16.mxu1 %v4706_v62  ;;  %v4740_v62 = vld [vmem:[#allocation8 + $0x340] ss:$8 sps:$4 sm:$0xff]  }
 0x228   :  { %3433 = vmatpush2.bf16.msra.mxu1 %v4704_v28 }
 0x229   :  { %3434 = vmatprep.subr.bf16.mxu1 %v4712_v58 }
 0x22c   :  { %3435 = vmatpush2.bf16.msra.mxu1 %v4710_v27  ;;  %v4748_v27 = vld [vmem:[#allocation8 + $0x334] ss:$8 sps:$4 sm:$0xff]  }
 0x22d   :  { %3436 = vmatprep.subr.bf16.mxu1 %v4718_v13 }
 0x230   :  { %3437 = vmatpush2.bf16.msra.mxu1 %v4716_v29  ;;  %v4746_v29 = vld [vmem:[#allocation8 + $0x330] ss:$8 sps:$4 sm:$0xff]  }
 0x231   :  { %3488 = vmatprep.subr.bf16.mxu1 %v4724_v6 }
 0x2a3   :  { %v2489_v61 = vpop.f32.mrf.mxu0 }
 0x2a4   :  { %v2490_v21 = vadd.f32 %v2489_v61, %v6958_v38  ;;  %v4749_v61 = vld [vmem:[#allocation8 + $0x220] ss:$8 sps:$4 sm:$0xff]  }
 0x2a5   :  { %v2491_v7 = vpop.f32.mrf.mxu0 }
 0x2a6   :  { %v2492_v31 = vadd.f32 %v2491_v7, %v2132_v16 }
 0x2a7   :  { %v2493_v41 = vpop.f32.mrf.mxu0 }
 0x2a8   :  { %v2494_v10 = vadd.f32 %v2493_v41, %v6958_v38  ;;  %v4752_v41 = vld [vmem:[#allocation8 + $0x320] ss:$8 sps:$4 sm:$0xff]  }
 0x2a9   :  { %v2495_v57 = vpop.f32.mrf.mxu0 }
 0x2aa   :  { %v2496_v63 = vadd.f32 %v2495_v57, %v2132_v16  ;;  %v4763_v57 = vld [vmem:[#allocation8 + $0x204] ss:$8 sps:$4 sm:$0xff]  }
 0x2b3   :  { %v2542_v37 = vpop.f32.mrf.mxu1 }
 0x2b4   :  { %v2543_v45 = vadd.f32 %v2542_v37, %v2490_v21  ;;  %v4760_v37 = vld [vmem:[#allocation8 + $0x314] ss:$8 sps:$4 sm:$0xff]   ;;  %v4755_v21 = vld [vmem:[#allocation8 + $0x210] ss:$8 sps:$4 sm:$0xff]  }
 0x2b5   :  { %v2544_v40 = vpop.f32.mrf.mxu1  ;;  %v6964_v49 = vpop.f32.mrf.mxu0 }
 0x2b6   :  { %v2545_v23 = vadd.f32 %v2544_v40, %v2492_v31  ;;  %v2561_v55 = vmax.f32 %v2543_v45, 0.0  ;;  %v4758_v40 = vld [vmem:[#allocation8 + $0x310] ss:$8 sps:$4 sm:$0xff]   ;;  %v4766_v31 = vld [vmem:[#allocation8 + $0x304] ss:$8 sps:$4 sm:$0xff]  }
 0x2b7   :  { %v2546_v54 = vpop.f32.mrf.mxu1  ;;  %v2501_v8 = vpop.f32.mrf.mxu0  ;;  %v4769_v45 = vld [vmem:[#allocation8 + $0x2f4] ss:$8 sps:$4 sm:$0xff]  }
 0x2b8   :  { %v2547_v48 = vadd.f32 %v2546_v54, %v2494_v10  ;;  %v2562_v2 = vmax.f32 %v2545_v23, 0.0  ;;  %v2502_v1 = vadd.f32 %v2501_v8, %v2132_v16  ;;  %v4761_v10 = vld [vmem:[#allocation8 + $0x200] ss:$8 sps:$4 sm:$0xff]   ;;  %v4767_v23 = vld [vmem:[#allocation8 + $0x2f0] ss:$8 sps:$4 sm:$0xff]  }
 0x2b9   :  { %v2548_v51 = vpop.f32.mrf.mxu1  ;;  %v6966_v34 = vpop.f32.mrf.mxu0  ;;  %v4764_v54 = vld [vmem:[#allocation8 + $0x300] ss:$8 sps:$4 sm:$0xff]   ;;  %v4791_v8 = vld [vmem:[#allocation8 + $0x2b0] ss:$8 sps:$4 sm:$0xff]  }
 0x2ba   :  { %v2563_v36 = vmax.f32 %v2547_v48, 0.0  ;;  %v2549_v15 = vadd.f32 %v2548_v51, %v2496_v63  ;;  %v4772_v63 = vld [vmem:[#allocation8 + $0x3f4] ss:$8 sps:$4 sm:$0xff]   ;;  %v4775_v48 = vld [vmem:[#allocation8 + $0x2e4] ss:$8 sps:$4 sm:$0xff]  }
 0x2bb   :  { %v2505_v44 = vpop.f32.mrf.mxu0  ;;  %v4770_v51 = vld [vmem:[#allocation8 + $0x3f0] ss:$8 sps:$4 sm:$0xff]  }
 0x2bc   :  { %v2564_v35 = vmax.f32 %v2549_v15, 0.0  ;;  %v2569_v42 = vpack.c.bf16 %v2563_v36, %v2561_v55  ;;  %v2506_v14 = vadd.f32 %v2505_v44, %v2132_v16  ;;  %v4778_v36 = vld [vmem:[#allocation8 + $0x3e4] ss:$8 sps:$4 sm:$0xff]   ;;  %v4773_v15 = vld [vmem:[#allocation8 + $0x2e0] ss:$8 sps:$4 sm:$0xff]  }
 0x2bd   :  { %v4781_v55 = vld [vmem:[#allocation8 + $0x2d4] ss:$8 sps:$4 sm:$0xff]  }
 0x2be   :  { %v2570_v18 = vpack.c.bf16 %v2564_v35, %v2562_v2  ;;  %v2575_v0 = vrot.slane %v2569_v42, 4  ;;  %v4776_v2 = vld [vmem:[#allocation8 + $0x3e0] ss:$8 sps:$4 sm:$0xff]   ;;  %v4784_v35 = vld [vmem:[#allocation8 + $0x3d4] ss:$8 sps:$4 sm:$0xff]  }
 0x2c0   :  { %3397 = vmatprep.mubr.bf16.mxu0 %v2570_v18  ;;  %v2576_v25 = vrot.slane %v2570_v18, 4  ;;  %v4787_v18 = vld [vmem:[#allocation8 + $0x2c4] ss:$8 sps:$4 sm:$0xff]  }
 0x2c1   :  { %3398 = vmatmul.mubr.bf16.vlgmr.msra.gmra.mxu0 %v2569_v42  ;;  %v4779_v42 = vld [vmem:[#allocation8 + $0x2d0] ss:$8 sps:$4 sm:$0xff]  }
 0x2c2   :  { %3448 = vmatpush1.bf16.msra.mxu0 %v4719_v30  ;;  %3438 = vmatprep.mubr.bf16.mxu1 %v2576_v25  ;;  %v4782_v30 = vld [vmem:[#allocation8 + $0x3d0] ss:$8 sps:$4 sm:$0xff]   ;;  %v4785_v25 = vld [vmem:[#allocation8 + $0x2c0] ss:$8 sps:$4 sm:$0xff]  }
 0x2c3   :  { %3439 = vmatmul.mubr.bf16.vlgmr.msra.gmra.mxu1 %v2575_v0  ;;  %3449 = vmatprep.subr.bf16.mxu0 %v4727_v33  ;;  %v4790_v33 = vld [vmem:[#allocation8 + $0x3c4] ss:$8 sps:$4 sm:$0xff]   ;;  %v4788_v0 = vld [vmem:[#allocation8 + $0x3c0] ss:$8 sps:$4 sm:$0xff]  }
 0x2c4   :  { %3489 = vmatpush1.bf16.msra.mxu1 %v4722_v17  ;;  %v4793_v17 = vld [vmem:[#allocation8 + $0x2b4] ss:$8 sps:$4 sm:$0xff]  }
 0x2c5   :  { %3490 = vmatprep.subr.bf16.mxu1 %v4730_v60  ;;  %v4796_v60 = vld [vmem:[#allocation8 + $0x3b4] ss:$8 sps:$4 sm:$0xff]  }
 0x2c6   :  { %3450 = vmatpush1.bf16.msra.mxu0 %v4725_v47  ;;  %v4799_v47 = vld [vmem:[#allocation8 + $0x2a4] ss:$8 sps:$4 sm:$0xff]  }
 0x2c7   :  { %3451 = vmatprep.subr.bf16.mxu0 %v4733_v39  ;;  %v4794_v39 = vld [vmem:[#allocation8 + $0x3b0] ss:$8 sps:$4 sm:$0xff]  }
 0x2c8   :  { %3491 = vmatpush1.bf16.msra.mxu1 %v4728_v26  ;;  %v4802_v26 = vld [vmem:[#allocation8 + $0x3a4] ss:$8 sps:$4 sm:$0xff]  }
 0x2c9   :  { %v6968_v59 = vpop.f32.mrf.mxu1  ;;  %3492 = vmatprep.subr.bf16.mxu1 %v4736_v3  ;;  %v4797_v3 = vld [vmem:[#allocation8 + $0x2a0] ss:$8 sps:$4 sm:$0xff]  }
 0x2ca   :  { %3452 = vmatpush1.bf16.msra.mxu0 %v4731_v9  ;;  %v2504_v9 = vadd.f32 %v6966_v34, %v6958_v38 }
 0x2cb   :  { %v2554_v43 = vpop.f32.mrf.mxu1  ;;  %3453 = vmatprep.subr.bf16.mxu0 %v4739_v20  ;;  %v4805_v20 = vld [vmem:[#allocation8 + $0x294] ss:$8 sps:$4 sm:$0xff]  }
 0x2cc   :  { %3493 = vmatpush1.bf16.msra.mxu1 %v4734_v22  ;;  %v2555_v32 = vadd.f32 %v2554_v43, %v2502_v1  ;;  %v4800_v22 = vld [vmem:[#allocation8 + $0x3a0] ss:$8 sps:$4 sm:$0xff]   ;;  %v4808_v43 = vld [vmem:[#allocation8 + $0x394] ss:$8 sps:$4 sm:$0xff]  }
 0x2cd   :  { %v6970_v28 = vpop.f32.mrf.mxu1  ;;  %3494 = vmatprep.subr.bf16.mxu1 %v4742_v52  ;;  %v2500_v52 = vadd.f32 %v6964_v49, %v6958_v38  ;;  %v4812_v38 = vld [vmem:[#allocation8 + $0x380] ss:$8 sps:$4 sm:$0xff]  }
 0x2ce   :  { %3454 = vmatpush1.bf16.msra.mxu0 %v4737_v53  ;;  %v2566_v12 = vmax.f32 %v2555_v32, 0.0  ;;  %v2557_v44 = vadd.f32 %v6970_v28, %v2504_v9  ;;  %v4803_v53 = vld [vmem:[#allocation8 + $0x290] ss:$8 sps:$4 sm:$0xff]   ;;  %v4809_v32 = vld [vmem:[#allocation8 + $0x280] ss:$8 sps:$4 sm:$0xff]  }
 0x2cf   :  { %v2558_v58 = vpop.f32.mrf.mxu1  ;;  %3455 = vmatprep.subr.bf16.mxu0 %v4745_v11  ;;  %v2553_v1 = vadd.f32 %v6968_v59, %v2500_v52  ;;  %v4811_v11 = vld [vmem:[#allocation8 + $0x284] ss:$8 sps:$4 sm:$0xff]   ;;  %v4815_v59 = vld [vmem:[#allocation10 + $0x78] sm:$0xff]  }
 0x2d0   :  { %v2559_v13 = vadd.f32 %v2558_v58, %v2506_v14  ;;  %3495 = vmatpush1.bf16.msra.mxu1 %v4740_v62  ;;  %v4806_v62 = vld [vmem:[#allocation8 + $0x390] ss:$8 sps:$4 sm:$0xff]   ;;  %v2567_v34 = vmax.f32 %v2557_v44, 0.0  ;;  %v4814_v14 = vld [vmem:[#allocation8 + $0x384] ss:$8 sps:$4 sm:$0xff]  }
 0x2d1   :  { %3496 = vmatprep.subr.bf16.mxu1 %v4748_v27  ;;  %v2565_v27 = vmax.f32 %v2553_v1, 0.0  ;;  %v4816_v58 = vld [vmem:[#allocation10 + $0x38] sm:$0xff]   ;;  %v4837_v1 = vld [vmem:[%s7030_s9 + $0x8] sm:$0xff]  }
 0x2d2   :  { %v2568_v6 = vmax.f32 %v2559_v13, 0.0  ;;  %3456 = vmatpush1.bf16.msra.mxu0 %v4743_v56  ;;  %v4817_v56 = vld [vmem:[#allocation10 + $0x70] sm:$0xff]  }
 0x2d3   :  { %3457 = vmatprep.subr.bf16.mxu0 %v4751_v5  ;;  %v2571_v49 = vpack.c.bf16 %v2567_v34, %v2565_v27  ;;  %v4818_v13 = vld [vmem:[#allocation10 + $0x30] sm:$0xff]   ;;  %v4819_v5 = vld [vmem:[#allocation10 + $0x68] sm:$0xff]   ;;  %v4156_v34 = vld [vmem:[%s7029_s8] ss:$0 sm:$0xff]  ;;  %s4984_s8 = smov [#allocation11]  }
 0x2d4   :  { %v2572_v7 = vpack.c.bf16 %v2568_v6, %v2566_v12  ;;  %3497 = vmatpush1.bf16.msra.mxu1 %v4746_v29  ;;  %v4820_v29 = vld [vmem:[#allocation10 + $0x28] sm:$0xff]   ;;  %v4821_v12 = vld [vmem:[#allocation10 + $0x60] sm:$0xff]  }
 0x2d5   :  { %3498 = vmatprep.subr.bf16.mxu1 %v4754_v24  ;;  %v2581_v28 = vrot.slane %v2571_v49, 4  ;;  %v4822_v6 = vld [vmem:[#allocation10 + $0x20] sm:$0xff]   ;;  %v4823_v24 = vld [vmem:[#allocation10 + $0x58] sm:$0xff]  }
 0x2d6   :  { %3479 = vmatprep.mubr.bf16.mxu0 %v2572_v7  ;;  %v2582_v16 = vrot.slane %v2572_v7, 4  ;;  %3458 = vmatpush1.bf16.msra.mxu0 %v4749_v61  ;;  %v4824_v61 = vld [vmem:[#allocation10 + $0x18] sm:$0xff]   ;;  %v4825_v7 = vld [vmem:[#allocation10 + $0x50] sm:$0xff]  }
 0x2d7   :  { %3459 = vmatprep.subr.bf16.mxu0 %v4757_v46  ;;  %v4826_v46 = vld [vmem:[#allocation10 + $0x10] sm:$0xff]  }
 0x2d8   :  { %3520 = vmatprep.mubr.bf16.mxu1 %v2582_v16  ;;  %3499 = vmatpush1.bf16.msra.mxu1 %v4752_v41  ;;  %v4827_v41 = vld [vmem:[#allocation10 + $0x48] sm:$0xff]  }
 0x2d9   :  { %3500 = vmatprep.subr.bf16.mxu1 %v4760_v37  ;;  %v4828_v16 = vld [vmem:[#allocation10 + $0x8] sm:$0xff]   ;;  %v4829_v37 = vld [vmem:[#allocation10 + $0x40] sm:$0xff]  }
 0x2da   :  { %3460 = vmatpush1.bf16.msra.mxu0 %v4755_v21  ;;  %v4830_v21 = vld [vmem:[#allocation10] sm:$0xff]  }
 0x2db   :  { %3461 = vmatprep.subr.bf16.mxu0 %v4763_v57  ;;  %v4831_v57 = vld [vmem:[%s7030_s9 + $0x38] sm:$0xff]  }
 0x2dc   :  { %3501 = vmatpush1.bf16.msra.mxu1 %v4758_v40  ;;  %v4982_v40 = vmov 0.0  }
 0x2dd   :  { %3502 = vmatprep.subr.bf16.mxu1 %v4766_v31  ;;  %v4832_v31 = vld [vmem:[%s7030_s9 + $0x30] sm:$0xff]  }
 0x2de   :  { %3462 = vmatpush1.bf16.msra.mxu0 %v4761_v10  ;;  %v4833_v10 = vld [vmem:[%s7030_s9 + $0x28] sm:$0xff]  }
 0x2df   :  { %3463 = vmatprep.subr.bf16.mxu0 %v4769_v45  ;;  %v4834_v45 = vld [vmem:[%s7030_s9 + $0x20] sm:$0xff]  }
 0x2e0   :  { %3503 = vmatpush1.bf16.msra.mxu1 %v4764_v54  ;;  %v4835_v54 = vld [vmem:[%s7030_s9 + $0x18] sm:$0xff]  }
 0x2e1   :  { %3504 = vmatprep.subr.bf16.mxu1 %v4772_v63 }
 0x2e2   :  { %3464 = vmatpush2.bf16.msra.mxu0 %v4767_v23 }
 0x2e3   :  { %3465 = vmatprep.subr.bf16.mxu0 %v4775_v48 }
 0x2e4   :  { %3505 = vmatpush2.bf16.msra.mxu1 %v4770_v51 }
 0x2e5   :  { %3506 = vmatprep.subr.bf16.mxu1 %v4778_v36 }
 0x2e6   :  { %3466 = vmatpush2.bf16.msra.mxu0 %v4773_v15 }
 0x2e7   :  { %3467 = vmatprep.subr.bf16.mxu0 %v4781_v55 }
 0x2e8   :  { %3507 = vmatpush2.bf16.msra.mxu1 %v4776_v2 }
 0x2e9   :  { %3508 = vmatprep.subr.bf16.mxu1 %v4784_v35  ;;  %v2713_v35 = vld [vmem:[%s7027_s6] sm:$0x3] }
 0x2ea   :  { %3468 = vmatpush2.bf16.msra.mxu0 %v4779_v42  ;;  %v2718_v42 = vrot.slane %v2713_v35, %v2127_v19 }
 0x2eb   :  { %3469 = vmatprep.subr.bf16.mxu0 %v4787_v18  ;;  %v2722_v18 = vrot.slane %v2713_v35, %v2131_v50 }
 0x2ec   :  { %3509 = vmatpush2.bf16.msra.mxu1 %v4782_v30 }
 0x2ed   :  { %3510 = vmatprep.subr.bf16.mxu1 %v4790_v33 }
 0x2ee   :  { %3470 = vmatpush2.bf16.msra.mxu0 %v4785_v25 }
 0x2ef   :  { %3471 = vmatprep.subr.bf16.mxu0 %v4793_v17 }
 0x2f0   :  { %3511 = vmatpush2.bf16.msra.mxu1 %v4788_v0 }
 0x2f1   :  { %3512 = vmatprep.subr.bf16.mxu1 %v4796_v60 }
 0x2f2   :  { %3472 = vmatpush2.bf16.msra.mxu0 %v4791_v8 }
 0x2f3   :  { %3473 = vmatprep.subr.bf16.mxu0 %v4799_v47 }
 0x2f4   :  { %3513 = vmatpush2.bf16.msra.mxu1 %v4794_v39 }
 0x2f5   :  { %3514 = vmatprep.subr.bf16.mxu1 %v4802_v26 }
 0x2f6   :  { %3474 = vmatpush2.bf16.msra.mxu0 %v4797_v3 }
 0x2f7   :  { %3475 = vmatprep.subr.bf16.mxu0 %v4805_v20 }
 0x2f8   :  { %3515 = vmatpush2.bf16.msra.mxu1 %v4800_v22 }
 0x2f9   :  { %3516 = vmatprep.subr.bf16.mxu1 %v4808_v43 }
 0x2fa   :  { %3476 = vmatpush2.bf16.msra.mxu0 %v4803_v53  ;;  %v4836_v53 = vld [vmem:[%s7030_s9 + $0x10] sm:$0xff]  }
 0x2fb   :  { %3477 = vmatprep.subr.bf16.mxu0 %v4811_v11  ;;  %v4838_v11 = vld [vmem:[%s7030_s9] sm:$0xff]   ;;  %s3840_s9 = sshll.u32 %s4984_s8, 4  ;;  %s3841_s9 = int_to_ptr.vmem [resolvable:$true] %s3840_s9 }
 0x2fc   :  { %3517 = vmatpush2.bf16.msra.mxu1 %v4806_v62  ;;  %p4948_p12 = scmp.lt.s32.totalorder %s3841_s9, %s3841_s9 }
 0x2fd   :  { %3518 = vmatprep.subr.bf16.mxu1 %v4814_v14 }
 0x2fe   :  { %3478 = vmatpush2.bf16.msra.mxu0 %v4809_v32 }
 0x2ff   :  { %4366 = vmatprep.subr.bf16.mxu0 %v4815_v59 }
 0x300   :  { %3519 = vmatpush2.bf16.msra.mxu1 %v4812_v38 }
 0x301   :  { %3480 = vmatmul.mubr.bf16.vlgmr.msra.gmra.mxu0 %v2571_v49  ;;  %4397 = vmatprep.subr.bf16.mxu1 %v4982_v40 }
 0x302   :  { %4367 = vmatpush3.bf16.msra.mxu0 %v4816_v58  ;;  %v4173_v58 = vld [vmem:[%s7031_s10] ss:$0 sm:$0xff]  ;;  %s4943_s10 = scalar_lea.vmem %s3841_s9, 128 }
 0x303   :  { %3521 = vmatmul.mubr.bf16.vlgmr.msra.gmra.mxu1 %v2581_v28  ;;  %4368 = vmatprep.subr.bf16.mxu0 %v4817_v56  ;;  %p4944_p11 = scmp.ne.s32.totalorder %s3841_s9, %s4943_s10  ;;  %p4949_p13 = scmp.lt.s32.totalorder %s4943_s10, %s4943_s10 }
 0x304   :  { %4398 = vmatpush3.bf16.msra.mxu1 %v4831_v57  ;;  %4413 = vmatprep.mubr.msk.bf16.mxu1 %vm4983_vm8, %v4982_v40 }
 0x305   :  { %4399 = vmatprep.subr.bf16.mxu1 %v4982_v40  ;;  %p4950_p0 = por %p4949_p13, %p4948_p12 }
 0x306   :  { %4369 = vmatpush3.bf16.msra.mxu0 %v4818_v13 }
 0x307   :  { %4370 = vmatprep.subr.bf16.mxu0 %v4819_v5  ;;  %p4951_p1 = pnand %p4950_p0, %p4944_p11 }
 0x308   :  { %4400 = vmatpush3.bf16.msra.mxu1 %v4832_v31 }
 0x309   :  { %4401 = vmatprep.subr.bf16.mxu1 %v4982_v40 }
 0x30a   :  { %4371 = vmatpush3.bf16.msra.mxu0 %v4820_v29 }
 0x30b   :  { %4372 = vmatprep.subr.bf16.mxu0 %v4821_v12 }
 0x30c   :  { %4402 = vmatpush3.bf16.msra.mxu1 %v4833_v10 }
 0x30d   :  { %4403 = vmatprep.subr.bf16.mxu1 %v4982_v40 }
 0x30e   :  { %4373 = vmatpush3.bf16.msra.mxu0 %v4822_v6 }
 0x30f   :  { %4374 = vmatprep.subr.bf16.mxu0 %v4823_v24 }
 0x310   :  { %4404 = vmatpush3.bf16.msra.mxu1 %v4834_v45 }
 0x311   :  { %4405 = vmatprep.subr.bf16.mxu1 %v4982_v40 }
 0x312   :  { %4375 = vmatpush3.bf16.msra.mxu0 %v4824_v61 }
 0x313   :  { %4376 = vmatprep.subr.bf16.mxu0 %v4825_v7 }
 0x314   :  { %4406 = vmatpush3.bf16.msra.mxu1 %v4835_v54 }
 0x315   :  { %4407 = vmatprep.subr.bf16.mxu1 %v4982_v40 }
 0x316   :  { %4377 = vmatpush3.bf16.msra.mxu0 %v4826_v46 }
 0x317   :  { %4378 = vmatprep.subr.bf16.mxu0 %v4827_v41 }
 0x318   :  { %4408 = vmatpush3.bf16.msra.mxu1 %v4836_v53 }
 0x319   :  { %4409 = vmatprep.subr.bf16.mxu1 %v4982_v40 }
 0x31a   :  { %4379 = vmatpush3.bf16.msra.mxu0 %v4828_v16 }
 0x31b   :  { %4380 = vmatprep.subr.bf16.mxu0 %v4829_v37 }
 0x31c   :  { %4410 = vmatpush3.bf16.msra.mxu1 %v4837_v1 }
 0x31d   :  { %4411 = vmatprep.subr.bf16.mxu1 %v4982_v40 }
 0x31e   :  { %4381 = vmatpush3.bf16.msra.mxu0 %v4830_v21 }
 0x320   :  { %4412 = vmatpush3.bf16.msra.mxu1 %v4838_v11 }
 0x381   :  { %v3399_v63 = vpop.f32.mrf.mxu0 }
 0x382   :  { %v3400_v30 = vadd.f32 %v3399_v63, %v2718_v42 }
 0x383   :  { %v3401_v23 = vpop.f32.mrf.mxu0  ;;  %v3440_v48 = vpop.f32.mrf.mxu1 }
 0x384   :  { %v3402_v33 = vadd.f32 %v3401_v23, %v2722_v18  ;;  %v3441_v25 = vadd.f32 %v3440_v48, %v3400_v30 }
 0x385   :  { %v3403_v51 = vpop.f32.mrf.mxu0  ;;  %v3442_v36 = vpop.f32.mrf.mxu1 }
 0x386   :  { %v3443_v0 = vadd.f32 %v3442_v36, %v3402_v33 }
 0x387   :  { %v3404_v15 = vpop.f32.mrf.mxu0  ;;  %v3444_v55 = vpop.f32.mrf.mxu1 }
 0x389   :  { %v3445_v2 = vpop.f32.mrf.mxu1 }
 0x3c1   :  { %v3481_v17 = vpop.f32.mrf.mxu0 }
 0x3c2   :  { %v3482_v60 = vadd.f32 %v3481_v17, %v3441_v25 }
 0x3c3   :  { %v3483_v8 = vpop.f32.mrf.mxu0  ;;  %v3522_v47 = vpop.f32.mrf.mxu1 }
 0x3c4   :  { %v3484_v39 = vadd.f32 %v3483_v8, %v3443_v0  ;;  %v3523_v26 = vadd.f32 %v3522_v47, %v3482_v60 }
 0x3c5   :  { %v3485_v3 = vpop.f32.mrf.mxu0  ;;  %v3524_v9 = vpop.f32.mrf.mxu1 }
 0x3c6   :  { %v3525_v20 = vadd.f32 %v3524_v9, %v3484_v39  ;;  %v3529_v22 = vmax.f32 %v3523_v26, 0.0 }
 0x3c7   :  { %v3486_v52 = vpop.f32.mrf.mxu0  ;;  %v3526_v44 = vpop.f32.mrf.mxu1 }
 0x3c8   :  { %v3530_v19 = vmax.f32 %v3525_v20, 0.0  ;;  %v3531_v50 = vpack.c.bf16 %v3529_v22, %v3529_v22 }
 0x3c9   :  { %v3527_v43 = vpop.f32.mrf.mxu1 }
 0x3ca   :  { %v3532_v4 = vpack.c.bf16 %v3530_v19, %v3530_v19 }
 0x3cc   :  { %3700 = vmatprep.mubr.bf16.mxu0 %v3532_v4 }
 0x3cd   :  { %3701 = vmatmul.mubr.bf16.vlgmr.msra.gmra.mxu0 %v3531_v50 }
 0x48d   :  { %v4382_v62 = vpop.f32.mrf.mxu0 }
 0x48f   :  { %v4383_v14 = vpop.f32.mrf.mxu0 }
 0x490   :  { %v4384_v32 = vadd.f32 %v4383_v14, %v4382_v62 }
 0x491   :  { %v4385_v27 = vpop.f32.mrf.mxu0 }
 0x492   :  { %v3703_v38 = vadd.f32 %v4384_v32, %v4156_v34 }
 0x493   :  { %v4386_v49 = vpop.f32.mrf.mxu0 }
 0x494   :  { %v3708_v28 = vmax.f32 %v3703_v38, 0.0 }
 0x496   :  { %v3709_v59 = vpack.c.bf16 %v3708_v28, %v3708_v28 }
 0x498   :  { %4414 = vmatmul.mubr.bf16.vlgmr.msra.gmra.mxu1 %v3709_v59 }
 0x558   :  { %v3815_v56 = vpop.f32.mrf.mxu1 }
 0x559   :  { %v3816_v13 = vadd.f32 %v4173_v58, %v3815_v56 }
 0x55a   :  { %v4415_v5 = vpop.f32.mrf.mxu1 }
 0x55b   :  { %v3822_v29 = vsel %vm3821_vm9, %v3816_v13, -inf }
 0x55c   :  { %3823 = vmax.xlane.f32.xlu0 %v3822_v29  ;;  %v3818_v12 = vpop.f32.mrf.mxu1 }
 0x55e   :  { %v4416_v6 = vpop.f32.mrf.mxu1 }
 0x5e5   :  { %v3824_v24 = vpop.xlane.xlu0 %3823 }
 0x5e6   :  { %v3825_v61 = vsub.f32 %v3816_v13, %v3824_v24 }
 0x5e8   :  { %v3826_v7 = vmul.f32 1.442695, %v3825_v61 }
 0x5ea   :  { %4839 = vpow2.f32 %v3826_v7 }
 0x5f7   :  { %v4840_v46 = vpop.eup %4839 }
 0x5f8   :  { %v3828_v41 = vsel %vm3821_vm9, %v4840_v46, 0.0 }
 0x5f9   :  { %3829 = vadd.xlane.f32.xlu0 %v3828_v41 }
 0x682   :  { %v3830_v16 = vpop.xlane.xlu0 %3829 }
 0x683   :  { %4841 = vrcp.f32 %v3830_v16 }
 0x690   :  { %v4842_v37 = vpop.eup %4841 }
 0x691   :  { %v3832_v21 = vmul.f32 %v4842_v37, %v4840_v46 }
 0x693   :  { %3833 = vst.msk [vmem:[#allocation11] sm:$0xff] %vm3821_vm9, %v3832_v21 }
 0x694   :  { %4954 = shalt.err (!%p4951_p1)
}
 0x695   :  { %3843 = dma.vmem_to_hbm [thread:$0]  %s3841_s9, 128, %s7032_s11, [#allocation4]  }
 0x696   :  { %4969 = dma.done.wait [#allocation4], 128  }
 0x697   :  { %4970 = vsyncadd [#allocation4], 4294967168 }
 0x698   :  { %3847 = vsyncpa [#allocation3], 1 }
 0x699   :  { %3848 = vsyncpa [#allocation6], 1 }
 0x69a   :  { %3849 = vsyncpa [#allocation9], 1 }
 0x69b   :  { %3850 = vsyncpa [#allocation4], 1 }

</bundles_post_ra>
